<compile_context>
chip_gen: v6e
topology: v6e:2x2x1
jax: 0.10.0
libtpu: 0.0.40
codegen_flags: <defaults>
</compile_context>

<pallas_src>
import functools

import jax
import jax.numpy as jnp
import numpy as np
from jax import lax
from jax.experimental import pallas as pl
from jax.experimental.pallas import tpu as pltpu

_MASK_VALUE = -1e30  # finite stand-in for float('-inf') used by masked_fill_


# ----------------------------- Pallas kernel ---------------------------------

def _fused_attention_kernel(*refs, heads, dim_head, scale, has_mask,
                            batch_block, head_mode):
    """One grid step = `batch_block` batch elements: QKV proj + attention + out proj."""
    if has_mask:
        q_ref, k_ref, v_ref, m_ref = refs[:4]
        wq_ref, bq_ref, wk_ref, bk_ref, wv_ref, bv_ref, wo_ref, o_ref = refs[4:]
    else:
        q_ref, k_ref, v_ref = refs[:3]
        wq_ref, bq_ref, wk_ref, bk_ref, wv_ref, bv_ref, wo_ref, o_ref = refs[3:]
        m_ref = None

    f32, bf16 = jnp.float32, jnp.bfloat16
    bb = batch_block
    n_q = q_ref.shape[1]
    n_kv = k_ref.shape[1]
    dim_p = q_ref.shape[2]          # lane-padded model dim (multiple of 128)
    inner = heads * dim_head

    # ---- Fused, lane-dense QKV projections: flatten (bb, n) -> sublane axis and do
    # one (bb*n, dim_p) x (dim_p, inner) matmul each; bf16 operands, f32 accumulate.
    q2 = q_ref[...].reshape(bb * n_q, dim_p).astype(bf16)
    k2 = k_ref[...].reshape(bb * n_kv, dim_p).astype(bf16)
    v2 = v_ref[...].reshape(bb * n_kv, dim_p).astype(bf16)

    qs = jnp.dot(q2, wq_ref[...].astype(bf16), preferred_element_type=f32) + bq_ref[...]
    ks = jnp.dot(k2, wk_ref[...].astype(bf16), preferred_element_type=f32) + bk_ref[...]
    vs = jnp.dot(v2, wv_ref[...].astype(bf16), preferred_element_type=f32) + bv_ref[...]

    # Fold the softmax scale into Q once (single VPU pass instead of per-head scaling).
    qs = qs * scale

    qs3 = qs.reshape(bb, n_q, inner)
    ks3 = ks.reshape(bb, n_kv, inner)
    vs3 = vs.reshape(bb, n_kv, inner)

    ctx_rows = []
    for b in range(bb):                      # static, small batch block
        m_b = m_ref[b] if m_ref is not None else None    # (heads, n_q, n_kv) int8

        if head_mode == "einshape":
            # One relayout per tensor: (n, heads*dh) -> (heads, n, dh).
            qh = pltpu.einshape('n(hd)->hnd', qs3[b], h=heads).astype(bf16)
            kh = pltpu.einshape('n(hd)->hnd', ks3[b], h=heads).astype(bf16)
            vh = pltpu.einshape('n(hd)->hnd', vs3[b], h=heads).astype(bf16)

            dots = jnp.einsum('hqd,hkd->hqk', qh, kh,
                              preferred_element_type=f32)          # (heads, n_q, n_kv)
            if m_b is not None:
                dots = jnp.where(m_b != 0, _MASK_VALUE, dots)

            dots = dots - jnp.max(dots, axis=-1, keepdims=True)
            e = jnp.exp(dots)
            attn = e * pl.reciprocal(jnp.sum(e, axis=-1, keepdims=True), approx=True)

            ctx = jnp.einsum('hqk,hkd->hqd', attn.astype(bf16), vh,
                             preferred_element_type=f32)           # (heads, n_q, dh)
            ctx_rows.append(pltpu.einshape('hnd->n(hd)', ctx))     # (n_q, inner) f32
        else:
            # Fallback path (known-good lowering): per-head lane slices, but still one
            # fused out-projection via a lane concat of the per-head contexts.
            head_ctx = []
            for h in range(heads):
                sl = slice(h * dim_head, (h + 1) * dim_head)
                qh = qs3[b][:, sl].astype(bf16)
                kh = ks3[b][:, sl].astype(bf16)
                vh = vs3[b][:, sl].astype(bf16)
                dots = lax.dot_general(qh, kh, (((1,), (1,)), ((), ())),
                                       preferred_element_type=f32)  # (n_q, n_kv)
                if m_b is not None:
                    dots = jnp.where(m_b[h] != 0, _MASK_VALUE, dots)
                dots = dots - jnp.max(dots, axis=-1, keepdims=True)
                e = jnp.exp(dots)
                attn = e * pl.reciprocal(jnp.sum(e, axis=-1, keepdims=True), approx=True)
                head_ctx.append(jnp.dot(attn.astype(bf16), vh,
                                        preferred_element_type=f32))
            ctx_rows.append(jnp.concatenate(head_ctx, axis=-1))     # (n_q, inner) f32

    ctx = ctx_rows[0] if bb == 1 else jnp.concatenate(ctx_rows, axis=0)  # (bb*n_q, inner)

    # Single K=inner output projection (one MXU pass instead of 8 tiny K=64 matmuls).
    out = jnp.dot(ctx.astype(bf16), wo_ref[...].astype(bf16),
                  preferred_element_type=f32)                       # (bb*n_q, dim_p)
    o_ref[...] = out.reshape(bb, n_q, dim_p).astype(o_ref.dtype)


# ------------------------------ wrapper ---------------------------------------

def attention_forward(q, k, v, params, attn_mask=None, heads=8, batch_block=None):
    """Forward of the PyTorch `Attention` module (eval semantics).

    q: (B, n_q, dim); k, v: (B, n_kv, dim).
    params: wq/wk/wv: (dim, inner), bq/bk/bv: (inner,), wo: (inner, dim)
            (weights stored pre-transposed, i.e. `linear.weight.T`).
    attn_mask: optional bool (B, heads, n_q, n_kv); True means masked (masked_fill_).
    """
    B, n_q, dim = q.shape
    _, n_kv, _ = k.shape
    inner = params["wq"].shape[1]
    assert inner % heads == 0
    dim_head = inner // heads
    scale = float(dim_head) ** -0.5

    # Lane-pad the model dim to a multiple of 128: q/k/v loads and the output store
    # become unmasked (lane-dense); zero rows/cols leave the math unchanged.
    dim_p = ((dim + 127) // 128) * 128
    pad = dim_p - dim
    wq, wk, wv, wo = params["wq"], params["wk"], params["wv"], params["wo"]
    if pad:
        zpad3 = ((0, 0), (0, 0), (0, pad))
        q = jnp.pad(q, zpad3)
        k = jnp.pad(k, zpad3)
        v = jnp.pad(v, zpad3)
        wq = jnp.pad(wq, ((0, pad), (0, 0)))
        wk = jnp.pad(wk, ((0, pad), (0, 0)))
        wv = jnp.pad(wv, ((0, pad), (0, 0)))
        wo = jnp.pad(wo, ((0, 0), (0, pad)))

    bq = params["bq"].reshape(1, inner).astype(jnp.float32)
    bk = params["bk"].reshape(1, inner).astype(jnp.float32)
    bv = params["bv"].reshape(1, inner).astype(jnp.float32)

    bb = B if batch_block is None else batch_block
    assert B % bb == 0
    nb = B // bb                      # usually 1: whole batch in a single grid step

    data_inputs = [q, k, v]
    data_specs = [
        pl.BlockSpec((bb, n_q, dim_p), lambda i: (i, 0, 0)),
        pl.BlockSpec((bb, n_kv, dim_p), lambda i: (i, 0, 0)),
        pl.BlockSpec((bb, n_kv, dim_p), lambda i: (i, 0, 0)),
    ]
    has_mask = attn_mask is not None
    if has_mask:
        assert attn_mask.shape == (B, heads, n_q, n_kv)
        data_inputs.append(attn_mask.astype(jnp.int8))     # int8: 4x less DMA than f32
        data_specs.append(pl.BlockSpec((bb, heads, n_q, n_kv), lambda i: (i, 0, 0, 0)))

    weight_inputs = [wq, bq, wk, bk, wv, bv, wo]
    weight_specs = [
        pl.BlockSpec((dim_p, inner), lambda i: (0, 0)),
        pl.BlockSpec((1, inner), lambda i: (0, 0)),
        pl.BlockSpec((dim_p, inner), lambda i: (0, 0)),
        pl.BlockSpec((1, inner), lambda i: (0, 0)),
        pl.BlockSpec((dim_p, inner), lambda i: (0, 0)),
        pl.BlockSpec((1, inner), lambda i: (0, 0)),
        pl.BlockSpec((inner, dim_p), lambda i: (0, 0)),
    ]

    def run(head_mode):
        kernel = functools.partial(
            _fused_attention_kernel, heads=heads, dim_head=dim_head, scale=scale,
            has_mask=has_mask, batch_block=bb, head_mode=head_mode)
        return pl.pallas_call(
            kernel,
            out_shape=jax.ShapeDtypeStruct((B, n_q, dim_p), q.dtype),
            grid_spec=pltpu.PrefetchScalarGridSpec(
                num_scalar_prefetch=0,
                grid=(nb,),
                in_specs=data_specs + weight_specs,
                out_specs=pl.BlockSpec((bb, n_q, dim_p), lambda i: (i, 0, 0)),
            ),
            compiler_params=pltpu.CompilerParams(
                dimension_semantics=("parallel",)),
        )(*data_inputs, *weight_inputs)

    try:
        out_p = run("einshape")       # preferred: one relayout per tensor, no lane slices
    except Exception:                 # pragma: no cover - einshape lowering unavailable
        out_p = run("slice")          # known-good fallback path

    return out_p[..., :dim] if pad else out_p


# ------------------------- pure-JAX reference --------------------------------

def _ref_forward(q, k, v, p, heads, attn_mask=None):
    inner = p["wq"].shape[1]
    dh = inner // heads
    scale = dh ** -0.5
    qs = q @ p["wq"] + p["bq"]
    ks = k @ p["wk"] + p["bk"]
    vs = v @ p["wv"] + p["bv"]

    def split(t):
        b, n, _ = t.shape
        return t.reshape(b, n, heads, dh).transpose(0, 2, 1, 3)       # b h n d

    qh, kh, vh = split(qs), split(ks), split(vs)
    dots = jnp.einsum("bhqd,bhkd->bhqk", qh, kh) * scale
    if attn_mask is not None:
        dots = jnp.where(attn_mask, _MASK_VALUE, dots)
    attn = jax.nn.softmax(dots, axis=-1)
    out = jnp.einsum("bhqk,bhkd->bhqd", attn, vh)
    b, _, n, _ = out.shape
    out = out.transpose(0, 2, 1, 3).reshape(b, n, inner)
    return out @ p["wo"]


# ---------------------------------- main --------------------------------------

if __name__ == "__main__":
    key = jax.random.PRNGKey(0)
    B, N, DIM, HEADS, DH = 2, 8, 32, 8, 64       # module defaults: heads=8, dim_head=64
    INNER = HEADS * DH

    keys = jax.random.split(key, 12)

    def rnd(kk, shape, s=0.1):
        return s * jax.random.normal(kk, shape, jnp.float32)

    params = dict(
        wq=rnd(keys[0], (DIM, INNER)), bq=rnd(keys[1], (INNER,)),
        wk=rnd(keys[2], (DIM, INNER)), bk=rnd(keys[3], (INNER,)),
        wv=rnd(keys[4], (DIM, INNER)), bv=rnd(keys[5], (INNER,)),
        wo=rnd(keys[6], (INNER, DIM)),
    )

    q = jax.random.normal(keys[7], (B, N, DIM), jnp.float32)
    k = jax.random.normal(keys[8], (B, N, DIM), jnp.float32)
    v = jax.random.normal(keys[9], (B, N, DIM), jnp.float32)

    # 1) default path (attn_mask=None).  bf16 MXU operands -> tolerance ~1e-2 level.
    out = jax.block_until_ready(attention_forward(q, k, v, params, heads=HEADS))
    ref = _ref_forward(q, k, v, params, HEADS)
    assert out.shape == (B, N, DIM)
    np.testing.assert_allclose(np.asarray(out), np.asarray(ref), atol=3e-2, rtol=3e-2)

    # 2) masked path (causal boolean mask, True = masked, like masked_fill_)
    causal = jnp.triu(jnp.ones((N, N), dtype=bool), k=1)
    mask = jnp.broadcast_to(causal, (B, HEADS, N, N))
    out_m = jax.block_until_ready(
        attention_forward(q, k, v, params, attn_mask=mask, heads=HEADS))
    ref_m = _ref_forward(q, k, v, params, HEADS, attn_mask=mask)
    np.testing.assert_allclose(np.asarray(out_m), np.asarray(ref_m), atol=3e-2, rtol=3e-2)

    print("KERNEL_OK")
</pallas_src>

<mosaic_0001>
module attributes {stable_mosaic.version = 11 : i64} {
  func.func @_fused_attention_kernel(%arg0: i32, %arg1: memref<2x8x128xf32, #tpu.memory_space<vmem>>, %arg2: memref<2x8x128xf32, #tpu.memory_space<vmem>>, %arg3: memref<2x8x128xf32, #tpu.memory_space<vmem>>, %arg4: memref<128x512xf32, #tpu.memory_space<vmem>>, %arg5: memref<1x512xf32, #tpu.memory_space<vmem>>, %arg6: memref<128x512xf32, #tpu.memory_space<vmem>>, %arg7: memref<1x512xf32, #tpu.memory_space<vmem>>, %arg8: memref<128x512xf32, #tpu.memory_space<vmem>>, %arg9: memref<1x512xf32, #tpu.memory_space<vmem>>, %arg10: memref<512x128xf32, #tpu.memory_space<vmem>>, %arg11: memref<2x8x128xf32, #tpu.memory_space<vmem>>) attributes {dimension_semantics = [#tpu.dimension_semantics<parallel>], iteration_bounds = array<i64: 1>, scalar_prefetch = 0 : i64, scratch_operands = 0 : i64, tpu.core_type = #tpu.core_type<tc>, window_params = [{transform_indices = @transform_0, window_bounds = array<i64: 2, 8, 128>}, {transform_indices = @transform_1, window_bounds = array<i64: 2, 8, 128>}, {transform_indices = @transform_2, window_bounds = array<i64: 2, 8, 128>}, {pipeline_mode = #tpu.pipeline_mode<synchronous>, transform_indices = @transform_3, window_bounds = array<i64: 128, 512>}, {pipeline_mode = #tpu.pipeline_mode<synchronous>, transform_indices = @transform_4, window_bounds = array<i64: 1, 512>}, {pipeline_mode = #tpu.pipeline_mode<synchronous>, transform_indices = @transform_5, window_bounds = array<i64: 128, 512>}, {pipeline_mode = #tpu.pipeline_mode<synchronous>, transform_indices = @transform_6, window_bounds = array<i64: 1, 512>}, {pipeline_mode = #tpu.pipeline_mode<synchronous>, transform_indices = @transform_7, window_bounds = array<i64: 128, 512>}, {pipeline_mode = #tpu.pipeline_mode<synchronous>, transform_indices = @transform_8, window_bounds = array<i64: 1, 512>}, {pipeline_mode = #tpu.pipeline_mode<synchronous>, transform_indices = @transform_9, window_bounds = array<i64: 512, 128>}, {transform_indices = @transform_10, window_bounds = array<i64: 2, 8, 128>}]} {
    %c0 = arith.constant 0 : index
    %c0_0 = arith.constant 0 : index
    %c0_1 = arith.constant 0 : index
    %0 = vector.load %arg1[%c0, %c0_0, %c0_1] : memref<2x8x128xf32, #tpu.memory_space<vmem>>, vector<2x8x128xf32>
    %1 = vector.shape_cast %0 : vector<2x8x128xf32> to vector<16x128xf32>
    %2 = arith.truncf %1 : vector<16x128xf32> to vector<16x128xbf16>
    %c0_2 = arith.constant 0 : index
    %c0_3 = arith.constant 0 : index
    %c0_4 = arith.constant 0 : index
    %3 = vector.load %arg2[%c0_2, %c0_3, %c0_4] : memref<2x8x128xf32, #tpu.memory_space<vmem>>, vector<2x8x128xf32>
    %4 = vector.shape_cast %3 : vector<2x8x128xf32> to vector<16x128xf32>
    %5 = arith.truncf %4 : vector<16x128xf32> to vector<16x128xbf16>
    %c0_5 = arith.constant 0 : index
    %c0_6 = arith.constant 0 : index
    %c0_7 = arith.constant 0 : index
    %6 = vector.load %arg3[%c0_5, %c0_6, %c0_7] : memref<2x8x128xf32, #tpu.memory_space<vmem>>, vector<2x8x128xf32>
    %7 = vector.shape_cast %6 : vector<2x8x128xf32> to vector<16x128xf32>
    %8 = arith.truncf %7 : vector<16x128xf32> to vector<16x128xbf16>
    %c0_8 = arith.constant 0 : index
    %c0_9 = arith.constant 0 : index
    %9 = vector.load %arg4[%c0_8, %c0_9] : memref<128x512xf32, #tpu.memory_space<vmem>>, vector<128x512xf32>
    %10 = arith.truncf %9 : vector<128x512xf32> to vector<128x512xbf16>
    %cst = arith.constant dense<0.000000e+00> : vector<16x512xf32>
    %11 = tpu.matmul %2, %10, %cst {dimension_numbers = #tpu.dot_dimension_numbers<[1], [0], [0], [1], [0, 0, 1, 1], [], []>} : vector<16x128xbf16>, vector<128x512xbf16>, vector<16x512xf32> -> vector<16x512xf32>
    %c0_10 = arith.constant 0 : index
    %c0_11 = arith.constant 0 : index
    %12 = vector.load %arg5[%c0_10, %c0_11] : memref<1x512xf32, #tpu.memory_space<vmem>>, vector<1x512xf32>
    %13 = vector.broadcast %12 : vector<1x512xf32> to vector<16x512xf32>
    %14 = arith.addf %11, %13 : vector<16x512xf32>
    %c0_12 = arith.constant 0 : index
    %c0_13 = arith.constant 0 : index
    %15 = vector.load %arg6[%c0_12, %c0_13] : memref<128x512xf32, #tpu.memory_space<vmem>>, vector<128x512xf32>
    %16 = arith.truncf %15 : vector<128x512xf32> to vector<128x512xbf16>
    %cst_14 = arith.constant dense<0.000000e+00> : vector<16x512xf32>
    %17 = tpu.matmul %5, %16, %cst_14 {dimension_numbers = #tpu.dot_dimension_numbers<[1], [0], [0], [1], [0, 0, 1, 1], [], []>} : vector<16x128xbf16>, vector<128x512xbf16>, vector<16x512xf32> -> vector<16x512xf32>
    %c0_15 = arith.constant 0 : index
    %c0_16 = arith.constant 0 : index
    %18 = vector.load %arg7[%c0_15, %c0_16] : memref<1x512xf32, #tpu.memory_space<vmem>>, vector<1x512xf32>
    %19 = vector.broadcast %18 : vector<1x512xf32> to vector<16x512xf32>
    %20 = arith.addf %17, %19 : vector<16x512xf32>
    %c0_17 = arith.constant 0 : index
    %c0_18 = arith.constant 0 : index
    %21 = vector.load %arg8[%c0_17, %c0_18] : memref<128x512xf32, #tpu.memory_space<vmem>>, vector<128x512xf32>
    %22 = arith.truncf %21 : vector<128x512xf32> to vector<128x512xbf16>
    %cst_19 = arith.constant dense<0.000000e+00> : vector<16x512xf32>
    %23 = tpu.matmul %8, %22, %cst_19 {dimension_numbers = #tpu.dot_dimension_numbers<[1], [0], [0], [1], [0, 0, 1, 1], [], []>} : vector<16x128xbf16>, vector<128x512xbf16>, vector<16x512xf32> -> vector<16x512xf32>
    %c0_20 = arith.constant 0 : index
    %c0_21 = arith.constant 0 : index
    %24 = vector.load %arg9[%c0_20, %c0_21] : memref<1x512xf32, #tpu.memory_space<vmem>>, vector<1x512xf32>
    %25 = vector.broadcast %24 : vector<1x512xf32> to vector<16x512xf32>
    %26 = arith.addf %23, %25 : vector<16x512xf32>
    %cst_22 = arith.constant 1.250000e-01 : f32
    %27 = vector.broadcast %cst_22 : f32 to vector<16x512xf32>
    %28 = arith.mulf %14, %27 : vector<16x512xf32>
    %29 = vector.shape_cast %28 : vector<16x512xf32> to vector<2x8x512xf32>
    %30 = vector.shape_cast %20 : vector<16x512xf32> to vector<2x8x512xf32>
    %31 = vector.shape_cast %26 : vector<16x512xf32> to vector<2x8x512xf32>
    %32 = vector.extract_strided_slice %29 {offsets = [0, 0, 0], sizes = [1, 8, 512], strides = [1, 1, 1]} : vector<2x8x512xf32> to vector<1x8x512xf32>
    %33 = vector.shape_cast %32 : vector<1x8x512xf32> to vector<8x512xf32>
    %34 = vector.extract_strided_slice %33 {offsets = [0, 0], sizes = [8, 64], strides = [1, 1]} : vector<8x512xf32> to vector<8x64xf32>
    %35 = arith.truncf %34 : vector<8x64xf32> to vector<8x64xbf16>
    %36 = vector.extract_strided_slice %30 {offsets = [0, 0, 0], sizes = [1, 8, 512], strides = [1, 1, 1]} : vector<2x8x512xf32> to vector<1x8x512xf32>
    %37 = vector.shape_cast %36 : vector<1x8x512xf32> to vector<8x512xf32>
    %38 = vector.extract_strided_slice %37 {offsets = [0, 0], sizes = [8, 64], strides = [1, 1]} : vector<8x512xf32> to vector<8x64xf32>
    %39 = arith.truncf %38 : vector<8x64xf32> to vector<8x64xbf16>
    %40 = vector.extract_strided_slice %31 {offsets = [0, 0, 0], sizes = [1, 8, 512], strides = [1, 1, 1]} : vector<2x8x512xf32> to vector<1x8x512xf32>
    %41 = vector.shape_cast %40 : vector<1x8x512xf32> to vector<8x512xf32>
    %42 = vector.extract_strided_slice %41 {offsets = [0, 0], sizes = [8, 64], strides = [1, 1]} : vector<8x512xf32> to vector<8x64xf32>
    %43 = arith.truncf %42 : vector<8x64xf32> to vector<8x64xbf16>
    %cst_23 = arith.constant dense<0.000000e+00> : vector<8x8xf32>
    %44 = tpu.matmul %35, %39, %cst_23 {dimension_numbers = #tpu.dot_dimension_numbers<[1], [1], [0], [0], [0, 0, 1, 0], [], []>} : vector<8x64xbf16>, vector<8x64xbf16>, vector<8x8xf32> -> vector<8x8xf32>
    %cst_24 = arith.constant dense<0xFF800000> : vector<8xf32>
    %45 = vector.multi_reduction <maximumf>, %44, %cst_24 [1] : vector<8x8xf32> to vector<8xf32>
    %46 = vector.shape_cast %45 : vector<8xf32> to vector<8x1xf32>
    %47 = vector.broadcast %46 : vector<8x1xf32> to vector<8x8xf32>
    %48 = arith.subf %44, %47 : vector<8x8xf32>
    %49 = math.exp %48 : vector<8x8xf32>
    %cst_25 = arith.constant dense<0.000000e+00> : vector<8xf32>
    %50 = vector.multi_reduction <add>, %49, %cst_25 [1] : vector<8x8xf32> to vector<8xf32>
    %51 = vector.shape_cast %50 : vector<8xf32> to vector<8x1xf32>
    %52 = tpu.reciprocal %51 {approx = true} : vector<8x1xf32> -> vector<8x1xf32>
    %53 = vector.broadcast %52 : vector<8x1xf32> to vector<8x8xf32>
    %54 = arith.mulf %49, %53 : vector<8x8xf32>
    %55 = arith.truncf %54 : vector<8x8xf32> to vector<8x8xbf16>
    %cst_26 = arith.constant dense<0.000000e+00> : vector<8x64xf32>
    %56 = tpu.matmul %55, %43, %cst_26 {dimension_numbers = #tpu.dot_dimension_numbers<[1], [0], [0], [1], [0, 0, 1, 1], [], []>} : vector<8x8xbf16>, vector<8x64xbf16>, vector<8x64xf32> -> vector<8x64xf32>
    %57 = vector.extract_strided_slice %29 {offsets = [0, 0, 0], sizes = [1, 8, 512], strides = [1, 1, 1]} : vector<2x8x512xf32> to vector<1x8x512xf32>
    %58 = vector.shape_cast %57 : vector<1x8x512xf32> to vector<8x512xf32>
    %59 = vector.extract_strided_slice %58 {offsets = [0, 64], sizes = [8, 64], strides = [1, 1]} : vector<8x512xf32> to vector<8x64xf32>
    %60 = arith.truncf %59 : vector<8x64xf32> to vector<8x64xbf16>
    %61 = vector.extract_strided_slice %30 {offsets = [0, 0, 0], sizes = [1, 8, 512], strides = [1, 1, 1]} : vector<2x8x512xf32> to vector<1x8x512xf32>
    %62 = vector.shape_cast %61 : vector<1x8x512xf32> to vector<8x512xf32>
    %63 = vector.extract_strided_slice %62 {offsets = [0, 64], sizes = [8, 64], strides = [1, 1]} : vector<8x512xf32> to vector<8x64xf32>
    %64 = arith.truncf %63 : vector<8x64xf32> to vector<8x64xbf16>
    %65 = vector.extract_strided_slice %31 {offsets = [0, 0, 0], sizes = [1, 8, 512], strides = [1, 1, 1]} : vector<2x8x512xf32> to vector<1x8x512xf32>
    %66 = vector.shape_cast %65 : vector<1x8x512xf32> to vector<8x512xf32>
    %67 = vector.extract_strided_slice %66 {offsets = [0, 64], sizes = [8, 64], strides = [1, 1]} : vector<8x512xf32> to vector<8x64xf32>
    %68 = arith.truncf %67 : vector<8x64xf32> to vector<8x64xbf16>
    %cst_27 = arith.constant dense<0.000000e+00> : vector<8x8xf32>
    %69 = tpu.matmul %60, %64, %cst_27 {dimension_numbers = #tpu.dot_dimension_numbers<[1], [1], [0], [0], [0, 0, 1, 0], [], []>} : vector<8x64xbf16>, vector<8x64xbf16>, vector<8x8xf32> -> vector<8x8xf32>
    %cst_28 = arith.constant dense<0xFF800000> : vector<8xf32>
    %70 = vector.multi_reduction <maximumf>, %69, %cst_28 [1] : vector<8x8xf32> to vector<8xf32>
    %71 = vector.shape_cast %70 : vector<8xf32> to vector<8x1xf32>
    %72 = vector.broadcast %71 : vector<8x1xf32> to vector<8x8xf32>
    %73 = arith.subf %69, %72 : vector<8x8xf32>
    %74 = math.exp %73 : vector<8x8xf32>
    %cst_29 = arith.constant dense<0.000000e+00> : vector<8xf32>
    %75 = vector.multi_reduction <add>, %74, %cst_29 [1] : vector<8x8xf32> to vector<8xf32>
    %76 = vector.shape_cast %75 : vector<8xf32> to vector<8x1xf32>
    %77 = tpu.reciprocal %76 {approx = true} : vector<8x1xf32> -> vector<8x1xf32>
    %78 = vector.broadcast %77 : vector<8x1xf32> to vector<8x8xf32>
    %79 = arith.mulf %74, %78 : vector<8x8xf32>
    %80 = arith.truncf %79 : vector<8x8xf32> to vector<8x8xbf16>
    %cst_30 = arith.constant dense<0.000000e+00> : vector<8x64xf32>
    %81 = tpu.matmul %80, %68, %cst_30 {dimension_numbers = #tpu.dot_dimension_numbers<[1], [0], [0], [1], [0, 0, 1, 1], [], []>} : vector<8x8xbf16>, vector<8x64xbf16>, vector<8x64xf32> -> vector<8x64xf32>
    %82 = vector.extract_strided_slice %29 {offsets = [0, 0, 0], sizes = [1, 8, 512], strides = [1, 1, 1]} : vector<2x8x512xf32> to vector<1x8x512xf32>
    %83 = vector.shape_cast %82 : vector<1x8x512xf32> to vector<8x512xf32>
    %84 = vector.extract_strided_slice %83 {offsets = [0, 128], sizes = [8, 64], strides = [1, 1]} : vector<8x512xf32> to vector<8x64xf32>
    %85 = arith.truncf %84 : vector<8x64xf32> to vector<8x64xbf16>
    %86 = vector.extract_strided_slice %30 {offsets = [0, 0, 0], sizes = [1, 8, 512], strides = [1, 1, 1]} : vector<2x8x512xf32> to vector<1x8x512xf32>
    %87 = vector.shape_cast %86 : vector<1x8x512xf32> to vector<8x512xf32>
    %88 = vector.extract_strided_slice %87 {offsets = [0, 128], sizes = [8, 64], strides = [1, 1]} : vector<8x512xf32> to vector<8x64xf32>
    %89 = arith.truncf %88 : vector<8x64xf32> to vector<8x64xbf16>
    %90 = vector.extract_strided_slice %31 {offsets = [0, 0, 0], sizes = [1, 8, 512], strides = [1, 1, 1]} : vector<2x8x512xf32> to vector<1x8x512xf32>
    %91 = vector.shape_cast %90 : vector<1x8x512xf32> to vector<8x512xf32>
    %92 = vector.extract_strided_slice %91 {offsets = [0, 128], sizes = [8, 64], strides = [1, 1]} : vector<8x512xf32> to vector<8x64xf32>
    %93 = arith.truncf %92 : vector<8x64xf32> to vector<8x64xbf16>
    %cst_31 = arith.constant dense<0.000000e+00> : vector<8x8xf32>
    %94 = tpu.matmul %85, %89, %cst_31 {dimension_numbers = #tpu.dot_dimension_numbers<[1], [1], [0], [0], [0, 0, 1, 0], [], []>} : vector<8x64xbf16>, vector<8x64xbf16>, vector<8x8xf32> -> vector<8x8xf32>
    %cst_32 = arith.constant dense<0xFF800000> : vector<8xf32>
    %95 = vector.multi_reduction <maximumf>, %94, %cst_32 [1] : vector<8x8xf32> to vector<8xf32>
    %96 = vector.shape_cast %95 : vector<8xf32> to vector<8x1xf32>
    %97 = vector.broadcast %96 : vector<8x1xf32> to vector<8x8xf32>
    %98 = arith.subf %94, %97 : vector<8x8xf32>
    %99 = math.exp %98 : vector<8x8xf32>
    %cst_33 = arith.constant dense<0.000000e+00> : vector<8xf32>
    %100 = vector.multi_reduction <add>, %99, %cst_33 [1] : vector<8x8xf32> to vector<8xf32>
    %101 = vector.shape_cast %100 : vector<8xf32> to vector<8x1xf32>
    %102 = tpu.reciprocal %101 {approx = true} : vector<8x1xf32> -> vector<8x1xf32>
    %103 = vector.broadcast %102 : vector<8x1xf32> to vector<8x8xf32>
    %104 = arith.mulf %99, %103 : vector<8x8xf32>
    %105 = arith.truncf %104 : vector<8x8xf32> to vector<8x8xbf16>
    %cst_34 = arith.constant dense<0.000000e+00> : vector<8x64xf32>
    %106 = tpu.matmul %105, %93, %cst_34 {dimension_numbers = #tpu.dot_dimension_numbers<[1], [0], [0], [1], [0, 0, 1, 1], [], []>} : vector<8x8xbf16>, vector<8x64xbf16>, vector<8x64xf32> -> vector<8x64xf32>
    %107 = vector.extract_strided_slice %29 {offsets = [0, 0, 0], sizes = [1, 8, 512], strides = [1, 1, 1]} : vector<2x8x512xf32> to vector<1x8x512xf32>
    %108 = vector.shape_cast %107 : vector<1x8x512xf32> to vector<8x512xf32>
    %109 = vector.extract_strided_slice %108 {offsets = [0, 192], sizes = [8, 64], strides = [1, 1]} : vector<8x512xf32> to vector<8x64xf32>
    %110 = arith.truncf %109 : vector<8x64xf32> to vector<8x64xbf16>
    %111 = vector.extract_strided_slice %30 {offsets = [0, 0, 0], sizes = [1, 8, 512], strides = [1, 1, 1]} : vector<2x8x512xf32> to vector<1x8x512xf32>
    %112 = vector.shape_cast %111 : vector<1x8x512xf32> to vector<8x512xf32>
    %113 = vector.extract_strided_slice %112 {offsets = [0, 192], sizes = [8, 64], strides = [1, 1]} : vector<8x512xf32> to vector<8x64xf32>
    %114 = arith.truncf %113 : vector<8x64xf32> to vector<8x64xbf16>
    %115 = vector.extract_strided_slice %31 {offsets = [0, 0, 0], sizes = [1, 8, 512], strides = [1, 1, 1]} : vector<2x8x512xf32> to vector<1x8x512xf32>
    %116 = vector.shape_cast %115 : vector<1x8x512xf32> to vector<8x512xf32>
    %117 = vector.extract_strided_slice %116 {offsets = [0, 192], sizes = [8, 64], strides = [1, 1]} : vector<8x512xf32> to vector<8x64xf32>
    %118 = arith.truncf %117 : vector<8x64xf32> to vector<8x64xbf16>
    %cst_35 = arith.constant dense<0.000000e+00> : vector<8x8xf32>
    %119 = tpu.matmul %110, %114, %cst_35 {dimension_numbers = #tpu.dot_dimension_numbers<[1], [1], [0], [0], [0, 0, 1, 0], [], []>} : vector<8x64xbf16>, vector<8x64xbf16>, vector<8x8xf32> -> vector<8x8xf32>
    %cst_36 = arith.constant dense<0xFF800000> : vector<8xf32>
    %120 = vector.multi_reduction <maximumf>, %119, %cst_36 [1] : vector<8x8xf32> to vector<8xf32>
    %121 = vector.shape_cast %120 : vector<8xf32> to vector<8x1xf32>
    %122 = vector.broadcast %121 : vector<8x1xf32> to vector<8x8xf32>
    %123 = arith.subf %119, %122 : vector<8x8xf32>
    %124 = math.exp %123 : vector<8x8xf32>
    %cst_37 = arith.constant dense<0.000000e+00> : vector<8xf32>
    %125 = vector.multi_reduction <add>, %124, %cst_37 [1] : vector<8x8xf32> to vector<8xf32>
    %126 = vector.shape_cast %125 : vector<8xf32> to vector<8x1xf32>
    %127 = tpu.reciprocal %126 {approx = true} : vector<8x1xf32> -> vector<8x1xf32>
    %128 = vector.broadcast %127 : vector<8x1xf32> to vector<8x8xf32>
    %129 = arith.mulf %124, %128 : vector<8x8xf32>
    %130 = arith.truncf %129 : vector<8x8xf32> to vector<8x8xbf16>
    %cst_38 = arith.constant dense<0.000000e+00> : vector<8x64xf32>
    %131 = tpu.matmul %130, %118, %cst_38 {dimension_numbers = #tpu.dot_dimension_numbers<[1], [0], [0], [1], [0, 0, 1, 1], [], []>} : vector<8x8xbf16>, vector<8x64xbf16>, vector<8x64xf32> -> vector<8x64xf32>
    %132 = vector.extract_strided_slice %29 {offsets = [0, 0, 0], sizes = [1, 8, 512], strides = [1, 1, 1]} : vector<2x8x512xf32> to vector<1x8x512xf32>
    %133 = vector.shape_cast %132 : vector<1x8x512xf32> to vector<8x512xf32>
    %134 = vector.extract_strided_slice %133 {offsets = [0, 256], sizes = [8, 64], strides = [1, 1]} : vector<8x512xf32> to vector<8x64xf32>
    %135 = arith.truncf %134 : vector<8x64xf32> to vector<8x64xbf16>
    %136 = vector.extract_strided_slice %30 {offsets = [0, 0, 0], sizes = [1, 8, 512], strides = [1, 1, 1]} : vector<2x8x512xf32> to vector<1x8x512xf32>
    %137 = vector.shape_cast %136 : vector<1x8x512xf32> to vector<8x512xf32>
    %138 = vector.extract_strided_slice %137 {offsets = [0, 256], sizes = [8, 64], strides = [1, 1]} : vector<8x512xf32> to vector<8x64xf32>
    %139 = arith.truncf %138 : vector<8x64xf32> to vector<8x64xbf16>
    %140 = vector.extract_strided_slice %31 {offsets = [0, 0, 0], sizes = [1, 8, 512], strides = [1, 1, 1]} : vector<2x8x512xf32> to vector<1x8x512xf32>
    %141 = vector.shape_cast %140 : vector<1x8x512xf32> to vector<8x512xf32>
    %142 = vector.extract_strided_slice %141 {offsets = [0, 256], sizes = [8, 64], strides = [1, 1]} : vector<8x512xf32> to vector<8x64xf32>
    %143 = arith.truncf %142 : vector<8x64xf32> to vector<8x64xbf16>
    %cst_39 = arith.constant dense<0.000000e+00> : vector<8x8xf32>
    %144 = tpu.matmul %135, %139, %cst_39 {dimension_numbers = #tpu.dot_dimension_numbers<[1], [1], [0], [0], [0, 0, 1, 0], [], []>} : vector<8x64xbf16>, vector<8x64xbf16>, vector<8x8xf32> -> vector<8x8xf32>
    %cst_40 = arith.constant dense<0xFF800000> : vector<8xf32>
    %145 = vector.multi_reduction <maximumf>, %144, %cst_40 [1] : vector<8x8xf32> to vector<8xf32>
    %146 = vector.shape_cast %145 : vector<8xf32> to vector<8x1xf32>
    %147 = vector.broadcast %146 : vector<8x1xf32> to vector<8x8xf32>
    %148 = arith.subf %144, %147 : vector<8x8xf32>
    %149 = math.exp %148 : vector<8x8xf32>
    %cst_41 = arith.constant dense<0.000000e+00> : vector<8xf32>
    %150 = vector.multi_reduction <add>, %149, %cst_41 [1] : vector<8x8xf32> to vector<8xf32>
    %151 = vector.shape_cast %150 : vector<8xf32> to vector<8x1xf32>
    %152 = tpu.reciprocal %151 {approx = true} : vector<8x1xf32> -> vector<8x1xf32>
    %153 = vector.broadcast %152 : vector<8x1xf32> to vector<8x8xf32>
    %154 = arith.mulf %149, %153 : vector<8x8xf32>
    %155 = arith.truncf %154 : vector<8x8xf32> to vector<8x8xbf16>
    %cst_42 = arith.constant dense<0.000000e+00> : vector<8x64xf32>
    %156 = tpu.matmul %155, %143, %cst_42 {dimension_numbers = #tpu.dot_dimension_numbers<[1], [0], [0], [1], [0, 0, 1, 1], [], []>} : vector<8x8xbf16>, vector<8x64xbf16>, vector<8x64xf32> -> vector<8x64xf32>
    %157 = vector.extract_strided_slice %29 {offsets = [0, 0, 0], sizes = [1, 8, 512], strides = [1, 1, 1]} : vector<2x8x512xf32> to vector<1x8x512xf32>
    %158 = vector.shape_cast %157 : vector<1x8x512xf32> to vector<8x512xf32>
    %159 = vector.extract_strided_slice %158 {offsets = [0, 320], sizes = [8, 64], strides = [1, 1]} : vector<8x512xf32> to vector<8x64xf32>
    %160 = arith.truncf %159 : vector<8x64xf32> to vector<8x64xbf16>
    %161 = vector.extract_strided_slice %30 {offsets = [0, 0, 0], sizes = [1, 8, 512], strides = [1, 1, 1]} : vector<2x8x512xf32> to vector<1x8x512xf32>
    %162 = vector.shape_cast %161 : vector<1x8x512xf32> to vector<8x512xf32>
    %163 = vector.extract_strided_slice %162 {offsets = [0, 320], sizes = [8, 64], strides = [1, 1]} : vector<8x512xf32> to vector<8x64xf32>
    %164 = arith.truncf %163 : vector<8x64xf32> to vector<8x64xbf16>
    %165 = vector.extract_strided_slice %31 {offsets = [0, 0, 0], sizes = [1, 8, 512], strides = [1, 1, 1]} : vector<2x8x512xf32> to vector<1x8x512xf32>
    %166 = vector.shape_cast %165 : vector<1x8x512xf32> to vector<8x512xf32>
    %167 = vector.extract_strided_slice %166 {offsets = [0, 320], sizes = [8, 64], strides = [1, 1]} : vector<8x512xf32> to vector<8x64xf32>
    %168 = arith.truncf %167 : vector<8x64xf32> to vector<8x64xbf16>
    %cst_43 = arith.constant dense<0.000000e+00> : vector<8x8xf32>
    %169 = tpu.matmul %160, %164, %cst_43 {dimension_numbers = #tpu.dot_dimension_numbers<[1], [1], [0], [0], [0, 0, 1, 0], [], []>} : vector<8x64xbf16>, vector<8x64xbf16>, vector<8x8xf32> -> vector<8x8xf32>
    %cst_44 = arith.constant dense<0xFF800000> : vector<8xf32>
    %170 = vector.multi_reduction <maximumf>, %169, %cst_44 [1] : vector<8x8xf32> to vector<8xf32>
    %171 = vector.shape_cast %170 : vector<8xf32> to vector<8x1xf32>
    %172 = vector.broadcast %171 : vector<8x1xf32> to vector<8x8xf32>
    %173 = arith.subf %169, %172 : vector<8x8xf32>
    %174 = math.exp %173 : vector<8x8xf32>
    %cst_45 = arith.constant dense<0.000000e+00> : vector<8xf32>
    %175 = vector.multi_reduction <add>, %174, %cst_45 [1] : vector<8x8xf32> to vector<8xf32>
    %176 = vector.shape_cast %175 : vector<8xf32> to vector<8x1xf32>
    %177 = tpu.reciprocal %176 {approx = true} : vector<8x1xf32> -> vector<8x1xf32>
    %178 = vector.broadcast %177 : vector<8x1xf32> to vector<8x8xf32>
    %179 = arith.mulf %174, %178 : vector<8x8xf32>
    %180 = arith.truncf %179 : vector<8x8xf32> to vector<8x8xbf16>
    %cst_46 = arith.constant dense<0.000000e+00> : vector<8x64xf32>
    %181 = tpu.matmul %180, %168, %cst_46 {dimension_numbers = #tpu.dot_dimension_numbers<[1], [0], [0], [1], [0, 0, 1, 1], [], []>} : vector<8x8xbf16>, vector<8x64xbf16>, vector<8x64xf32> -> vector<8x64xf32>
    %182 = vector.extract_strided_slice %29 {offsets = [0, 0, 0], sizes = [1, 8, 512], strides = [1, 1, 1]} : vector<2x8x512xf32> to vector<1x8x512xf32>
    %183 = vector.shape_cast %182 : vector<1x8x512xf32> to vector<8x512xf32>
    %184 = vector.extract_strided_slice %183 {offsets = [0, 384], sizes = [8, 64], strides = [1, 1]} : vector<8x512xf32> to vector<8x64xf32>
    %185 = arith.truncf %184 : vector<8x64xf32> to vector<8x64xbf16>
    %186 = vector.extract_strided_slice %30 {offsets = [0, 0, 0], sizes = [1, 8, 512], strides = [1, 1, 1]} : vector<2x8x512xf32> to vector<1x8x512xf32>
    %187 = vector.shape_cast %186 : vector<1x8x512xf32> to vector<8x512xf32>
    %188 = vector.extract_strided_slice %187 {offsets = [0, 384], sizes = [8, 64], strides = [1, 1]} : vector<8x512xf32> to vector<8x64xf32>
    %189 = arith.truncf %188 : vector<8x64xf32> to vector<8x64xbf16>
    %190 = vector.extract_strided_slice %31 {offsets = [0, 0, 0], sizes = [1, 8, 512], strides = [1, 1, 1]} : vector<2x8x512xf32> to vector<1x8x512xf32>
    %191 = vector.shape_cast %190 : vector<1x8x512xf32> to vector<8x512xf32>
    %192 = vector.extract_strided_slice %191 {offsets = [0, 384], sizes = [8, 64], strides = [1, 1]} : vector<8x512xf32> to vector<8x64xf32>
    %193 = arith.truncf %192 : vector<8x64xf32> to vector<8x64xbf16>
    %cst_47 = arith.constant dense<0.000000e+00> : vector<8x8xf32>
    %194 = tpu.matmul %185, %189, %cst_47 {dimension_numbers = #tpu.dot_dimension_numbers<[1], [1], [0], [0], [0, 0, 1, 0], [], []>} : vector<8x64xbf16>, vector<8x64xbf16>, vector<8x8xf32> -> vector<8x8xf32>
    %cst_48 = arith.constant dense<0xFF800000> : vector<8xf32>
    %195 = vector.multi_reduction <maximumf>, %194, %cst_48 [1] : vector<8x8xf32> to vector<8xf32>
    %196 = vector.shape_cast %195 : vector<8xf32> to vector<8x1xf32>
    %197 = vector.broadcast %196 : vector<8x1xf32> to vector<8x8xf32>
    %198 = arith.subf %194, %197 : vector<8x8xf32>
    %199 = math.exp %198 : vector<8x8xf32>
    %cst_49 = arith.constant dense<0.000000e+00> : vector<8xf32>
    %200 = vector.multi_reduction <add>, %199, %cst_49 [1] : vector<8x8xf32> to vector<8xf32>
    %201 = vector.shape_cast %200 : vector<8xf32> to vector<8x1xf32>
    %202 = tpu.reciprocal %201 {approx = true} : vector<8x1xf32> -> vector<8x1xf32>
    %203 = vector.broadcast %202 : vector<8x1xf32> to vector<8x8xf32>
    %204 = arith.mulf %199, %203 : vector<8x8xf32>
    %205 = arith.truncf %204 : vector<8x8xf32> to vector<8x8xbf16>
    %cst_50 = arith.constant dense<0.000000e+00> : vector<8x64xf32>
    %206 = tpu.matmul %205, %193, %cst_50 {dimension_numbers = #tpu.dot_dimension_numbers<[1], [0], [0], [1], [0, 0, 1, 1], [], []>} : vector<8x8xbf16>, vector<8x64xbf16>, vector<8x64xf32> -> vector<8x64xf32>
    %207 = vector.extract_strided_slice %29 {offsets = [0, 0, 0], sizes = [1, 8, 512], strides = [1, 1, 1]} : vector<2x8x512xf32> to vector<1x8x512xf32>
    %208 = vector.shape_cast %207 : vector<1x8x512xf32> to vector<8x512xf32>
    %209 = vector.extract_strided_slice %208 {offsets = [0, 448], sizes = [8, 64], strides = [1, 1]} : vector<8x512xf32> to vector<8x64xf32>
    %210 = arith.truncf %209 : vector<8x64xf32> to vector<8x64xbf16>
    %211 = vector.extract_strided_slice %30 {offsets = [0, 0, 0], sizes = [1, 8, 512], strides = [1, 1, 1]} : vector<2x8x512xf32> to vector<1x8x512xf32>
    %212 = vector.shape_cast %211 : vector<1x8x512xf32> to vector<8x512xf32>
    %213 = vector.extract_strided_slice %212 {offsets = [0, 448], sizes = [8, 64], strides = [1, 1]} : vector<8x512xf32> to vector<8x64xf32>
    %214 = arith.truncf %213 : vector<8x64xf32> to vector<8x64xbf16>
    %215 = vector.extract_strided_slice %31 {offsets = [0, 0, 0], sizes = [1, 8, 512], strides = [1, 1, 1]} : vector<2x8x512xf32> to vector<1x8x512xf32>
    %216 = vector.shape_cast %215 : vector<1x8x512xf32> to vector<8x512xf32>
    %217 = vector.extract_strided_slice %216 {offsets = [0, 448], sizes = [8, 64], strides = [1, 1]} : vector<8x512xf32> to vector<8x64xf32>
    %218 = arith.truncf %217 : vector<8x64xf32> to vector<8x64xbf16>
    %cst_51 = arith.constant dense<0.000000e+00> : vector<8x8xf32>
    %219 = tpu.matmul %210, %214, %cst_51 {dimension_numbers = #tpu.dot_dimension_numbers<[1], [1], [0], [0], [0, 0, 1, 0], [], []>} : vector<8x64xbf16>, vector<8x64xbf16>, vector<8x8xf32> -> vector<8x8xf32>
    %cst_52 = arith.constant dense<0xFF800000> : vector<8xf32>
    %220 = vector.multi_reduction <maximumf>, %219, %cst_52 [1] : vector<8x8xf32> to vector<8xf32>
    %221 = vector.shape_cast %220 : vector<8xf32> to vector<8x1xf32>
    %222 = vector.broadcast %221 : vector<8x1xf32> to vector<8x8xf32>
    %223 = arith.subf %219, %222 : vector<8x8xf32>
    %224 = math.exp %223 : vector<8x8xf32>
    %cst_53 = arith.constant dense<0.000000e+00> : vector<8xf32>
    %225 = vector.multi_reduction <add>, %224, %cst_53 [1] : vector<8x8xf32> to vector<8xf32>
    %226 = vector.shape_cast %225 : vector<8xf32> to vector<8x1xf32>
    %227 = tpu.reciprocal %226 {approx = true} : vector<8x1xf32> -> vector<8x1xf32>
    %228 = vector.broadcast %227 : vector<8x1xf32> to vector<8x8xf32>
    %229 = arith.mulf %224, %228 : vector<8x8xf32>
    %230 = arith.truncf %229 : vector<8x8xf32> to vector<8x8xbf16>
    %cst_54 = arith.constant dense<0.000000e+00> : vector<8x64xf32>
    %231 = tpu.matmul %230, %218, %cst_54 {dimension_numbers = #tpu.dot_dimension_numbers<[1], [0], [0], [1], [0, 0, 1, 1], [], []>} : vector<8x8xbf16>, vector<8x64xbf16>, vector<8x64xf32> -> vector<8x64xf32>
    %232 = tpu.concatenate %56, %81, %106, %131, %156, %181, %206, %231 in 1 : vector<8x64xf32>, vector<8x64xf32>, vector<8x64xf32>, vector<8x64xf32>, vector<8x64xf32>, vector<8x64xf32>, vector<8x64xf32>, vector<8x64xf32> -> vector<8x512xf32>
    %233 = vector.extract_strided_slice %29 {offsets = [1, 0, 0], sizes = [1, 8, 512], strides = [1, 1, 1]} : vector<2x8x512xf32> to vector<1x8x512xf32>
    %234 = vector.shape_cast %233 : vector<1x8x512xf32> to vector<8x512xf32>
    %235 = vector.extract_strided_slice %234 {offsets = [0, 0], sizes = [8, 64], strides = [1, 1]} : vector<8x512xf32> to vector<8x64xf32>
    %236 = arith.truncf %235 : vector<8x64xf32> to vector<8x64xbf16>
    %237 = vector.extract_strided_slice %30 {offsets = [1, 0, 0], sizes = [1, 8, 512], strides = [1, 1, 1]} : vector<2x8x512xf32> to vector<1x8x512xf32>
    %238 = vector.shape_cast %237 : vector<1x8x512xf32> to vector<8x512xf32>
    %239 = vector.extract_strided_slice %238 {offsets = [0, 0], sizes = [8, 64], strides = [1, 1]} : vector<8x512xf32> to vector<8x64xf32>
    %240 = arith.truncf %239 : vector<8x64xf32> to vector<8x64xbf16>
    %241 = vector.extract_strided_slice %31 {offsets = [1, 0, 0], sizes = [1, 8, 512], strides = [1, 1, 1]} : vector<2x8x512xf32> to vector<1x8x512xf32>
    %242 = vector.shape_cast %241 : vector<1x8x512xf32> to vector<8x512xf32>
    %243 = vector.extract_strided_slice %242 {offsets = [0, 0], sizes = [8, 64], strides = [1, 1]} : vector<8x512xf32> to vector<8x64xf32>
    %244 = arith.truncf %243 : vector<8x64xf32> to vector<8x64xbf16>
    %cst_55 = arith.constant dense<0.000000e+00> : vector<8x8xf32>
    %245 = tpu.matmul %236, %240, %cst_55 {dimension_numbers = #tpu.dot_dimension_numbers<[1], [1], [0], [0], [0, 0, 1, 0], [], []>} : vector<8x64xbf16>, vector<8x64xbf16>, vector<8x8xf32> -> vector<8x8xf32>
    %cst_56 = arith.constant dense<0xFF800000> : vector<8xf32>
    %246 = vector.multi_reduction <maximumf>, %245, %cst_56 [1] : vector<8x8xf32> to vector<8xf32>
    %247 = vector.shape_cast %246 : vector<8xf32> to vector<8x1xf32>
    %248 = vector.broadcast %247 : vector<8x1xf32> to vector<8x8xf32>
    %249 = arith.subf %245, %248 : vector<8x8xf32>
    %250 = math.exp %249 : vector<8x8xf32>
    %cst_57 = arith.constant dense<0.000000e+00> : vector<8xf32>
    %251 = vector.multi_reduction <add>, %250, %cst_57 [1] : vector<8x8xf32> to vector<8xf32>
    %252 = vector.shape_cast %251 : vector<8xf32> to vector<8x1xf32>
    %253 = tpu.reciprocal %252 {approx = true} : vector<8x1xf32> -> vector<8x1xf32>
    %254 = vector.broadcast %253 : vector<8x1xf32> to vector<8x8xf32>
    %255 = arith.mulf %250, %254 : vector<8x8xf32>
    %256 = arith.truncf %255 : vector<8x8xf32> to vector<8x8xbf16>
    %cst_58 = arith.constant dense<0.000000e+00> : vector<8x64xf32>
    %257 = tpu.matmul %256, %244, %cst_58 {dimension_numbers = #tpu.dot_dimension_numbers<[1], [0], [0], [1], [0, 0, 1, 1], [], []>} : vector<8x8xbf16>, vector<8x64xbf16>, vector<8x64xf32> -> vector<8x64xf32>
    %258 = vector.extract_strided_slice %29 {offsets = [1, 0, 0], sizes = [1, 8, 512], strides = [1, 1, 1]} : vector<2x8x512xf32> to vector<1x8x512xf32>
    %259 = vector.shape_cast %258 : vector<1x8x512xf32> to vector<8x512xf32>
    %260 = vector.extract_strided_slice %259 {offsets = [0, 64], sizes = [8, 64], strides = [1, 1]} : vector<8x512xf32> to vector<8x64xf32>
    %261 = arith.truncf %260 : vector<8x64xf32> to vector<8x64xbf16>
    %262 = vector.extract_strided_slice %30 {offsets = [1, 0, 0], sizes = [1, 8, 512], strides = [1, 1, 1]} : vector<2x8x512xf32> to vector<1x8x512xf32>
    %263 = vector.shape_cast %262 : vector<1x8x512xf32> to vector<8x512xf32>
    %264 = vector.extract_strided_slice %263 {offsets = [0, 64], sizes = [8, 64], strides = [1, 1]} : vector<8x512xf32> to vector<8x64xf32>
    %265 = arith.truncf %264 : vector<8x64xf32> to vector<8x64xbf16>
    %266 = vector.extract_strided_slice %31 {offsets = [1, 0, 0], sizes = [1, 8, 512], strides = [1, 1, 1]} : vector<2x8x512xf32> to vector<1x8x512xf32>
    %267 = vector.shape_cast %266 : vector<1x8x512xf32> to vector<8x512xf32>
    %268 = vector.extract_strided_slice %267 {offsets = [0, 64], sizes = [8, 64], strides = [1, 1]} : vector<8x512xf32> to vector<8x64xf32>
    %269 = arith.truncf %268 : vector<8x64xf32> to vector<8x64xbf16>
    %cst_59 = arith.constant dense<0.000000e+00> : vector<8x8xf32>
    %270 = tpu.matmul %261, %265, %cst_59 {dimension_numbers = #tpu.dot_dimension_numbers<[1], [1], [0], [0], [0, 0, 1, 0], [], []>} : vector<8x64xbf16>, vector<8x64xbf16>, vector<8x8xf32> -> vector<8x8xf32>
    %cst_60 = arith.constant dense<0xFF800000> : vector<8xf32>
    %271 = vector.multi_reduction <maximumf>, %270, %cst_60 [1] : vector<8x8xf32> to vector<8xf32>
    %272 = vector.shape_cast %271 : vector<8xf32> to vector<8x1xf32>
    %273 = vector.broadcast %272 : vector<8x1xf32> to vector<8x8xf32>
    %274 = arith.subf %270, %273 : vector<8x8xf32>
    %275 = math.exp %274 : vector<8x8xf32>
    %cst_61 = arith.constant dense<0.000000e+00> : vector<8xf32>
    %276 = vector.multi_reduction <add>, %275, %cst_61 [1] : vector<8x8xf32> to vector<8xf32>
    %277 = vector.shape_cast %276 : vector<8xf32> to vector<8x1xf32>
    %278 = tpu.reciprocal %277 {approx = true} : vector<8x1xf32> -> vector<8x1xf32>
    %279 = vector.broadcast %278 : vector<8x1xf32> to vector<8x8xf32>
    %280 = arith.mulf %275, %279 : vector<8x8xf32>
    %281 = arith.truncf %280 : vector<8x8xf32> to vector<8x8xbf16>
    %cst_62 = arith.constant dense<0.000000e+00> : vector<8x64xf32>
    %282 = tpu.matmul %281, %269, %cst_62 {dimension_numbers = #tpu.dot_dimension_numbers<[1], [0], [0], [1], [0, 0, 1, 1], [], []>} : vector<8x8xbf16>, vector<8x64xbf16>, vector<8x64xf32> -> vector<8x64xf32>
    %283 = vector.extract_strided_slice %29 {offsets = [1, 0, 0], sizes = [1, 8, 512], strides = [1, 1, 1]} : vector<2x8x512xf32> to vector<1x8x512xf32>
    %284 = vector.shape_cast %283 : vector<1x8x512xf32> to vector<8x512xf32>
    %285 = vector.extract_strided_slice %284 {offsets = [0, 128], sizes = [8, 64], strides = [1, 1]} : vector<8x512xf32> to vector<8x64xf32>
    %286 = arith.truncf %285 : vector<8x64xf32> to vector<8x64xbf16>
    %287 = vector.extract_strided_slice %30 {offsets = [1, 0, 0], sizes = [1, 8, 512], strides = [1, 1, 1]} : vector<2x8x512xf32> to vector<1x8x512xf32>
    %288 = vector.shape_cast %287 : vector<1x8x512xf32> to vector<8x512xf32>
    %289 = vector.extract_strided_slice %288 {offsets = [0, 128], sizes = [8, 64], strides = [1, 1]} : vector<8x512xf32> to vector<8x64xf32>
    %290 = arith.truncf %289 : vector<8x64xf32> to vector<8x64xbf16>
    %291 = vector.extract_strided_slice %31 {offsets = [1, 0, 0], sizes = [1, 8, 512], strides = [1, 1, 1]} : vector<2x8x512xf32> to vector<1x8x512xf32>
    %292 = vector.shape_cast %291 : vector<1x8x512xf32> to vector<8x512xf32>
    %293 = vector.extract_strided_slice %292 {offsets = [0, 128], sizes = [8, 64], strides = [1, 1]} : vector<8x512xf32> to vector<8x64xf32>
    %294 = arith.truncf %293 : vector<8x64xf32> to vector<8x64xbf16>
    %cst_63 = arith.constant dense<0.000000e+00> : vector<8x8xf32>
    %295 = tpu.matmul %286, %290, %cst_63 {dimension_numbers = #tpu.dot_dimension_numbers<[1], [1], [0], [0], [0, 0, 1, 0], [], []>} : vector<8x64xbf16>, vector<8x64xbf16>, vector<8x8xf32> -> vector<8x8xf32>
    %cst_64 = arith.constant dense<0xFF800000> : vector<8xf32>
    %296 = vector.multi_reduction <maximumf>, %295, %cst_64 [1] : vector<8x8xf32> to vector<8xf32>
    %297 = vector.shape_cast %296 : vector<8xf32> to vector<8x1xf32>
    %298 = vector.broadcast %297 : vector<8x1xf32> to vector<8x8xf32>
    %299 = arith.subf %295, %298 : vector<8x8xf32>
    %300 = math.exp %299 : vector<8x8xf32>
    %cst_65 = arith.constant dense<0.000000e+00> : vector<8xf32>
    %301 = vector.multi_reduction <add>, %300, %cst_65 [1] : vector<8x8xf32> to vector<8xf32>
    %302 = vector.shape_cast %301 : vector<8xf32> to vector<8x1xf32>
    %303 = tpu.reciprocal %302 {approx = true} : vector<8x1xf32> -> vector<8x1xf32>
    %304 = vector.broadcast %303 : vector<8x1xf32> to vector<8x8xf32>
    %305 = arith.mulf %300, %304 : vector<8x8xf32>
    %306 = arith.truncf %305 : vector<8x8xf32> to vector<8x8xbf16>
    %cst_66 = arith.constant dense<0.000000e+00> : vector<8x64xf32>
    %307 = tpu.matmul %306, %294, %cst_66 {dimension_numbers = #tpu.dot_dimension_numbers<[1], [0], [0], [1], [0, 0, 1, 1], [], []>} : vector<8x8xbf16>, vector<8x64xbf16>, vector<8x64xf32> -> vector<8x64xf32>
    %308 = vector.extract_strided_slice %29 {offsets = [1, 0, 0], sizes = [1, 8, 512], strides = [1, 1, 1]} : vector<2x8x512xf32> to vector<1x8x512xf32>
    %309 = vector.shape_cast %308 : vector<1x8x512xf32> to vector<8x512xf32>
    %310 = vector.extract_strided_slice %309 {offsets = [0, 192], sizes = [8, 64], strides = [1, 1]} : vector<8x512xf32> to vector<8x64xf32>
    %311 = arith.truncf %310 : vector<8x64xf32> to vector<8x64xbf16>
    %312 = vector.extract_strided_slice %30 {offsets = [1, 0, 0], sizes = [1, 8, 512], strides = [1, 1, 1]} : vector<2x8x512xf32> to vector<1x8x512xf32>
    %313 = vector.shape_cast %312 : vector<1x8x512xf32> to vector<8x512xf32>
    %314 = vector.extract_strided_slice %313 {offsets = [0, 192], sizes = [8, 64], strides = [1, 1]} : vector<8x512xf32> to vector<8x64xf32>
    %315 = arith.truncf %314 : vector<8x64xf32> to vector<8x64xbf16>
    %316 = vector.extract_strided_slice %31 {offsets = [1, 0, 0], sizes = [1, 8, 512], strides = [1, 1, 1]} : vector<2x8x512xf32> to vector<1x8x512xf32>
    %317 = vector.shape_cast %316 : vector<1x8x512xf32> to vector<8x512xf32>
    %318 = vector.extract_strided_slice %317 {offsets = [0, 192], sizes = [8, 64], strides = [1, 1]} : vector<8x512xf32> to vector<8x64xf32>
    %319 = arith.truncf %318 : vector<8x64xf32> to vector<8x64xbf16>
    %cst_67 = arith.constant dense<0.000000e+00> : vector<8x8xf32>
    %320 = tpu.matmul %311, %315, %cst_67 {dimension_numbers = #tpu.dot_dimension_numbers<[1], [1], [0], [0], [0, 0, 1, 0], [], []>} : vector<8x64xbf16>, vector<8x64xbf16>, vector<8x8xf32> -> vector<8x8xf32>
    %cst_68 = arith.constant dense<0xFF800000> : vector<8xf32>
    %321 = vector.multi_reduction <maximumf>, %320, %cst_68 [1] : vector<8x8xf32> to vector<8xf32>
    %322 = vector.shape_cast %321 : vector<8xf32> to vector<8x1xf32>
    %323 = vector.broadcast %322 : vector<8x1xf32> to vector<8x8xf32>
    %324 = arith.subf %320, %323 : vector<8x8xf32>
    %325 = math.exp %324 : vector<8x8xf32>
    %cst_69 = arith.constant dense<0.000000e+00> : vector<8xf32>
    %326 = vector.multi_reduction <add>, %325, %cst_69 [1] : vector<8x8xf32> to vector<8xf32>
    %327 = vector.shape_cast %326 : vector<8xf32> to vector<8x1xf32>
    %328 = tpu.reciprocal %327 {approx = true} : vector<8x1xf32> -> vector<8x1xf32>
    %329 = vector.broadcast %328 : vector<8x1xf32> to vector<8x8xf32>
    %330 = arith.mulf %325, %329 : vector<8x8xf32>
    %331 = arith.truncf %330 : vector<8x8xf32> to vector<8x8xbf16>
    %cst_70 = arith.constant dense<0.000000e+00> : vector<8x64xf32>
    %332 = tpu.matmul %331, %319, %cst_70 {dimension_numbers = #tpu.dot_dimension_numbers<[1], [0], [0], [1], [0, 0, 1, 1], [], []>} : vector<8x8xbf16>, vector<8x64xbf16>, vector<8x64xf32> -> vector<8x64xf32>
    %333 = vector.extract_strided_slice %29 {offsets = [1, 0, 0], sizes = [1, 8, 512], strides = [1, 1, 1]} : vector<2x8x512xf32> to vector<1x8x512xf32>
    %334 = vector.shape_cast %333 : vector<1x8x512xf32> to vector<8x512xf32>
    %335 = vector.extract_strided_slice %334 {offsets = [0, 256], sizes = [8, 64], strides = [1, 1]} : vector<8x512xf32> to vector<8x64xf32>
    %336 = arith.truncf %335 : vector<8x64xf32> to vector<8x64xbf16>
    %337 = vector.extract_strided_slice %30 {offsets = [1, 0, 0], sizes = [1, 8, 512], strides = [1, 1, 1]} : vector<2x8x512xf32> to vector<1x8x512xf32>
    %338 = vector.shape_cast %337 : vector<1x8x512xf32> to vector<8x512xf32>
    %339 = vector.extract_strided_slice %338 {offsets = [0, 256], sizes = [8, 64], strides = [1, 1]} : vector<8x512xf32> to vector<8x64xf32>
    %340 = arith.truncf %339 : vector<8x64xf32> to vector<8x64xbf16>
    %341 = vector.extract_strided_slice %31 {offsets = [1, 0, 0], sizes = [1, 8, 512], strides = [1, 1, 1]} : vector<2x8x512xf32> to vector<1x8x512xf32>
    %342 = vector.shape_cast %341 : vector<1x8x512xf32> to vector<8x512xf32>
    %343 = vector.extract_strided_slice %342 {offsets = [0, 256], sizes = [8, 64], strides = [1, 1]} : vector<8x512xf32> to vector<8x64xf32>
    %344 = arith.truncf %343 : vector<8x64xf32> to vector<8x64xbf16>
    %cst_71 = arith.constant dense<0.000000e+00> : vector<8x8xf32>
    %345 = tpu.matmul %336, %340, %cst_71 {dimension_numbers = #tpu.dot_dimension_numbers<[1], [1], [0], [0], [0, 0, 1, 0], [], []>} : vector<8x64xbf16>, vector<8x64xbf16>, vector<8x8xf32> -> vector<8x8xf32>
    %cst_72 = arith.constant dense<0xFF800000> : vector<8xf32>
    %346 = vector.multi_reduction <maximumf>, %345, %cst_72 [1] : vector<8x8xf32> to vector<8xf32>
    %347 = vector.shape_cast %346 : vector<8xf32> to vector<8x1xf32>
    %348 = vector.broadcast %347 : vector<8x1xf32> to vector<8x8xf32>
    %349 = arith.subf %345, %348 : vector<8x8xf32>
    %350 = math.exp %349 : vector<8x8xf32>
    %cst_73 = arith.constant dense<0.000000e+00> : vector<8xf32>
    %351 = vector.multi_reduction <add>, %350, %cst_73 [1] : vector<8x8xf32> to vector<8xf32>
    %352 = vector.shape_cast %351 : vector<8xf32> to vector<8x1xf32>
    %353 = tpu.reciprocal %352 {approx = true} : vector<8x1xf32> -> vector<8x1xf32>
    %354 = vector.broadcast %353 : vector<8x1xf32> to vector<8x8xf32>
    %355 = arith.mulf %350, %354 : vector<8x8xf32>
    %356 = arith.truncf %355 : vector<8x8xf32> to vector<8x8xbf16>
    %cst_74 = arith.constant dense<0.000000e+00> : vector<8x64xf32>
    %357 = tpu.matmul %356, %344, %cst_74 {dimension_numbers = #tpu.dot_dimension_numbers<[1], [0], [0], [1], [0, 0, 1, 1], [], []>} : vector<8x8xbf16>, vector<8x64xbf16>, vector<8x64xf32> -> vector<8x64xf32>
    %358 = vector.extract_strided_slice %29 {offsets = [1, 0, 0], sizes = [1, 8, 512], strides = [1, 1, 1]} : vector<2x8x512xf32> to vector<1x8x512xf32>
    %359 = vector.shape_cast %358 : vector<1x8x512xf32> to vector<8x512xf32>
    %360 = vector.extract_strided_slice %359 {offsets = [0, 320], sizes = [8, 64], strides = [1, 1]} : vector<8x512xf32> to vector<8x64xf32>
    %361 = arith.truncf %360 : vector<8x64xf32> to vector<8x64xbf16>
    %362 = vector.extract_strided_slice %30 {offsets = [1, 0, 0], sizes = [1, 8, 512], strides = [1, 1, 1]} : vector<2x8x512xf32> to vector<1x8x512xf32>
    %363 = vector.shape_cast %362 : vector<1x8x512xf32> to vector<8x512xf32>
    %364 = vector.extract_strided_slice %363 {offsets = [0, 320], sizes = [8, 64], strides = [1, 1]} : vector<8x512xf32> to vector<8x64xf32>
    %365 = arith.truncf %364 : vector<8x64xf32> to vector<8x64xbf16>
    %366 = vector.extract_strided_slice %31 {offsets = [1, 0, 0], sizes = [1, 8, 512], strides = [1, 1, 1]} : vector<2x8x512xf32> to vector<1x8x512xf32>
    %367 = vector.shape_cast %366 : vector<1x8x512xf32> to vector<8x512xf32>
    %368 = vector.extract_strided_slice %367 {offsets = [0, 320], sizes = [8, 64], strides = [1, 1]} : vector<8x512xf32> to vector<8x64xf32>
    %369 = arith.truncf %368 : vector<8x64xf32> to vector<8x64xbf16>
    %cst_75 = arith.constant dense<0.000000e+00> : vector<8x8xf32>
    %370 = tpu.matmul %361, %365, %cst_75 {dimension_numbers = #tpu.dot_dimension_numbers<[1], [1], [0], [0], [0, 0, 1, 0], [], []>} : vector<8x64xbf16>, vector<8x64xbf16>, vector<8x8xf32> -> vector<8x8xf32>
    %cst_76 = arith.constant dense<0xFF800000> : vector<8xf32>
    %371 = vector.multi_reduction <maximumf>, %370, %cst_76 [1] : vector<8x8xf32> to vector<8xf32>
    %372 = vector.shape_cast %371 : vector<8xf32> to vector<8x1xf32>
    %373 = vector.broadcast %372 : vector<8x1xf32> to vector<8x8xf32>
    %374 = arith.subf %370, %373 : vector<8x8xf32>
    %375 = math.exp %374 : vector<8x8xf32>
    %cst_77 = arith.constant dense<0.000000e+00> : vector<8xf32>
    %376 = vector.multi_reduction <add>, %375, %cst_77 [1] : vector<8x8xf32> to vector<8xf32>
    %377 = vector.shape_cast %376 : vector<8xf32> to vector<8x1xf32>
    %378 = tpu.reciprocal %377 {approx = true} : vector<8x1xf32> -> vector<8x1xf32>
    %379 = vector.broadcast %378 : vector<8x1xf32> to vector<8x8xf32>
    %380 = arith.mulf %375, %379 : vector<8x8xf32>
    %381 = arith.truncf %380 : vector<8x8xf32> to vector<8x8xbf16>
    %cst_78 = arith.constant dense<0.000000e+00> : vector<8x64xf32>
    %382 = tpu.matmul %381, %369, %cst_78 {dimension_numbers = #tpu.dot_dimension_numbers<[1], [0], [0], [1], [0, 0, 1, 1], [], []>} : vector<8x8xbf16>, vector<8x64xbf16>, vector<8x64xf32> -> vector<8x64xf32>
    %383 = vector.extract_strided_slice %29 {offsets = [1, 0, 0], sizes = [1, 8, 512], strides = [1, 1, 1]} : vector<2x8x512xf32> to vector<1x8x512xf32>
    %384 = vector.shape_cast %383 : vector<1x8x512xf32> to vector<8x512xf32>
    %385 = vector.extract_strided_slice %384 {offsets = [0, 384], sizes = [8, 64], strides = [1, 1]} : vector<8x512xf32> to vector<8x64xf32>
    %386 = arith.truncf %385 : vector<8x64xf32> to vector<8x64xbf16>
    %387 = vector.extract_strided_slice %30 {offsets = [1, 0, 0], sizes = [1, 8, 512], strides = [1, 1, 1]} : vector<2x8x512xf32> to vector<1x8x512xf32>
    %388 = vector.shape_cast %387 : vector<1x8x512xf32> to vector<8x512xf32>
    %389 = vector.extract_strided_slice %388 {offsets = [0, 384], sizes = [8, 64], strides = [1, 1]} : vector<8x512xf32> to vector<8x64xf32>
    %390 = arith.truncf %389 : vector<8x64xf32> to vector<8x64xbf16>
    %391 = vector.extract_strided_slice %31 {offsets = [1, 0, 0], sizes = [1, 8, 512], strides = [1, 1, 1]} : vector<2x8x512xf32> to vector<1x8x512xf32>
    %392 = vector.shape_cast %391 : vector<1x8x512xf32> to vector<8x512xf32>
    %393 = vector.extract_strided_slice %392 {offsets = [0, 384], sizes = [8, 64], strides = [1, 1]} : vector<8x512xf32> to vector<8x64xf32>
    %394 = arith.truncf %393 : vector<8x64xf32> to vector<8x64xbf16>
    %cst_79 = arith.constant dense<0.000000e+00> : vector<8x8xf32>
    %395 = tpu.matmul %386, %390, %cst_79 {dimension_numbers = #tpu.dot_dimension_numbers<[1], [1], [0], [0], [0, 0, 1, 0], [], []>} : vector<8x64xbf16>, vector<8x64xbf16>, vector<8x8xf32> -> vector<8x8xf32>
    %cst_80 = arith.constant dense<0xFF800000> : vector<8xf32>
    %396 = vector.multi_reduction <maximumf>, %395, %cst_80 [1] : vector<8x8xf32> to vector<8xf32>
    %397 = vector.shape_cast %396 : vector<8xf32> to vector<8x1xf32>
    %398 = vector.broadcast %397 : vector<8x1xf32> to vector<8x8xf32>
    %399 = arith.subf %395, %398 : vector<8x8xf32>
    %400 = math.exp %399 : vector<8x8xf32>
    %cst_81 = arith.constant dense<0.000000e+00> : vector<8xf32>
    %401 = vector.multi_reduction <add>, %400, %cst_81 [1] : vector<8x8xf32> to vector<8xf32>
    %402 = vector.shape_cast %401 : vector<8xf32> to vector<8x1xf32>
    %403 = tpu.reciprocal %402 {approx = true} : vector<8x1xf32> -> vector<8x1xf32>
    %404 = vector.broadcast %403 : vector<8x1xf32> to vector<8x8xf32>
    %405 = arith.mulf %400, %404 : vector<8x8xf32>
    %406 = arith.truncf %405 : vector<8x8xf32> to vector<8x8xbf16>
    %cst_82 = arith.constant dense<0.000000e+00> : vector<8x64xf32>
    %407 = tpu.matmul %406, %394, %cst_82 {dimension_numbers = #tpu.dot_dimension_numbers<[1], [0], [0], [1], [0, 0, 1, 1], [], []>} : vector<8x8xbf16>, vector<8x64xbf16>, vector<8x64xf32> -> vector<8x64xf32>
    %408 = vector.extract_strided_slice %29 {offsets = [1, 0, 0], sizes = [1, 8, 512], strides = [1, 1, 1]} : vector<2x8x512xf32> to vector<1x8x512xf32>
    %409 = vector.shape_cast %408 : vector<1x8x512xf32> to vector<8x512xf32>
    %410 = vector.extract_strided_slice %409 {offsets = [0, 448], sizes = [8, 64], strides = [1, 1]} : vector<8x512xf32> to vector<8x64xf32>
    %411 = arith.truncf %410 : vector<8x64xf32> to vector<8x64xbf16>
    %412 = vector.extract_strided_slice %30 {offsets = [1, 0, 0], sizes = [1, 8, 512], strides = [1, 1, 1]} : vector<2x8x512xf32> to vector<1x8x512xf32>
    %413 = vector.shape_cast %412 : vector<1x8x512xf32> to vector<8x512xf32>
    %414 = vector.extract_strided_slice %413 {offsets = [0, 448], sizes = [8, 64], strides = [1, 1]} : vector<8x512xf32> to vector<8x64xf32>
    %415 = arith.truncf %414 : vector<8x64xf32> to vector<8x64xbf16>
    %416 = vector.extract_strided_slice %31 {offsets = [1, 0, 0], sizes = [1, 8, 512], strides = [1, 1, 1]} : vector<2x8x512xf32> to vector<1x8x512xf32>
    %417 = vector.shape_cast %416 : vector<1x8x512xf32> to vector<8x512xf32>
    %418 = vector.extract_strided_slice %417 {offsets = [0, 448], sizes = [8, 64], strides = [1, 1]} : vector<8x512xf32> to vector<8x64xf32>
    %419 = arith.truncf %418 : vector<8x64xf32> to vector<8x64xbf16>
    %cst_83 = arith.constant dense<0.000000e+00> : vector<8x8xf32>
    %420 = tpu.matmul %411, %415, %cst_83 {dimension_numbers = #tpu.dot_dimension_numbers<[1], [1], [0], [0], [0, 0, 1, 0], [], []>} : vector<8x64xbf16>, vector<8x64xbf16>, vector<8x8xf32> -> vector<8x8xf32>
    %cst_84 = arith.constant dense<0xFF800000> : vector<8xf32>
    %421 = vector.multi_reduction <maximumf>, %420, %cst_84 [1] : vector<8x8xf32> to vector<8xf32>
    %422 = vector.shape_cast %421 : vector<8xf32> to vector<8x1xf32>
    %423 = vector.broadcast %422 : vector<8x1xf32> to vector<8x8xf32>
    %424 = arith.subf %420, %423 : vector<8x8xf32>
    %425 = math.exp %424 : vector<8x8xf32>
    %cst_85 = arith.constant dense<0.000000e+00> : vector<8xf32>
    %426 = vector.multi_reduction <add>, %425, %cst_85 [1] : vector<8x8xf32> to vector<8xf32>
    %427 = vector.shape_cast %426 : vector<8xf32> to vector<8x1xf32>
    %428 = tpu.reciprocal %427 {approx = true} : vector<8x1xf32> -> vector<8x1xf32>
    %429 = vector.broadcast %428 : vector<8x1xf32> to vector<8x8xf32>
    %430 = arith.mulf %425, %429 : vector<8x8xf32>
    %431 = arith.truncf %430 : vector<8x8xf32> to vector<8x8xbf16>
    %cst_86 = arith.constant dense<0.000000e+00> : vector<8x64xf32>
    %432 = tpu.matmul %431, %419, %cst_86 {dimension_numbers = #tpu.dot_dimension_numbers<[1], [0], [0], [1], [0, 0, 1, 1], [], []>} : vector<8x8xbf16>, vector<8x64xbf16>, vector<8x64xf32> -> vector<8x64xf32>
    %433 = tpu.concatenate %257, %282, %307, %332, %357, %382, %407, %432 in 1 : vector<8x64xf32>, vector<8x64xf32>, vector<8x64xf32>, vector<8x64xf32>, vector<8x64xf32>, vector<8x64xf32>, vector<8x64xf32>, vector<8x64xf32> -> vector<8x512xf32>
    %434 = tpu.concatenate %232, %433 in 0 : vector<8x512xf32>, vector<8x512xf32> -> vector<16x512xf32>
    %435 = arith.truncf %434 : vector<16x512xf32> to vector<16x512xbf16>
    %c0_87 = arith.constant 0 : index
    %c0_88 = arith.constant 0 : index
    %436 = vector.load %arg10[%c0_87, %c0_88] : memref<512x128xf32, #tpu.memory_space<vmem>>, vector<512x128xf32>
    %437 = arith.truncf %436 : vector<512x128xf32> to vector<512x128xbf16>
    %cst_89 = arith.constant dense<0.000000e+00> : vector<16x128xf32>
    %438 = tpu.matmul %435, %437, %cst_89 {dimension_numbers = #tpu.dot_dimension_numbers<[1], [0], [0], [1], [0, 0, 1, 1], [], []>} : vector<16x512xbf16>, vector<512x128xbf16>, vector<16x128xf32> -> vector<16x128xf32>
    %439 = vector.shape_cast %438 : vector<16x128xf32> to vector<2x8x128xf32>
    %c0_90 = arith.constant 0 : index
    %c0_91 = arith.constant 0 : index
    %c0_92 = arith.constant 0 : index
    %440 = vector.load %arg11[%c0_90, %c0_91, %c0_92] : memref<2x8x128xf32, #tpu.memory_space<vmem>>, vector<2x8x128xf32>
    tpu.vector_store %arg11[%c0_90, %c0_91, %c0_92], %439 {strides = array<i32>} : memref<2x8x128xf32, #tpu.memory_space<vmem>>, vector<2x8x128xf32>,
    return
  }
  func.func @transform_0(%arg0: i32) -> (i32, i32, i32) {
    %c0_i32 = arith.constant 0 : i32
    %c0_i32_0 = arith.constant 0 : i32
    %c0_i32_1 = arith.constant 0 : i32
    return %arg0, %c0_i32, %c0_i32_0 : i32, i32, i32
  }
  func.func @transform_1(%arg0: i32) -> (i32, i32, i32) {
    %c0_i32 = arith.constant 0 : i32
    %c0_i32_0 = arith.constant 0 : i32
    %c0_i32_1 = arith.constant 0 : i32
    return %arg0, %c0_i32, %c0_i32_0 : i32, i32, i32
  }
  func.func @transform_2(%arg0: i32) -> (i32, i32, i32) {
    %c0_i32 = arith.constant 0 : i32
    %c0_i32_0 = arith.constant 0 : i32
    %c0_i32_1 = arith.constant 0 : i32
    return %arg0, %c0_i32, %c0_i32_0 : i32, i32, i32
  }
  func.func @transform_3(%arg0: i32) -> (i32, i32) {
    %c0_i32 = arith.constant 0 : i32
    %c0_i32_0 = arith.constant 0 : i32
    %c0_i32_1 = arith.constant 0 : i32
    return %c0_i32, %c0_i32_0 : i32, i32
  }
  func.func @transform_4(%arg0: i32) -> (i32, i32) {
    %c0_i32 = arith.constant 0 : i32
    %c0_i32_0 = arith.constant 0 : i32
    %c0_i32_1 = arith.constant 0 : i32
    return %c0_i32, %c0_i32_0 : i32, i32
  }
  func.func @transform_5(%arg0: i32) -> (i32, i32) {
    %c0_i32 = arith.constant 0 : i32
    %c0_i32_0 = arith.constant 0 : i32
    %c0_i32_1 = arith.constant 0 : i32
    return %c0_i32, %c0_i32_0 : i32, i32
  }
  func.func @transform_6(%arg0: i32) -> (i32, i32) {
    %c0_i32 = arith.constant 0 : i32
    %c0_i32_0 = arith.constant 0 : i32
    %c0_i32_1 = arith.constant 0 : i32
    return %c0_i32, %c0_i32_0 : i32, i32
  }
  func.func @transform_7(%arg0: i32) -> (i32, i32) {
    %c0_i32 = arith.constant 0 : i32
    %c0_i32_0 = arith.constant 0 : i32
    %c0_i32_1 = arith.constant 0 : i32
    return %c0_i32, %c0_i32_0 : i32, i32
  }
  func.func @transform_8(%arg0: i32) -> (i32, i32) {
    %c0_i32 = arith.constant 0 : i32
    %c0_i32_0 = arith.constant 0 : i32
    %c0_i32_1 = arith.constant 0 : i32
    return %c0_i32, %c0_i32_0 : i32, i32
  }
  func.func @transform_9(%arg0: i32) -> (i32, i32) {
    %c0_i32 = arith.constant 0 : i32
    %c0_i32_0 = arith.constant 0 : i32
    %c0_i32_1 = arith.constant 0 : i32
    return %c0_i32, %c0_i32_0 : i32, i32
  }
  func.func @transform_10(%arg0: i32) -> (i32, i32, i32) {
    %c0_i32 = arith.constant 0 : i32
    %c0_i32_0 = arith.constant 0 : i32
    %c0_i32_1 = arith.constant 0 : i32
    return %arg0, %c0_i32, %c0_i32_0 : i32, i32, i32
  }
}

</mosaic_0001>

<bundles_post_ra>
// kernel: tpu_custom_call.1
= control target key start
LH: loop header
LB: loop body
LE: loop exit
PB: predicated region body
PF: predicated region fallthrough
CT: control target
= control target key end

     0   :  { %15 = vsyncpa [#allocation3], 0  ;;  %s4019_s0 = inlined_call_operand.hbm [shape: f32[2,8,128], index: 0, kind: input, shape index: {}]   ;;  %s4020_s1 = inlined_call_operand.hbm [shape: f32[2,8,128], index: 1, kind: input, shape index: {}]   ;;  %s4021_s2 = inlined_call_operand.hbm [shape: f32[2,8,128], index: 2, kind: input, shape index: {}]   ;;  %s4022_s3 = inlined_call_operand.hbm [shape: f32[128,512], index: 3, kind: input, shape index: {}]   ;;  %s4023_s4 = inlined_call_operand.vmem [shape: f32[1,512], index: 4, kind: input, shape index: {}]   ;;  %s4024_s5 = inlined_call_operand.hbm [shape: f32[128,512], index: 5, kind: input, shape index: {}]   ;;  %s4025_s6 = inlined_call_operand.vmem [shape: f32[1,512], index: 6, kind: input, shape index: {}]   ;;  %s4026_s7 = inlined_call_operand.hbm [shape: f32[128,512], index: 7, kind: input, shape index: {}]   ;;  %s4027_s8 = inlined_call_operand.vmem [shape: f32[1,512], index: 8, kind: input, shape index: {}]   ;;  %s4028_s9 = inlined_call_operand.hbm [shape: f32[512,128], index: 9, kind: input, shape index: {}]   ;;  %s4029_s10 = inlined_call_operand.hbm [shape: f32[2,8,128], index: 10, kind: output, shape index: {}]  }
   0x1   :  { %16 = vsyncpa [#allocation6], 0 }
   0x2   :  { %17 = vsyncpa [#allocation9], 0 }
   0x3   :  { %18 = vsyncpa [#allocation12], 0 }
   0x4   :  { %19 = vsyncpa [#allocation4], 0  ;;  %s3370_s13 = smov [#allocation5]   ;;  %s3371_s15 = smov [#allocation8]  }
   0x5   :  { %s37_s14 = sshll.u32 %s3370_s13, 4  ;;  %s61_s16 = sshll.u32 %s3371_s15, 4  ;;  %s38_s14 = int_to_ptr.vmem [resolvable:$true] %s37_s14  ;;  %s62_s16 = int_to_ptr.vmem [resolvable:$true] %s61_s16 }
   0x6   :  { %s3208_s17 = scalar_lea.vmem %s38_s14, 256  ;;  %p3213_p1 = scmp.lt.s32.totalorder %s38_s14, %s38_s14 }
   0x7   :  { %p3209_p0 = scmp.ne.s32.totalorder %s38_s14, %s3208_s17  ;;  %p3214_p2 = scmp.lt.s32.totalorder %s3208_s17, %s3208_s17 }
   0x9   :  { %p3215_p3 = por %p3214_p2, %p3213_p1 }
   0xb   :  { %p3216_p4 = pnand %p3215_p3, %p3209_p0 }
   0xd   :  { %3219 = shalt.err (!%p3216_p4)
}
   0xe   :  { %s3372_s18 = smov 128   ;;  %s3373_s19 = smov 8  }
   0xf   :  { %43 = dma.hbm_to_vmem [thread:$0]  %s4020_s1, 256, %s38_s14, [#allocation6], %s3372_s18, %s3372_s18, %s3373_s19  }
  0x10   :  { %s3228_s22 = scalar_lea.vmem %s62_s16, 8192  ;;  %p3233_p6 = scmp.lt.s32.totalorder %s62_s16, %s62_s16 }
  0x11   :  { %p3229_p5 = scmp.ne.s32.totalorder %s62_s16, %s3228_s22  ;;  %p3234_p7 = scmp.lt.s32.totalorder %s3228_s22, %s3228_s22 }
  0x13   :  { %p3235_p8 = por %p3234_p7, %p3233_p6 }
  0x15   :  { %p3236_p9 = pnand %p3235_p8, %p3229_p5 }
  0x17   :  { %3239 = shalt.err (!%p3236_p9)
}
  0x18   :  { %s3374_s23 = smov 512   ;;  %s3375_s24 = smov 32  }
  0x19   :  { %67 = dma.hbm_to_vmem [thread:$0]  %s4022_s3, 8192, %s62_s16, [#allocation9], %s3374_s23, %s3374_s23, %s3375_s24  }
  0x1a   :  { %s3376_s27 = smov [#allocation11]   ;;  %s3377_s29 = smov [#allocation2]  }
  0x1b   :  { %s89_s28 = sshll.u32 %s3376_s27, 4  ;;  %s25_s1 = sshll.u32 %s3377_s29, 4  ;;  %s90_s28 = int_to_ptr.vmem [resolvable:$true] %s89_s28  ;;  %s26_s1 = int_to_ptr.vmem [resolvable:$true] %s25_s1 }
  0x1c   :  { %s3248_s30 = scalar_lea.vmem %s90_s28, 8192  ;;  %p3253_p11 = scmp.lt.s32.totalorder %s90_s28, %s90_s28 }
  0x1d   :  { %p3249_p10 = scmp.ne.s32.totalorder %s90_s28, %s3248_s30  ;;  %p3254_p12 = scmp.lt.s32.totalorder %s3248_s30, %s3248_s30 }
  0x1f   :  { %p3255_p13 = por %p3254_p12, %p3253_p11 }
  0x21   :  { %p3256_p0 = pnand %p3255_p13, %p3249_p10 }
  0x23   :  { %3259 = shalt.err (!%p3256_p0)
}
  0x24   :  { %95 = dma.hbm_to_vmem [thread:$0]  %s4026_s7, 8192, %s90_s28, [#allocation12], %s3374_s23, %s3374_s23, %s3375_s24  }
  0x25   :  { %s3268_s3 = scalar_lea.vmem %s26_s1, 256  ;;  %p3273_p2 = scmp.lt.s32.totalorder %s26_s1, %s26_s1 }
  0x26   :  { %p3269_p1 = scmp.ne.s32.totalorder %s26_s1, %s3268_s3  ;;  %p3274_p3 = scmp.lt.s32.totalorder %s3268_s3, %s3268_s3 }
  0x28   :  { %p3275_p4 = por %p3274_p3, %p3273_p2 }
  0x2a   :  { %p3276_p5 = pnand %p3275_p4, %p3269_p1 }
  0x2c   :  { %3279 = shalt.err (!%p3276_p5)
}
  0x2d   :  { %31 = dma.hbm_to_vmem [thread:$0]  %s4019_s0, 256, %s26_s1, [#allocation3], %s3372_s18, %s3372_s18, %s3373_s19  }
  0x2e   :  { %s3378_s15 = smov [#allocation7]   ;;  %s3379_s17 = smov [#allocation10]  }
  0x2f   :  { %s49_s16 = sshll.u32 %s3378_s15, 4  ;;  %s75_s20 = sshll.u32 %s3379_s17, 4  ;;  %s50_s16 = int_to_ptr.vmem [resolvable:$true] %s49_s16  ;;  %s76_s20 = int_to_ptr.vmem [resolvable:$true] %s75_s20 }
  0x30   :  { %s3288_s7 = scalar_lea.vmem %s50_s16, 256  ;;  %p3293_p7 = scmp.lt.s32.totalorder %s50_s16, %s50_s16 }
  0x31   :  { %p3289_p6 = scmp.ne.s32.totalorder %s50_s16, %s3288_s7  ;;  %p3294_p8 = scmp.lt.s32.totalorder %s3288_s7, %s3288_s7 }
  0x33   :  { %p3295_p9 = por %p3294_p8, %p3293_p7 }
  0x35   :  { %p3296_p10 = pnand %p3295_p9, %p3289_p6 }
  0x37   :  { %3299 = shalt.err (!%p3296_p10)
}
  0x38   :  { %55 = dma.hbm_to_vmem [thread:$0]  %s4021_s2, 256, %s50_s16, [#allocation6], %s3372_s18, %s3372_s18, %s3373_s19  }
  0x39   :  { %s3308_s0 = scalar_lea.vmem %s76_s20, 8192  ;;  %p3313_p12 = scmp.lt.s32.totalorder %s76_s20, %s76_s20 }
  0x3a   :  { %p3309_p11 = scmp.ne.s32.totalorder %s76_s20, %s3308_s0  ;;  %p3314_p13 = scmp.lt.s32.totalorder %s3308_s0, %s3308_s0 }
  0x3c   :  { %p3315_p0 = por %p3314_p13, %p3313_p12 }
  0x3e   :  { %p3316_p1 = pnand %p3315_p0, %p3309_p11 }
  0x40   :  { %3319 = shalt.err (!%p3316_p1)
}
  0x41   :  { %81 = dma.hbm_to_vmem [thread:$0]  %s4024_s5, 8192, %s76_s20, [#allocation9], %s3374_s23, %s3374_s23, %s3375_s24  }
  0x42   :  { %s3380_s27 = smov [#allocation13]  }
  0x43   :  { %s103_s28 = sshll.u32 %s3380_s27, 4  ;;  %s104_s28 = int_to_ptr.vmem [resolvable:$true] %s103_s28 }
  0x44   :  { %s3328_s29 = scalar_lea.vmem %s104_s28, 8192  ;;  %p3333_p3 = scmp.lt.s32.totalorder %s104_s28, %s104_s28 }
  0x45   :  { %p3329_p2 = scmp.ne.s32.totalorder %s104_s28, %s3328_s29  ;;  %p3334_p4 = scmp.lt.s32.totalorder %s3328_s29, %s3328_s29 }
  0x47   :  { %p3335_p5 = por %p3334_p4, %p3333_p3 }
  0x49   :  { %p3336_p6 = pnand %p3335_p5, %p3329_p2 }
  0x4b   :  { %3339 = shalt.err (!%p3336_p6)
}
  0x4c   :  { %109 = dma.hbm_to_vmem [thread:$0]  %s4028_s9, 8192, %s104_s28, [#allocation12], %s3372_s18, %s3372_s18, %s3373_s19  }
  0x4d   :  { %3360 = dma.done.wait [#allocation3], 256  }
  0x4e   :  { %3361 = vsyncadd [#allocation3], 4294967040 }
  0x4f   :  { %3362 = dma.done.wait [#allocation6], 512  }
  0x50   :  { %3363 = vsyncadd [#allocation6], 4294966784 }
  0x51   :  { %3364 = dma.done.wait [#allocation9], 16384  }
  0x52   :  { %3365 = vsyncadd [#allocation9], 4294950912 }
  0x53   :  { %3366 = dma.done.wait [#allocation12], 16384  }
  0x54   :  { %3367 = vsyncadd [#allocation12], 4294950912  ;;  %v3381_v0 = vmov 0   ;;  %v198_v1 = vld [vmem:[#allocation8 + $0x1c8] sm:$0xff]  ;;  %v197_v3 = vld [vmem:[#allocation8 + $0x1c0] sm:$0xff]  ;;  %vm3383_vm0 = vmmov 0  }
  0x55   :  { %291 = vmatprep.mubr.bf16.mxu0 %v3381_v0  ;;  %334 = vmatprep.mubr.bf16.mxu1 %v3381_v0  ;;  %v202_v2 = vld [vmem:[#allocation8 + $0x1e8] sm:$0xff]  ;;  %v201_v5 = vld [vmem:[#allocation8 + $0x1e0] sm:$0xff]  ;;  %v200_v14 = vld [vmem:[#allocation8 + $0x1d8] sm:$0xff]  ;;  %vm764_vm1 = vcmask 523264   ;;  %vm827_vm2 = vcmask 1043456   ;;  %vm811_vm3 = vcmask 64512  }
  0x56   :  { %v234_v4 = vpack.c.bf16 %v202_v2, %v198_v1  ;;  %v190_v6 = vld [vmem:[#allocation8 + $0x188] sm:$0xff]  ;;  %v233_v8 = vpack.c.bf16 %v201_v5, %v197_v3  ;;  %v189_v10 = vld [vmem:[#allocation8 + $0x180] sm:$0xff]  ;;  %v204_v15 = vld [vmem:[#allocation8 + $0x1f8] sm:$0xff] }
  0x57   :  { %v194_v7 = vld [vmem:[#allocation8 + $0x1a8] sm:$0xff]  ;;  %v193_v11 = vld [vmem:[#allocation8 + $0x1a0] sm:$0xff]  ;;  %v236_v17 = vpack.c.bf16 %v204_v15, %v200_v14  ;;  %v199_v19 = vld [vmem:[#allocation8 + $0x1d0] sm:$0xff] }
  0x58   :  { %v230_v9 = vpack.c.bf16 %v194_v7, %v190_v6  ;;  %v182_v12 = vld [vmem:[#allocation8 + $0x148] sm:$0xff]  ;;  %259 = vmatprep.subr.bf16.mxu0 %v234_v4  ;;  %v229_v16 = vpack.c.bf16 %v193_v11, %v189_v10  ;;  %v181_v18 = vld [vmem:[#allocation8 + $0x140] sm:$0xff]  ;;  %v203_v22 = vld [vmem:[#allocation8 + $0x1f0] sm:$0xff] }
  0x59   :  { %v186_v13 = vld [vmem:[#allocation8 + $0x168] sm:$0xff]  ;;  %260 = vmatpush1.bf16.msra.mxu0 %v233_v8  ;;  %v185_v21 = vld [vmem:[#allocation8 + $0x160] sm:$0xff]  ;;  %302 = vmatprep.subr.bf16.mxu1 %v236_v17  ;;  %v235_v24 = vpack.c.bf16 %v203_v22, %v199_v19  ;;  %v192_v26 = vld [vmem:[#allocation8 + $0x198] sm:$0xff] }
  0x5a   :  { %261 = vmatprep.subr.bf16.mxu0 %v230_v9  ;;  %v226_v20 = vpack.c.bf16 %v186_v13, %v182_v12  ;;  %v174_v23 = vld [vmem:[#allocation8 + $0x108] sm:$0xff]  ;;  %v196_v27 = vld [vmem:[#allocation8 + $0x1b8] sm:$0xff]  ;;  %v191_v29 = vld [vmem:[#allocation8 + $0x190] sm:$0xff]  ;;  %v225_v31 = vpack.c.bf16 %v185_v21, %v181_v18 }
  0x5b   :  { %v178_v25 = vld [vmem:[#allocation8 + $0x128] sm:$0xff]  ;;  %v232_v28 = vpack.c.bf16 %v196_v27, %v192_v26  ;;  %v195_v30 = vld [vmem:[#allocation8 + $0x1b0] sm:$0xff]  ;;  %303 = vmatpush1.bf16.msra.mxu1 %v235_v24  ;;  %v173_v32 = vld [vmem:[#allocation8 + $0x100] sm:$0xff] }
  0x5c   :  { %v231_v33 = vpack.c.bf16 %v195_v30, %v191_v29  ;;  %v184_v34 = vld [vmem:[#allocation8 + $0x158] sm:$0xff]  ;;  %v222_v35 = vpack.c.bf16 %v178_v25, %v174_v23  ;;  %v177_v36 = vld [vmem:[#allocation8 + $0x120] sm:$0xff]  ;;  %v166_v37 = vld [vmem:[#allocation8 + $0xc8] sm:$0xff] }
  0x5d   :  { %262 = vmatpush1.bf16.msra.mxu0 %v229_v16  ;;  %304 = vmatprep.subr.bf16.mxu1 %v232_v28  ;;  %v188_v38 = vld [vmem:[#allocation8 + $0x178] sm:$0xff]  ;;  %v170_v39 = vld [vmem:[#allocation8 + $0xe8] sm:$0xff]  ;;  %v183_v41 = vld [vmem:[#allocation8 + $0x150] sm:$0xff]  ;;  %v221_v45 = vpack.c.bf16 %v177_v36, %v173_v32 }
  0x5e   :  { %263 = vmatprep.subr.bf16.mxu0 %v226_v20  ;;  %v228_v40 = vpack.c.bf16 %v188_v38, %v184_v34  ;;  %v187_v42 = vld [vmem:[#allocation8 + $0x170] sm:$0xff]  ;;  %v176_v43 = vld [vmem:[#allocation8 + $0x118] sm:$0xff]  ;;  %v165_v46 = vld [vmem:[#allocation8 + $0xc0] sm:$0xff]  ;;  %v218_v49 = vpack.c.bf16 %v170_v39, %v166_v37 }
  0x5f   :  { %v180_v44 = vld [vmem:[#allocation8 + $0x138] sm:$0xff]  ;;  %305 = vmatpush1.bf16.msra.mxu1 %v231_v33  ;;  %v169_v47 = vld [vmem:[#allocation8 + $0xe0] sm:$0xff]  ;;  %v227_v48 = vpack.c.bf16 %v187_v42, %v183_v41  ;;  %v158_v50 = vld [vmem:[#allocation8 + $0x88] sm:$0xff] }
  0x60   :  { %306 = vmatprep.subr.bf16.mxu1 %v228_v40  ;;  %v224_v51 = vpack.c.bf16 %v180_v44, %v176_v43  ;;  %v175_v52 = vld [vmem:[#allocation8 + $0x110] sm:$0xff]  ;;  %v162_v54 = vld [vmem:[#allocation8 + $0xa8] sm:$0xff]  ;;  %v168_v55 = vld [vmem:[#allocation8 + $0xd8] sm:$0xff]  ;;  %v217_v57 = vpack.c.bf16 %v169_v47, %v165_v46 }
  0x61   :  { %264 = vmatpush1.bf16.msra.mxu0 %v225_v31  ;;  %v179_v53 = vld [vmem:[#allocation8 + $0x130] sm:$0xff]  ;;  %v172_v56 = vld [vmem:[#allocation8 + $0xf8] sm:$0xff]  ;;  %v157_v58 = vld [vmem:[#allocation8 + $0x80] sm:$0xff]  ;;  %v214_v61 = vpack.c.bf16 %v162_v54, %v158_v50 }
  0x62   :  { %265 = vmatprep.subr.bf16.mxu0 %v222_v35  ;;  %v161_v59 = vld [vmem:[#allocation8 + $0xa0] sm:$0xff]  ;;  %v223_v60 = vpack.c.bf16 %v179_v53, %v175_v52  ;;  %v150_v62 = vld [vmem:[#allocation8 + $0x48] sm:$0xff]  ;;  %v220_v63 = vpack.c.bf16 %v172_v56, %v168_v55  ;;  %v167_v1 = vld [vmem:[#allocation8 + $0xd0] sm:$0xff] }
  0x63   :  { %307 = vmatpush1.bf16.msra.mxu1 %v227_v48  ;;  %v171_v2 = vld [vmem:[#allocation8 + $0xf0] sm:$0xff]  ;;  %v154_v3 = vld [vmem:[#allocation8 + $0x68] sm:$0xff]  ;;  %v160_v4 = vld [vmem:[#allocation8 + $0x98] sm:$0xff]  ;;  %v213_v6 = vpack.c.bf16 %v161_v59, %v157_v58 }
  0x64   :  { %308 = vmatprep.subr.bf16.mxu1 %v224_v51  ;;  %v164_v5 = vld [vmem:[#allocation8 + $0xb8] sm:$0xff]  ;;  %v149_v7 = vld [vmem:[#allocation8 + $0x40] sm:$0xff]  ;;  %v219_v9 = vpack.c.bf16 %v171_v2, %v167_v1  ;;  %v210_v10 = vpack.c.bf16 %v154_v3, %v150_v62  ;;  %v142_v11 = vld [vmem:[#allocation8 + $0x8] sm:$0xff] }
  0x65   :  { %266 = vmatpush1.bf16.msra.mxu0 %v221_v45  ;;  %v153_v8 = vld [vmem:[#allocation8 + $0x60] sm:$0xff]  ;;  %v216_v12 = vpack.c.bf16 %v164_v5, %v160_v4  ;;  %v159_v13 = vld [vmem:[#allocation8 + $0x90] sm:$0xff]  ;;  %v146_v15 = vld [vmem:[#allocation8 + $0x28] sm:$0xff] }
  0x66   :  { %267 = vmatprep.subr.bf16.mxu0 %v218_v49  ;;  %v163_v14 = vld [vmem:[#allocation8 + $0xb0] sm:$0xff]  ;;  %v152_v16 = vld [vmem:[#allocation8 + $0x58] sm:$0xff]  ;;  %v209_v18 = vpack.c.bf16 %v153_v8, %v149_v7  ;;  %v141_v19 = vld [vmem:[#allocation8] sm:$0xff]  ;;  %v206_v22 = vpack.c.bf16 %v146_v15, %v142_v11 }
  0x67   :  { %309 = vmatpush1.bf16.msra.mxu1 %v223_v60  ;;  %v156_v17 = vld [vmem:[#allocation8 + $0x78] sm:$0xff]  ;;  %v145_v20 = vld [vmem:[#allocation8 + $0x20] sm:$0xff]  ;;  %v215_v21 = vpack.c.bf16 %v163_v14, %v159_v13  ;;  %v402_v24 = vld [vmem:[#allocation10 + $0x1c8] sm:$0xff] }
  0x68   :  { %310 = vmatprep.subr.bf16.mxu1 %v220_v63  ;;  %v212_v23 = vpack.c.bf16 %v156_v17, %v152_v16  ;;  %v151_v25 = vld [vmem:[#allocation8 + $0x50] sm:$0xff]  ;;  %v406_v27 = vld [vmem:[#allocation10 + $0x1e8] sm:$0xff]  ;;  %v144_v28 = vld [vmem:[#allocation8 + $0x18] sm:$0xff]  ;;  %v205_v31 = vpack.c.bf16 %v145_v20, %v141_v19 }
  0x69   :  { %268 = vmatpush1.bf16.msra.mxu0 %v217_v57  ;;  %v155_v26 = vld [vmem:[#allocation8 + $0x70] sm:$0xff]  ;;  %v148_v29 = vld [vmem:[#allocation8 + $0x38] sm:$0xff]  ;;  %v401_v34 = vld [vmem:[#allocation10 + $0x1c0] sm:$0xff]  ;;  %v438_v36 = vpack.c.bf16 %v406_v27, %v402_v24 }
  0x6a   :  { %269 = vmatprep.subr.bf16.mxu0 %v214_v61  ;;  %v132_v30 = vld [vmem:[#allocation2] sm:$0xff]  ;;  %v133_v32 = vld [vmem:[#allocation2 + $0x8] sm:$0xff]  ;;  %v211_v33 = vpack.c.bf16 %v155_v26, %v151_v25  ;;  %v405_v35 = vld [vmem:[#allocation10 + $0x1e0] sm:$0xff]  ;;  %v208_v37 = vpack.c.bf16 %v148_v29, %v144_v28 }
  0x6b   :  { %311 = vmatpush1.bf16.msra.mxu1 %v219_v9  ;;  %v394_v38 = vld [vmem:[#allocation10 + $0x188] sm:$0xff]  ;;  %v143_v39 = vld [vmem:[#allocation8 + $0x10] sm:$0xff]  ;;  %v404_v42 = vld [vmem:[#allocation10 + $0x1d8] sm:$0xff]  ;;  %v134_v44 = vpack.c.bf16 %v133_v32, %v132_v30  ;;  %v437_v45 = vpack.c.bf16 %v405_v35, %v401_v34 }
  0x6c   :  { %312 = vmatprep.subr.bf16.mxu1 %v216_v12  ;;  %v147_v40 = vld [vmem:[#allocation8 + $0x30] sm:$0xff]  ;;  %v398_v41 = vld [vmem:[#allocation10 + $0x1a8] sm:$0xff]  ;;  %v408_v43 = vld [vmem:[#allocation10 + $0x1f8] sm:$0xff] }
  0x6d   :  { %270 = vmatpush1.bf16.msra.mxu0 %v213_v6  ;;  %v207_v46 = vpack.c.bf16 %v147_v40, %v143_v39  ;;  %v393_v47 = vld [vmem:[#allocation10 + $0x180] sm:$0xff]  ;;  %v434_v49 = vpack.c.bf16 %v398_v41, %v394_v38  ;;  %v386_v50 = vld [vmem:[#allocation10 + $0x148] sm:$0xff]  ;;  %v440_v51 = vpack.c.bf16 %v408_v43, %v404_v42  ;;  %v403_v52 = vld [vmem:[#allocation10 + $0x1d0] sm:$0xff] }
  0x6e   :  { %271 = vmatprep.subr.bf16.mxu0 %v210_v10  ;;  %v397_v48 = vld [vmem:[#allocation10 + $0x1a0] sm:$0xff]  ;;  %v407_v53 = vld [vmem:[#allocation10 + $0x1f0] sm:$0xff]  ;;  %v390_v54 = vld [vmem:[#allocation10 + $0x168] sm:$0xff] }
  0x6f   :  { %313 = vmatpush1.bf16.msra.mxu1 %v215_v21  ;;  %v396_v55 = vld [vmem:[#allocation10 + $0x198] sm:$0xff]  ;;  %v433_v57 = vpack.c.bf16 %v397_v48, %v393_v47  ;;  %v385_v58 = vld [vmem:[#allocation10 + $0x140] sm:$0xff]  ;;  %v439_v60 = vpack.c.bf16 %v407_v53, %v403_v52  ;;  %v430_v61 = vpack.c.bf16 %v390_v54, %v386_v50  ;;  %v378_v62 = vld [vmem:[#allocation10 + $0x108] sm:$0xff] }
  0x70   :  { %314 = vmatprep.subr.bf16.mxu1 %v212_v23  ;;  %v400_v56 = vld [vmem:[#allocation10 + $0x1b8] sm:$0xff]  ;;  %v389_v59 = vld [vmem:[#allocation10 + $0x160] sm:$0xff]  ;;  %v395_v1 = vld [vmem:[#allocation10 + $0x190] sm:$0xff] }
  0x71   :  { %272 = vmatpush1.bf16.msra.mxu0 %v209_v18  ;;  %v436_v63 = vpack.c.bf16 %v400_v56, %v396_v55  ;;  %v399_v2 = vld [vmem:[#allocation10 + $0x1b0] sm:$0xff]  ;;  %v382_v3 = vld [vmem:[#allocation10 + $0x128] sm:$0xff]  ;;  %v388_v4 = vld [vmem:[#allocation10 + $0x158] sm:$0xff]  ;;  %v429_v6 = vpack.c.bf16 %v389_v59, %v385_v58 }
  0x72   :  { %273 = vmatprep.subr.bf16.mxu0 %v206_v22  ;;  %v392_v5 = vld [vmem:[#allocation10 + $0x178] sm:$0xff]  ;;  %v377_v7 = vld [vmem:[#allocation10 + $0x100] sm:$0xff]  ;;  %v435_v9 = vpack.c.bf16 %v399_v2, %v395_v1  ;;  %v426_v10 = vpack.c.bf16 %v382_v3, %v378_v62  ;;  %v370_v11 = vld [vmem:[#allocation10 + $0xc8] sm:$0xff] }
  0x73   :  { %315 = vmatpush1.bf16.msra.mxu1 %v211_v33  ;;  %v381_v8 = vld [vmem:[#allocation10 + $0x120] sm:$0xff]  ;;  %v432_v12 = vpack.c.bf16 %v392_v5, %v388_v4  ;;  %v387_v13 = vld [vmem:[#allocation10 + $0x150] sm:$0xff]  ;;  %v374_v15 = vld [vmem:[#allocation10 + $0xe8] sm:$0xff] }
  0x74   :  { %316 = vmatprep.subr.bf16.mxu1 %v208_v37  ;;  %v391_v14 = vld [vmem:[#allocation10 + $0x170] sm:$0xff]  ;;  %v380_v16 = vld [vmem:[#allocation10 + $0x118] sm:$0xff]  ;;  %v425_v18 = vpack.c.bf16 %v381_v8, %v377_v7  ;;  %v369_v19 = vld [vmem:[#allocation10 + $0xc0] sm:$0xff]  ;;  %v422_v22 = vpack.c.bf16 %v374_v15, %v370_v11 }
  0x75   :  { %274 = vmatpush1.bf16.msra.mxu0 %v205_v31  ;;  %v384_v17 = vld [vmem:[#allocation10 + $0x138] sm:$0xff]  ;;  %v373_v20 = vld [vmem:[#allocation10 + $0xe0] sm:$0xff]  ;;  %v431_v21 = vpack.c.bf16 %v391_v14, %v387_v13  ;;  %v362_v23 = vld [vmem:[#allocation10 + $0x88] sm:$0xff] }
  0x76   :  { %463 = vmatprep.subr.bf16.mxu0 %v438_v36  ;;  %v428_v24 = vpack.c.bf16 %v384_v17, %v380_v16  ;;  %v379_v25 = vld [vmem:[#allocation10 + $0x110] sm:$0xff]  ;;  %v366_v27 = vld [vmem:[#allocation10 + $0xa8] sm:$0xff]  ;;  %v372_v28 = vld [vmem:[#allocation10 + $0xd8] sm:$0xff]  ;;  %v421_v30 = vpack.c.bf16 %v373_v20, %v369_v19 }
  0x77   :  { %317 = vmatpush1.bf16.msra.mxu1 %v207_v46  ;;  %v383_v26 = vld [vmem:[#allocation10 + $0x130] sm:$0xff]  ;;  %v376_v29 = vld [vmem:[#allocation10 + $0xf8] sm:$0xff]  ;;  %v361_v31 = vld [vmem:[#allocation10 + $0x80] sm:$0xff]  ;;  %v418_v34 = vpack.c.bf16 %v366_v27, %v362_v23 }
  0x78   :  { %292 = vmatmul.mubr.bf16.vlgmr.msra.gmra.mxu0 %v134_v44  ;;  %506 = vmatprep.subr.bf16.mxu1 %v440_v51  ;;  %v365_v32 = vld [vmem:[#allocation10 + $0xa0] sm:$0xff]  ;;  %v427_v33 = vpack.c.bf16 %v383_v26, %v379_v25  ;;  %v354_v35 = vld [vmem:[#allocation10 + $0x48] sm:$0xff]  ;;  %v424_v36 = vpack.c.bf16 %v376_v29, %v372_v28  ;;  %v371_v37 = vld [vmem:[#allocation10 + $0xd0] sm:$0xff] }
  0x79   :  { %464 = vmatpush1.bf16.msra.mxu0 %v437_v45  ;;  %495 = vmatprep.mubr.bf16.mxu0 %v3381_v0  ;;  %v375_v38 = vld [vmem:[#allocation10 + $0xf0] sm:$0xff]  ;;  %v358_v39 = vld [vmem:[#allocation10 + $0x68] sm:$0xff]  ;;  %v364_v40 = vld [vmem:[#allocation10 + $0x98] sm:$0xff]  ;;  %v417_v42 = vpack.c.bf16 %v365_v32, %v361_v31 }
  0x7a   :  { %465 = vmatprep.subr.bf16.mxu0 %v434_v49  ;;  %335 = vmatmul.mubr.bf16.vlgmr.msra.gmra.mxu1 %v134_v44  ;;  %v368_v41 = vld [vmem:[#allocation10 + $0xb8] sm:$0xff]  ;;  %v353_v43 = vld [vmem:[#allocation10 + $0x40] sm:$0xff]  ;;  %v423_v45 = vpack.c.bf16 %v375_v38, %v371_v37  ;;  %v414_v46 = vpack.c.bf16 %v358_v39, %v354_v35  ;;  %v346_v47 = vld [vmem:[#allocation10 + $0x8] sm:$0xff] }
  0x7b   :  { %507 = vmatpush1.bf16.msra.mxu1 %v439_v60  ;;  %538 = vmatprep.mubr.bf16.mxu1 %v3381_v0  ;;  %v357_v44 = vld [vmem:[#allocation10 + $0x60] sm:$0xff]  ;;  %v420_v48 = vpack.c.bf16 %v368_v41, %v364_v40  ;;  %v363_v49 = vld [vmem:[#allocation10 + $0x90] sm:$0xff]  ;;  %v350_v51 = vld [vmem:[#allocation10 + $0x28] sm:$0xff] }
  0x7c   :  { %508 = vmatprep.subr.bf16.mxu1 %v436_v63  ;;  %v367_v50 = vld [vmem:[#allocation10 + $0xb0] sm:$0xff]  ;;  %v356_v52 = vld [vmem:[#allocation10 + $0x58] sm:$0xff]  ;;  %v413_v54 = vpack.c.bf16 %v357_v44, %v353_v43  ;;  %v345_v55 = vld [vmem:[#allocation10] sm:$0xff] }
  0x7d   :  { %466 = vmatpush1.bf16.msra.mxu0 %v433_v57  ;;  %v360_v53 = vld [vmem:[#allocation10 + $0x78] sm:$0xff]  ;;  %v419_v56 = vpack.c.bf16 %v367_v50, %v363_v49  ;;  %v410_v57 = vpack.c.bf16 %v350_v51, %v346_v47  ;;  %v349_v58 = vld [vmem:[#allocation10 + $0x20] sm:$0xff]  ;;  %v355_v60 = vld [vmem:[#allocation10 + $0x50] sm:$0xff] }
  0x7e   :  { %467 = vmatprep.subr.bf16.mxu0 %v430_v61  ;;  %v416_v59 = vpack.c.bf16 %v360_v53, %v356_v52  ;;  %v359_v61 = vld [vmem:[#allocation10 + $0x70] sm:$0xff]  ;;  %v348_v62 = vld [vmem:[#allocation10 + $0x18] sm:$0xff]  ;;  %v409_v1 = vpack.c.bf16 %v349_v58, %v345_v55  ;;  %v135_v2 = vld [vmem:[#allocation5] sm:$0xff] }
  0x7f   :  { %509 = vmatpush1.bf16.msra.mxu1 %v435_v9  ;;  %v352_v63 = vld [vmem:[#allocation10 + $0x38] sm:$0xff]  ;;  %v136_v3 = vld [vmem:[#allocation5 + $0x8] sm:$0xff]  ;;  %v415_v4 = vpack.c.bf16 %v359_v61, %v355_v60  ;;  %v351_v7 = vld [vmem:[#allocation10 + $0x30] sm:$0xff]  ;;  %v3382_v60 = vmov 0.0   ;;  %v239_v61 = vlaneseq }
  0x80   :  { %510 = vmatprep.subr.bf16.mxu1 %v432_v12  ;;  %v412_v5 = vpack.c.bf16 %v352_v63, %v348_v62  ;;  %v137_v8 = vpack.c.bf16 %v136_v3, %v135_v2  ;;  %v610_v11 = vld [vmem:[#allocation11 + $0x1e8] sm:$0xff]  ;;  %v605_v13 = vld [vmem:[#allocation11 + $0x1c0] sm:$0xff]  ;;  %v139_v58 = vld [vmem:[#allocation7 + $0x8] sm:$0xff] }
  0x81   :  { %468 = vmatpush1.bf16.msra.mxu0 %v429_v6  ;;  %v347_v6 = vld [vmem:[#allocation10 + $0x10] sm:$0xff]  ;;  %v609_v14 = vld [vmem:[#allocation11 + $0x1e0] sm:$0xff]  ;;  %v598_v16 = vld [vmem:[#allocation11 + $0x188] sm:$0xff]  ;;  %v240_v63 = vshrl.u32 %v239_v61, 7 }
  0x82   :  { %469 = vmatprep.subr.bf16.mxu0 %v426_v10  ;;  %v411_v9 = vpack.c.bf16 %v351_v7, %v347_v6  ;;  %v606_v10 = vld [vmem:[#allocation11 + $0x1c8] sm:$0xff]  ;;  %v641_v15 = vpack.c.bf16 %v609_v14, %v605_v13  ;;  %v597_v19 = vld [vmem:[#allocation11 + $0x180] sm:$0xff] }
  0x83   :  { %511 = vmatpush1.bf16.msra.mxu1 %v431_v21  ;;  %v642_v12 = vpack.c.bf16 %v610_v11, %v606_v10  ;;  %v602_v17 = vld [vmem:[#allocation11 + $0x1a8] sm:$0xff]  ;;  %v601_v20 = vld [vmem:[#allocation11 + $0x1a0] sm:$0xff]  ;;  %v3495_v3 = vsub.s32 0, %v240_v63  ;;  %v3507_v11 = vsub.s32 2, %v240_v63 }
  0x84   :  { %512 = vmatprep.subr.bf16.mxu1 %v428_v24  ;;  %v637_v21 = vpack.c.bf16 %v601_v20, %v597_v19  ;;  %v594_v23 = vld [vmem:[#allocation11 + $0x168] sm:$0xff]  ;;  %v593_v25 = vld [vmem:[#allocation11 + $0x160] sm:$0xff] }
  0x85   :  { %470 = vmatpush1.bf16.msra.mxu0 %v425_v18  ;;  %v638_v18 = vpack.c.bf16 %v602_v17, %v598_v16  ;;  %v582_v26 = vld [vmem:[#allocation11 + $0x108] sm:$0xff]  ;;  %v581_v29 = vld [vmem:[#allocation11 + $0x100] sm:$0xff] }
  0x86   :  { %471 = vmatprep.subr.bf16.mxu0 %v422_v22  ;;  %v590_v22 = vld [vmem:[#allocation11 + $0x148] sm:$0xff]  ;;  %v577_v37 = vld [vmem:[#allocation11 + $0xe0] sm:$0xff] }
  0x87   :  { %513 = vmatpush1.bf16.msra.mxu1 %v427_v33  ;;  %v634_v24 = vpack.c.bf16 %v594_v23, %v590_v22  ;;  %v586_v28 = vld [vmem:[#allocation11 + $0x128] sm:$0xff]  ;;  %v569_v43 = vld [vmem:[#allocation11 + $0xa0] sm:$0xff] }
  0x88   :  { %514 = vmatprep.subr.bf16.mxu1 %v424_v36  ;;  %v630_v31 = vpack.c.bf16 %v586_v28, %v582_v26  ;;  %v574_v32 = vld [vmem:[#allocation11 + $0xc8] sm:$0xff]  ;;  %v573_v36 = vld [vmem:[#allocation11 + $0xc0] sm:$0xff] }
  0x89   :  { %472 = vmatpush1.bf16.msra.mxu0 %v421_v30  ;;  %v585_v30 = vld [vmem:[#allocation11 + $0x120] sm:$0xff]  ;;  %v578_v33 = vld [vmem:[#allocation11 + $0xe8] sm:$0xff]  ;;  %v625_v40 = vpack.c.bf16 %v577_v37, %v573_v36 }
  0x8a   :  { %473 = vmatprep.subr.bf16.mxu0 %v418_v34  ;;  %v629_v34 = vpack.c.bf16 %v585_v30, %v581_v29  ;;  %v626_v35 = vpack.c.bf16 %v578_v33, %v574_v32  ;;  %v566_v38 = vld [vmem:[#allocation11 + $0x88] sm:$0xff]  ;;  %v561_v49 = vld [vmem:[#allocation11 + $0x60] sm:$0xff] }
  0x8b   :  { %515 = vmatpush1.bf16.msra.mxu1 %v423_v45  ;;  %v570_v39 = vld [vmem:[#allocation11 + $0xa8] sm:$0xff]  ;;  %v553_v55 = vld [vmem:[#allocation11 + $0x20] sm:$0xff] }
  0x8c   :  { %516 = vmatprep.subr.bf16.mxu1 %v420_v48  ;;  %v622_v41 = vpack.c.bf16 %v570_v39, %v566_v38  ;;  %v558_v44 = vld [vmem:[#allocation11 + $0x48] sm:$0xff]  ;;  %v557_v48 = vld [vmem:[#allocation11 + $0x40] sm:$0xff] }
  0x8d   :  { %474 = vmatpush1.bf16.msra.mxu0 %v417_v42  ;;  %v565_v42 = vld [vmem:[#allocation11 + $0x80] sm:$0xff]  ;;  %v562_v45 = vld [vmem:[#allocation11 + $0x68] sm:$0xff]  ;;  %v617_v50 = vpack.c.bf16 %v561_v49, %v557_v48 }
  0x8e   :  { %475 = vmatprep.subr.bf16.mxu0 %v414_v46  ;;  %v621_v46 = vpack.c.bf16 %v569_v43, %v565_v42  ;;  %v618_v47 = vpack.c.bf16 %v562_v45, %v558_v44  ;;  %v550_v51 = vld [vmem:[#allocation11 + $0x8] sm:$0xff] }
  0x8f   :  { %517 = vmatpush1.bf16.msra.mxu1 %v419_v56  ;;  %v554_v52 = vld [vmem:[#allocation11 + $0x28] sm:$0xff] }
  0x90   :  { %518 = vmatprep.subr.bf16.mxu1 %v416_v59  ;;  %v614_v53 = vpack.c.bf16 %v554_v52, %v550_v51 }
  0x91   :  { %476 = vmatpush1.bf16.msra.mxu0 %v413_v54  ;;  %v549_v54 = vld [vmem:[#allocation11] sm:$0xff] }
  0x92   :  { %477 = vmatprep.subr.bf16.mxu0 %v410_v57  ;;  %v613_v56 = vpack.c.bf16 %v553_v55, %v549_v54  ;;  %v138_v57 = vld [vmem:[#allocation7] sm:$0xff] }
  0x93   :  { %519 = vmatpush1.bf16.msra.mxu1 %v415_v4  ;;  %v3489_v59 = vpack.c.bf16 %v139_v58, %v138_v57  ;;  %v237_v4 = vld [vmem:[%s4023_s4] sm:$0xf]  ;;  %s3384_s4 = smov 64  }
  0x94   :  { %520 = vmatprep.subr.bf16.mxu1 %v412_v5  ;;  %v3500_v5 = vsub.s32 1, %v240_v63  ;;  %v250_v20 = vrot.slane %v237_v4, %v3507_v11 }
  0x95   :  { %478 = vmatpush1.bf16.msra.mxu0 %v409_v1 }
  0x96   :  { %667 = vmatprep.subr.bf16.mxu0 %v642_v12  ;;  %v246_v10 = vrot.slane %v237_v4, %v3500_v5 }
  0x97   :  { %521 = vmatpush1.bf16.msra.mxu1 %v411_v9  ;;  %v242_v9 = vrot.slane %v237_v4, %v3495_v3 }
  0x98   :  { %496 = vmatmul.mubr.bf16.vlgmr.msra.gmra.mxu0 %v137_v8 }
  0x99   :  { %699 = vmatprep.mubr.bf16.mxu0 %v3381_v0  ;;  %668 = vmatpush1.bf16.msra.mxu0 %v641_v15 }
  0x9a   :  { %539 = vmatmul.mubr.bf16.vlgmr.msra.gmra.mxu1 %v137_v8  ;;  %669 = vmatprep.subr.bf16.mxu0 %v638_v18  ;;  %v441_v8 = vld [vmem:[%s4025_s6] sm:$0xf]  ;;  %v3511_v18 = vsub.s32 3, %v240_v63 }
  0x9b   :  { %742 = vmatprep.mubr.bf16.mxu1 %v3381_v0  ;;  %v589_v0 = vld [vmem:[#allocation11 + $0x140] sm:$0xff]  ;;  %v446_v12 = vrot.slane %v441_v8, %v3495_v3  ;;  %v450_v16 = vrot.slane %v441_v8, %v3500_v5  ;;  %v454_v22 = vrot.slane %v441_v8, %v3507_v11 }
  0x9c   :  { %v633_v27 = vpack.c.bf16 %v593_v25, %v589_v0  ;;  %v254_v28 = vrot.slane %v237_v4, %v3511_v18  ;;  %v458_v30 = vrot.slane %v441_v8, %v3511_v18 }
  0x9d   :  { %670 = vmatpush1.bf16.msra.mxu0 %v637_v21 }
  0x9e   :  { %671 = vmatprep.subr.bf16.mxu0 %v634_v24 }
  0xa1   :  { %672 = vmatpush1.bf16.msra.mxu0 %v633_v27 }
  0xa2   :  { %673 = vmatprep.subr.bf16.mxu0 %v630_v31 }
  0xa5   :  { %674 = vmatpush1.bf16.msra.mxu0 %v629_v34 }
  0xa6   :  { %675 = vmatprep.subr.bf16.mxu0 %v626_v35 }
  0xa9   :  { %676 = vmatpush1.bf16.msra.mxu0 %v625_v40 }
  0xaa   :  { %677 = vmatprep.subr.bf16.mxu0 %v622_v41 }
  0xad   :  { %678 = vmatpush1.bf16.msra.mxu0 %v621_v46 }
  0xae   :  { %679 = vmatprep.subr.bf16.mxu0 %v618_v47 }
  0xb1   :  { %680 = vmatpush1.bf16.msra.mxu0 %v617_v50 }
  0xb2   :  { %681 = vmatprep.subr.bf16.mxu0 %v614_v53 }
  0xb5   :  { %682 = vmatpush1.bf16.msra.mxu0 %v613_v56 }
  0xb6   :  { %2908 = vmatprep.subr.bf16.mxu0 %v3382_v60 }
  0xb8   :  { %700 = vmatmul.mubr.bf16.vlgmr.msra.gmra.mxu0 %v3489_v59 }
  0xb9   :  { %2910 = vmatprep.mubr.msk.bf16.mxu0 %vm3383_vm0, %v3382_v60 }
 0x138   :  { %v293_v62 = vpop.f32.mrf.mxu0 }
 0x139   :  { %v294_v15 = vadd.f32 %v293_v62, %v242_v9 }
 0x13a   :  { %v295_v1 = vpop.f32.mrf.mxu0  ;;  %v336_v2 = vpop.f32.mrf.mxu1 }
 0x13b   :  { %v296_v17 = vadd.f32 %v295_v1, %v246_v10  ;;  %v753_v0 = vmul.f32 0.125, %v294_v15  ;;  %v337_v31 = vadd.f32 %v336_v2, %v250_v20  ;;  %v607_v15 = vld [vmem:[#allocation11 + $0x1d0] sm:$0xff] }
 0x13c   :  { %v297_v6 = vpop.f32.mrf.mxu0  ;;  %v338_v7 = vpop.f32.mrf.mxu1 }
 0x13d   :  { %v754_v27 = vmul.f32 0.125, %v296_v17  ;;  %v761_v36 = vpack.c.bf16 %v753_v0, %v753_v0  ;;  %v755_v38 = vmul.f32 0.125, %v337_v31  ;;  %v339_v39 = vadd.f32 %v338_v7, %v254_v28  ;;  %v3583_v17 = vld [vmem:[%s4027_s8] sm:$0xf]  ;;  %v596_v31 = vld [vmem:[#allocation11 + $0x178] sm:$0xff]  ;;  %s3385_s8 = smov [#allocation14]  }
 0x13e   :  { %v299_v13 = vpop.f32.mrf.mxu0  ;;  %v340_v14 = vpop.f32.mrf.mxu1  ;;  %v298_v43 = vadd.f32 %v297_v6, %v242_v9  ;;  %s2753_s11 = sshll.u32 %s3385_s8, 4  ;;  %s2754_s11 = int_to_ptr.vmem [resolvable:$true] %s2753_s11 }
 0x13f   :  { %v3524_v37 = vpack.c.bf16 %v754_v27, %v754_v27  ;;  %v3531_v44 = vpack.c.bf16 %v755_v38, %v755_v38  ;;  %v756_v45 = vmul.f32 0.125, %v339_v39  ;;  %v300_v48 = vadd.f32 %v299_v13, %v246_v10  ;;  %v612_v13 = vld [vmem:[#allocation11 + $0x1f8] sm:$0xff]  ;;  %s3340_s12 = scalar_lea.vmem %s2754_s11, 256  ;;  %p3345_p8 = scmp.lt.s32.totalorder %s2754_s11, %s2754_s11 }
 0x140   :  { %v342_v23 = vpop.f32.mrf.mxu1  ;;  %v757_v50 = vmul.f32 0.125, %v298_v43  ;;  %v341_v57 = vadd.f32 %v340_v14, %v250_v20  ;;  %v588_v38 = vld [vmem:[#allocation11 + $0x138] sm:$0xff]  ;;  %p3341_p7 = scmp.ne.s32.totalorder %s2754_s11, %s3340_s12  ;;  %p3346_p9 = scmp.lt.s32.totalorder %s3340_s12, %s3340_s12 }
 0x141   :  { %v3542_v51 = vpack.c.bf16 %v756_v45, %v756_v45  ;;  %v758_v55 = vmul.f32 0.125, %v300_v48  ;;  %v343_v2 = vadd.f32 %v342_v23, %v254_v28  ;;  %v604_v23 = vld [vmem:[#allocation11 + $0x1b8] sm:$0xff] }
 0x142   :  { %v3550_v56 = vpack.c.bf16 %v757_v50, %v757_v50  ;;  %v759_v1 = vmul.f32 0.125, %v341_v57  ;;  %v576_v45 = vld [vmem:[#allocation11 + $0xd8] sm:$0xff]  ;;  %v579_v50 = vld [vmem:[#allocation11 + $0xf0] sm:$0xff]  ;;  %p3347_p10 = por %p3346_p9, %p3345_p8 }
 0x143   :  { %v3558_v63 = vpack.c.bf16 %v758_v55, %v758_v55  ;;  %v760_v8 = vmul.f32 0.125, %v343_v2  ;;  %v572_v55 = vld [vmem:[#allocation11 + $0xb8] sm:$0xff] }
 0x144   :  { %v3566_v7 = vpack.c.bf16 %v759_v1, %v759_v1  ;;  %v560_v2 = vld [vmem:[#allocation11 + $0x58] sm:$0xff]  ;;  %p3348_p11 = pnand %p3347_p10, %p3341_p7 }
 0x145   :  { %v3574_v10 = vpack.c.bf16 %v760_v8, %v760_v8  ;;  %v559_v8 = vld [vmem:[#allocation11 + $0x50] sm:$0xff] }
 0x158   :  { %v497_v19 = vpop.f32.mrf.mxu0 }
 0x159   :  { %v498_v21 = vadd.f32 %v497_v19, %v446_v12 }
 0x15a   :  { %v499_v24 = vpop.f32.mrf.mxu0  ;;  %v540_v29 = vpop.f32.mrf.mxu1 }
 0x15b   :  { %v762_v25 = vpack.c.bf16 %v498_v21, %v498_v21  ;;  %v500_v26 = vadd.f32 %v499_v24, %v450_v16  ;;  %v541_v34 = vadd.f32 %v540_v29, %v454_v22  ;;  %v650_v21 = vrot.slane %v3583_v17, %v3495_v3  ;;  %v584_v3 = vld [vmem:[#allocation11 + $0x118] sm:$0xff] }
 0x15c   :  { %v542_v35 = vpop.f32.mrf.mxu1  ;;  %v501_v42 = vpop.f32.mrf.mxu0  ;;  %v632_v39 = vpack.c.bf16 %v588_v38, %v584_v3 }
 0x15d   :  { %v769_v32 = vsel %vm764_vm1, %v762_v25, 0  ;;  %v3518_v33 = vpack.c.bf16 %v500_v26, %v500_v26  ;;  %875 = vrot.lane.b32.xlu0 %v762_v25, %s3384_s4  ;;  %v3526_v40 = vpack.c.bf16 %v541_v34, %v541_v34  ;;  %v543_v41 = vadd.f32 %v542_v35, %v458_v30  ;;  %v599_v25 = vld [vmem:[#allocation11 + $0x190] sm:$0xff] }
 0x15e   :  { %2909 = vmatpush3.bf16.xpose.msra.mxu0 %v769_v32  ;;  %v502_v47 = vadd.f32 %v501_v42, %v446_v12  ;;  %v503_v49 = vpop.f32.mrf.mxu0  ;;  %v544_v52 = vpop.f32.mrf.mxu1  ;;  %v608_v12 = vld [vmem:[#allocation11 + $0x1d8] sm:$0xff]  ;;  %v603_v26 = vld [vmem:[#allocation11 + $0x1b0] sm:$0xff] }
 0x15f   :  { %1095 = vrot.lane.b32.xlu1 %v3518_v33, %s3384_s4  ;;  %2920 = vmatprep.subr.bf16.mxu0 %v3382_v60  ;;  %v3533_v46 = vpack.c.bf16 %v543_v41, %v543_v41  ;;  %v504_v54 = vadd.f32 %v503_v49, %v450_v16  ;;  %v545_v58 = vadd.f32 %v544_v52, %v454_v22  ;;  %v611_v16 = vld [vmem:[#allocation11 + $0x1f0] sm:$0xff]  ;;  %v600_v22 = vld [vmem:[#allocation11 + $0x198] sm:$0xff] }
 0x160   :  { %v3546_v53 = vpack.c.bf16 %v502_v47, %v502_v47  ;;  %v546_v61 = vpop.f32.mrf.mxu1  ;;  %v644_v14 = vpack.c.bf16 %v612_v13, %v608_v12  ;;  %v643_v19 = vpack.c.bf16 %v611_v16, %v607_v15  ;;  %v640_v0 = vpack.c.bf16 %v604_v23, %v600_v22  ;;  %v591_v34 = vld [vmem:[#allocation11 + $0x150] sm:$0xff]  ;;  %v580_v47 = vld [vmem:[#allocation11 + $0xf8] sm:$0xff] }
 0x161   :  { %872 = vrot.lane.b32.xlu0 %v761_v36, %s3384_s4  ;;  %v3554_v62 = vpack.c.bf16 %v504_v54, %v504_v54  ;;  %v3562_v4 = vpack.c.bf16 %v545_v58, %v545_v58  ;;  %v547_v6 = vadd.f32 %v546_v61, %v458_v30  ;;  %v639_v27 = vpack.c.bf16 %v603_v26, %v599_v25  ;;  %v592_v30 = vld [vmem:[#allocation11 + $0x158] sm:$0xff]  ;;  %v595_v35 = vld [vmem:[#allocation11 + $0x170] sm:$0xff] }
 0x162   :  { %710 = vmatprep.subr.bf16.mxu1 %v644_v14  ;;  %v636_v32 = vpack.c.bf16 %v596_v31, %v592_v30  ;;  %v583_v41 = vld [vmem:[#allocation11 + $0x110] sm:$0xff]  ;;  %v628_v48 = vpack.c.bf16 %v580_v47, %v576_v45  ;;  %v568_v54 = vld [vmem:[#allocation11 + $0x98] sm:$0xff]  ;;  %v991_v30 = vsel %vm764_vm1, %v3518_v33, 0  ;;  %v1671_v3 = vsel %vm764_vm1, %v3546_v53, 0 }
 0x163   :  { %1092 = vrot.lane.b32.xlu1 %v3524_v37, %s3384_s4  ;;  %v3568_v9 = vpack.c.bf16 %v547_v6, %v547_v6  ;;  %711 = vmatpush1.bf16.msra.mxu1 %v643_v19  ;;  %v587_v42 = vld [vmem:[#allocation11 + $0x130] sm:$0xff]  ;;  %v624_v57 = vpack.c.bf16 %v572_v55, %v568_v54  ;;  %v564_v6 = vld [vmem:[#allocation11 + $0x78] sm:$0xff] }
 0x164   :  { %712 = vmatprep.subr.bf16.mxu1 %v640_v0  ;;  %v631_v43 = vpack.c.bf16 %v587_v42, %v583_v41  ;;  %v575_v49 = vld [vmem:[#allocation11 + $0xd0] sm:$0xff]  ;;  %v620_v12 = vpack.c.bf16 %v564_v6, %v560_v2  ;;  %v552_v16 = vld [vmem:[#allocation11 + $0x18] sm:$0xff] }
 0x165   :  { %1315 = vrot.lane.b32.xlu0 %v3526_v40, %s3384_s4  ;;  %2911 = vmatmul.mubr.msk.bf16.vlgmr.msra.gmra.mxu0 %vm764_vm1, %v761_v36  ;;  %v635_v36 = vpack.c.bf16 %v595_v35, %v591_v34  ;;  %v627_v52 = vpack.c.bf16 %v579_v50, %v575_v49  ;;  %v567_v58 = vld [vmem:[#allocation11 + $0x90] sm:$0xff]  ;;  %v556_v19 = vld [vmem:[#allocation11 + $0x38] sm:$0xff]  ;;  %v1431_v35 = vsel %vm764_vm1, %v3533_v46, 0  ;;  %v2331_v54 = vsel %vm764_vm1, %v3568_v9, 0 }
 0x166   :  { %2922 = vmatprep.mubr.msk.bf16.mxu0 %vm3383_vm0, %v3382_v60  ;;  %v571_v61 = vld [vmem:[#allocation11 + $0xb0] sm:$0xff]  ;;  %v616_v23 = vpack.c.bf16 %v556_v19, %v552_v16 }
 0x167   :  { %1312 = vrot.lane.b32.xlu1 %v3531_v44, %s3384_s4  ;;  %713 = vmatpush1.bf16.msra.mxu1 %v639_v27  ;;  %v623_v1 = vpack.c.bf16 %v571_v61, %v567_v58  ;;  %v563_v13 = vld [vmem:[#allocation11 + $0x70] sm:$0xff] }
 0x168   :  { %714 = vmatprep.subr.bf16.mxu1 %v636_v32  ;;  %v619_v15 = vpack.c.bf16 %v563_v13, %v559_v8  ;;  %v551_v0 = vld [vmem:[#allocation11 + $0x10] sm:$0xff]  ;;  %v1211_v32 = vsel %vm764_vm1, %v3526_v40, 0 }
 0x169   :  { %1535 = vrot.lane.b32.xlu0 %v3533_v46, %s3384_s4  ;;  %v555_v25 = vld [vmem:[#allocation11 + $0x30] sm:$0xff] }
 0x16a   :  { %v615_v26 = vpack.c.bf16 %v555_v25, %v551_v0 }
 0x16b   :  { %1532 = vrot.lane.b32.xlu1 %v3542_v51, %s3384_s4  ;;  %715 = vmatpush1.bf16.msra.mxu1 %v635_v36 }
 0x16c   :  { %716 = vmatprep.subr.bf16.mxu1 %v632_v39  ;;  %v1891_v39 = vsel %vm764_vm1, %v3554_v62, 0 }
 0x16d   :  { %1775 = vrot.lane.b32.xlu0 %v3546_v53, %s3384_s4 }
 0x16f   :  { %1772 = vrot.lane.b32.xlu1 %v3550_v56, %s3384_s4  ;;  %717 = vmatpush1.bf16.msra.mxu1 %v631_v43 }
 0x170   :  { %718 = vmatprep.subr.bf16.mxu1 %v628_v48  ;;  %v2111_v48 = vsel %vm764_vm1, %v3562_v4, 0 }
 0x171   :  { %1995 = vrot.lane.b32.xlu0 %v3554_v62, %s3384_s4 }
 0x173   :  { %1992 = vrot.lane.b32.xlu1 %v3558_v63, %s3384_s4  ;;  %719 = vmatpush1.bf16.msra.mxu1 %v627_v52 }
 0x174   :  { %720 = vmatprep.subr.bf16.mxu1 %v624_v57 }
 0x175   :  { %2215 = vrot.lane.b32.xlu0 %v3562_v4, %s3384_s4 }
 0x177   :  { %2212 = vrot.lane.b32.xlu1 %v3566_v7, %s3384_s4  ;;  %721 = vmatpush1.bf16.msra.mxu1 %v623_v1 }
 0x178   :  { %v701_v20 = vpop.f32.mrf.mxu0  ;;  %722 = vmatprep.subr.bf16.mxu1 %v620_v12 }
 0x179   :  { %2435 = vrot.lane.b32.xlu0 %v3568_v9, %s3384_s4  ;;  %v702_v14 = vadd.f32 %v701_v20, %v650_v21 }
 0x17a   :  { %v3587_v24 = vpop.f32.mrf.mxu0 }
 0x17b   :  { %2432 = vrot.lane.b32.xlu1 %v3574_v10, %s3384_s4  ;;  %723 = vmatpush1.bf16.msra.mxu1 %v619_v15  ;;  %v3591_v22 = vpack.c.bf16 %v702_v14, %v702_v14 }
 0x17c   :  { %v705_v28 = vpop.f32.mrf.mxu0  ;;  %724 = vmatprep.subr.bf16.mxu1 %v616_v23 }
 0x17d   :  { %v3589_v29 = vadd.f32 %v705_v28, %v650_v21  ;;  %v829_v27 = vsel %vm827_vm2, %v3591_v22, 0 }
 0x17e   :  { %v3659_v42 = vpop.f32.mrf.mxu0 }
 0x17f   :  { %725 = vmatpush1.bf16.msra.mxu1 %v615_v26 }
 0x180   :  { %2914 = vmatprep.subr.bf16.mxu1 %v3382_v60 }
 0x182   :  { %743 = vmatmul.mubr.bf16.vlgmr.msra.gmra.mxu1 %v3489_v59 }
 0x183   :  { %2915 = vmatpush3.bf16.msra.mxu1 %v829_v27  ;;  %2916 = vmatprep.mubr.msk.bf16.mxu1 %vm3383_vm0, %v3382_v60 }
 0x184   :  { %2926 = vmatprep.subr.bf16.mxu1 %v3382_v60 }
 0x1cf   :  { %v876_v20 = vpop.permute.xlu0 %875 }
 0x1d0   :  { %v881_v21 = vsel %vm764_vm1, %v876_v20, 0 }
 0x1d1   :  { %2921 = vmatpush3.bf16.xpose.msra.mxu0 %v881_v21  ;;  %v1096_v59 = vpop.permute.xlu1 %1095 }
 0x1d2   :  { %2932 = vmatprep.subr.bf16.mxu0 %v3382_v60  ;;  %v1101_v31 = vsel %vm764_vm1, %v1096_v59, 0 }
 0x1d3   :  { %v873_v28 = vpop.permute.xlu0 %872 }
 0x1d5   :  { %v1093_v33 = vpop.permute.xlu1 %1092 }
 0x1d7   :  { %v1316_v34 = vpop.permute.xlu0 %1315 }
 0x1d8   :  { %2923 = vmatmul.mubr.msk.bf16.vlgmr.msra.gmra.mxu0 %vm764_vm1, %v873_v28 }
 0x1d9   :  { %2933 = vmatpush3.bf16.xpose.msra.mxu0 %v991_v30  ;;  %2934 = vmatprep.mubr.msk.bf16.mxu0 %vm3383_vm0, %v3382_v60  ;;  %v1313_v40 = vpop.permute.xlu1 %1312 }
 0x1da   :  { %2944 = vmatprep.subr.bf16.mxu0 %v3382_v60 }
 0x1db   :  { %v1536_v36 = vpop.permute.xlu0 %1535 }
 0x1dd   :  { %v1533_v46 = vpop.permute.xlu1 %1532 }
 0x1df   :  { %v1776_v38 = vpop.permute.xlu0 %1775 }
 0x1e0   :  { %2935 = vmatmul.mubr.msk.bf16.vlgmr.msra.gmra.mxu0 %vm764_vm1, %v3524_v37  ;;  %v1321_v37 = vsel %vm764_vm1, %v1316_v34, 0 }
 0x1e1   :  { %2945 = vmatpush3.bf16.xpose.msra.mxu0 %v1101_v31  ;;  %2946 = vmatprep.mubr.msk.bf16.mxu0 %vm3383_vm0, %v3382_v60  ;;  %v1773_v53 = vpop.permute.xlu1 %1772 }
 0x1e2   :  { %2956 = vmatprep.subr.bf16.mxu0 %v3382_v60 }
 0x1e3   :  { %v1996_v41 = vpop.permute.xlu0 %1995 }
 0x1e5   :  { %v1993_v45 = vpop.permute.xlu1 %1992 }
 0x1e7   :  { %v2216_v50 = vpop.permute.xlu0 %2215 }
 0x1e8   :  { %2947 = vmatmul.mubr.msk.bf16.vlgmr.msra.gmra.mxu0 %vm764_vm1, %v1093_v33  ;;  %v2221_v52 = vsel %vm764_vm1, %v2216_v50, 0 }
 0x1e9   :  { %2957 = vmatpush3.bf16.xpose.msra.mxu0 %v1211_v32  ;;  %2958 = vmatprep.mubr.msk.bf16.mxu0 %vm3383_vm0, %v3382_v60  ;;  %v2213_v4 = vpop.permute.xlu1 %2212 }
 0x1ea   :  { %2968 = vmatprep.subr.bf16.mxu0 %v3382_v60 }
 0x1eb   :  { %v2436_v55 = vpop.permute.xlu0 %2435 }
 0x1ed   :  { %v2433_v57 = vpop.permute.xlu1 %2432 }
 0x1f0   :  { %2959 = vmatmul.mubr.msk.bf16.vlgmr.msra.gmra.mxu0 %vm764_vm1, %v3531_v44  ;;  %v1541_v44 = vsel %vm764_vm1, %v1536_v36, 0 }
 0x1f1   :  { %2969 = vmatpush3.bf16.xpose.msra.mxu0 %v1321_v37  ;;  %2970 = vmatprep.mubr.msk.bf16.mxu0 %vm3383_vm0, %v3382_v60 }
 0x1f2   :  { %2980 = vmatprep.subr.bf16.mxu0 %v3382_v60 }
 0x1f8   :  { %2971 = vmatmul.mubr.msk.bf16.vlgmr.msra.gmra.mxu0 %vm764_vm1, %v1313_v40 }
 0x1f9   :  { %2981 = vmatpush3.bf16.xpose.msra.mxu0 %v1431_v35  ;;  %2982 = vmatprep.mubr.msk.bf16.mxu0 %vm3383_vm0, %v3382_v60 }
 0x1fa   :  { %2992 = vmatprep.subr.bf16.mxu0 %v3382_v60 }
 0x200   :  { %2983 = vmatmul.mubr.msk.bf16.vlgmr.msra.gmra.mxu0 %vm764_vm1, %v3542_v51  ;;  %v1781_v51 = vsel %vm764_vm1, %v1776_v38, 0 }
 0x201   :  { %2993 = vmatpush3.bf16.xpose.msra.mxu0 %v1541_v44  ;;  %2994 = vmatprep.mubr.msk.bf16.mxu0 %vm3383_vm0, %v3382_v60 }
 0x202   :  { %3004 = vmatprep.subr.bf16.mxu0 %v3382_v60 }
 0x208   :  { %2995 = vmatmul.mubr.msk.bf16.vlgmr.msra.gmra.mxu0 %vm764_vm1, %v1533_v46 }
 0x209   :  { %3005 = vmatpush3.bf16.xpose.msra.mxu0 %v1671_v3  ;;  %3006 = vmatprep.mubr.msk.bf16.mxu0 %vm3383_vm0, %v3382_v60 }
 0x20a   :  { %3016 = vmatprep.subr.bf16.mxu0 %v3382_v60 }
 0x210   :  { %3007 = vmatmul.mubr.msk.bf16.vlgmr.msra.gmra.mxu0 %vm764_vm1, %v3550_v56  ;;  %v2001_v56 = vsel %vm764_vm1, %v1996_v41, 0 }
 0x211   :  { %3017 = vmatpush3.bf16.xpose.msra.mxu0 %v1781_v51  ;;  %3018 = vmatprep.mubr.msk.bf16.mxu0 %vm3383_vm0, %v3382_v60 }
 0x212   :  { %3028 = vmatprep.subr.bf16.mxu0 %v3382_v60 }
 0x218   :  { %3019 = vmatmul.mubr.msk.bf16.vlgmr.msra.gmra.mxu0 %vm764_vm1, %v1773_v53 }
 0x219   :  { %3029 = vmatpush3.bf16.xpose.msra.mxu0 %v1891_v39  ;;  %3030 = vmatprep.mubr.msk.bf16.mxu0 %vm3383_vm0, %v3382_v60 }
 0x21a   :  { %3040 = vmatprep.subr.bf16.mxu0 %v3382_v60 }
 0x220   :  { %3031 = vmatmul.mubr.msk.bf16.vlgmr.msra.gmra.mxu0 %vm764_vm1, %v3558_v63 }
 0x221   :  { %3041 = vmatpush3.bf16.xpose.msra.mxu0 %v2001_v56  ;;  %3042 = vmatprep.mubr.msk.bf16.mxu0 %vm3383_vm0, %v3382_v60 }
 0x222   :  { %3052 = vmatprep.subr.bf16.mxu0 %v3382_v60 }
 0x225   :  { %v805_v62 = vpop.f32.mrf.mxu0 }
 0x226   :  { %v812_v43 = vsel %vm811_vm3, %v805_v62, -inf }
 0x227   :  { %813 = vmax.xlane.f32.xlu0 %v812_v43  ;;  %v2912_v47 = vpop.f32.mrf.mxu0 }
 0x228   :  { %3043 = vmatmul.mubr.msk.bf16.vlgmr.msra.gmra.mxu0 %vm764_vm1, %v1993_v45 }
 0x229   :  { %v808_v63 = vpop.f32.mrf.mxu0  ;;  %3053 = vmatpush3.bf16.xpose.msra.mxu0 %v2111_v48  ;;  %3054 = vmatprep.mubr.msk.bf16.mxu0 %vm3383_vm0, %v3382_v60 }
 0x22a   :  { %3064 = vmatprep.subr.bf16.mxu0 %v3382_v60 }
 0x22b   :  { %v2913_v49 = vpop.f32.mrf.mxu0 }
 0x230   :  { %3055 = vmatmul.mubr.msk.bf16.vlgmr.msra.gmra.mxu0 %vm764_vm1, %v3566_v7  ;;  %v2441_v7 = vsel %vm764_vm1, %v2436_v55, 0 }
 0x231   :  { %3065 = vmatpush3.bf16.xpose.msra.mxu0 %v2221_v52  ;;  %3066 = vmatprep.mubr.msk.bf16.mxu0 %vm3383_vm0, %v3382_v60 }
 0x232   :  { %3076 = vmatprep.subr.bf16.mxu0 %v3382_v60 }
 0x238   :  { %3067 = vmatmul.mubr.msk.bf16.vlgmr.msra.gmra.mxu0 %vm764_vm1, %v2213_v4 }
 0x239   :  { %3077 = vmatpush3.bf16.xpose.msra.mxu0 %v2331_v54  ;;  %3078 = vmatprep.mubr.msk.bf16.mxu0 %vm3383_vm0, %v3382_v60 }
 0x23a   :  { %3088 = vmatprep.subr.bf16.mxu0 %v3382_v60 }
 0x240   :  { %3079 = vmatmul.mubr.msk.bf16.vlgmr.msra.gmra.mxu0 %vm764_vm1, %v3574_v10 }
 0x241   :  { %3089 = vmatpush3.bf16.xpose.msra.mxu0 %v2441_v7  ;;  %3090 = vmatprep.mubr.msk.bf16.mxu0 %vm3383_vm0, %v3382_v60 }
 0x248   :  { %3091 = vmatmul.mubr.msk.bf16.vlgmr.msra.gmra.mxu0 %vm764_vm1, %v2433_v57 }
 0x298   :  { %v3689_v9 = vpop.f32.mrf.mxu0 }
 0x299   :  { %v923_v58 = vsel %vm811_vm3, %v3689_v9, -inf }
 0x29a   :  { %924 = vmax.xlane.f32.xlu1 %v923_v58  ;;  %v2924_v61 = vpop.f32.mrf.mxu0 }
 0x29c   :  { %v920_v1 = vpop.f32.mrf.mxu0 }
 0x29e   :  { %v2925_v2 = vpop.f32.mrf.mxu0 }
 0x2a0   :  { %v3693_v6 = vpop.f32.mrf.mxu0 }
 0x2a1   :  { %v1033_v10 = vsel %vm811_vm3, %v3693_v6, -inf }
 0x2a2   :  { %1034 = vmax.xlane.f32.xlu0 %v1033_v10  ;;  %v2936_v8 = vpop.f32.mrf.mxu0 }
 0x2a4   :  { %v1030_v12 = vpop.f32.mrf.mxu0 }
 0x2a6   :  { %v2937_v13 = vpop.f32.mrf.mxu0 }
 0x2a8   :  { %v3697_v14 = vpop.f32.mrf.mxu0 }
 0x2a9   :  { %v1143_v15 = vsel %vm811_vm3, %v3697_v14, -inf }
 0x2aa   :  { %1144 = vmax.xlane.f32.xlu0 %v1143_v15  ;;  %v2948_v16 = vpop.f32.mrf.mxu0 }
 0x2ac   :  { %v1140_v19 = vpop.f32.mrf.mxu0 }
 0x2ae   :  { %v2949_v23 = vpop.f32.mrf.mxu0 }
 0x2b0   :  { %v814_v0 = vpop.xlane.xlu0 %813  ;;  %v3701_v25 = vpop.f32.mrf.mxu0 }
 0x2b1   :  { %v815_v26 = vsub.f32 %v805_v62, %v814_v0  ;;  %v1253_v27 = vsel %vm811_vm3, %v3701_v25, -inf }
 0x2b2   :  { %1254 = vmax.xlane.f32.xlu1 %v1253_v27  ;;  %v2960_v20 = vpop.f32.mrf.mxu0 }
 0x2b3   :  { %v816_v21 = vmul.f32 1.442695, %v815_v26 }
 0x2b4   :  { %v1250_v28 = vpop.f32.mrf.mxu0 }
 0x2b5   :  { %3136 = vpow2.f32 %v816_v21 }
 0x2b6   :  { %v2961_v30 = vpop.f32.mrf.mxu0 }
 0x2b8   :  { %v3705_v59 = vpop.f32.mrf.mxu0 }
 0x2b9   :  { %v1363_v31 = vsel %vm811_vm3, %v3705_v59, -inf }
 0x2ba   :  { %1364 = vmax.xlane.f32.xlu0 %v1363_v31  ;;  %v2972_v33 = vpop.f32.mrf.mxu0 }
 0x2bc   :  { %v1360_v32 = vpop.f32.mrf.mxu0 }
 0x2be   :  { %v2973_v34 = vpop.f32.mrf.mxu0 }
 0x2c0   :  { %v3709_v37 = vpop.f32.mrf.mxu0 }
 0x2c1   :  { %v1473_v40 = vsel %vm811_vm3, %v3709_v37, -inf }
 0x2c2   :  { %v3713_v35 = vpop.eup %3136  ;;  %1474 = vmax.xlane.f32.xlu1 %v1473_v40  ;;  %v2984_v36 = vpop.f32.mrf.mxu0 }
 0x2c3   :  { %v818_v46 = vsel %vm811_vm3, %v3713_v35, 0.0 }
 0x2c4   :  { %v1470_v44 = vpop.f32.mrf.mxu0 }
 0x2c6   :  { %819 = vadd.xlane.f32.xlu1 %v818_v46  ;;  %v2985_v3 = vpop.f32.mrf.mxu0 }
 0x2c8   :  { %v3717_v38 = vpop.f32.mrf.mxu0 }
 0x2c9   :  { %v1583_v51 = vsel %vm811_vm3, %v3717_v38, -inf }
 0x2ca   :  { %1584 = vmax.xlane.f32.xlu0 %v1583_v51  ;;  %v2996_v53 = vpop.f32.mrf.mxu0 }
 0x2cb   :  { %v3762_v53 = vrot.slane %v3583_v17, %v3500_v5 }
 0x2cc   :  { %v1580_v39 = vpop.f32.mrf.mxu0 }
 0x2cd   :  { %v704_v39 = vadd.f32 %v3587_v24, %v3762_v53 }
 0x2ce   :  { %v2997_v41 = vpop.f32.mrf.mxu0 }
 0x2cf   :  { %v3766_v41 = vpack.c.bf16 %v704_v39, %v704_v39 }
 0x2d0   :  { %v3721_v56 = vpop.f32.mrf.mxu0 }
 0x2d1   :  { %v1713_v62 = vsel %vm811_vm3, %v3721_v56, -inf }
 0x2d2   :  { %1714 = vmax.xlane.f32.xlu1 %v1713_v62  ;;  %v3008_v43 = vpop.f32.mrf.mxu0 }
 0x2d4   :  { %v1710_v45 = vpop.f32.mrf.mxu0 }
 0x2d6   :  { %v3009_v47 = vpop.f32.mrf.mxu0 }
 0x2d8   :  { %v3725_v48 = vpop.f32.mrf.mxu0 }
 0x2d9   :  { %v1823_v63 = vsel %vm811_vm3, %v3725_v48, -inf }
 0x2da   :  { %1824 = vmax.xlane.f32.xlu0 %v1823_v63  ;;  %v3020_v49 = vpop.f32.mrf.mxu0 }
 0x2dc   :  { %v1820_v50 = vpop.f32.mrf.mxu0 }
 0x2de   :  { %v3021_v52 = vpop.f32.mrf.mxu0 }
 0x2e0   :  { %v3729_v4 = vpop.f32.mrf.mxu0 }
 0x2e1   :  { %v1933_v54 = vsel %vm811_vm3, %v3729_v4, -inf }
 0x2e2   :  { %1934 = vmax.xlane.f32.xlu1 %v1933_v54  ;;  %v3032_v55 = vpop.f32.mrf.mxu0 }
 0x2e4   :  { %v1930_v7 = vpop.f32.mrf.mxu0 }
 0x2e6   :  { %v3033_v57 = vpop.f32.mrf.mxu0 }
 0x2e8   :  { %v3733_v58 = vpop.f32.mrf.mxu0 }
 0x2e9   :  { %v2043_v31 = vsel %vm811_vm3, %v3733_v58, -inf }
 0x2ea   :  { %v3044_v61 = vpop.f32.mrf.mxu0 }
 0x2ec   :  { %v2040_v1 = vpop.f32.mrf.mxu0 }
 0x2ee   :  { %v3045_v2 = vpop.f32.mrf.mxu0 }
 0x2f0   :  { %936 = vrot.lane.b32.xlu0 %v3591_v22, %s3384_s4  ;;  %v3737_v10 = vpop.f32.mrf.mxu0 }
 0x2f1   :  { %v2153_v33 = vsel %vm811_vm3, %v3737_v10, -inf }
 0x2f2   :  { %v3056_v8 = vpop.f32.mrf.mxu0 }
 0x2f4   :  { %v2150_v12 = vpop.f32.mrf.mxu0 }
 0x2f6   :  { %v3057_v13 = vpop.f32.mrf.mxu0 }
 0x2f8   :  { %v3739_v15 = vpop.f32.mrf.mxu0 }
 0x2f9   :  { %v2263_v32 = vsel %vm811_vm3, %v3739_v15, -inf }
 0x2fa   :  { %v3068_v16 = vpop.f32.mrf.mxu0 }
 0x2fc   :  { %v2260_v19 = vpop.f32.mrf.mxu0 }
 0x2fe   :  { %v3069_v23 = vpop.f32.mrf.mxu0 }
 0x300   :  { %v3741_v0 = vpop.f32.mrf.mxu0 }
 0x301   :  { %v2373_v34 = vsel %vm811_vm3, %v3741_v0, -inf }
 0x302   :  { %v3080_v26 = vpop.f32.mrf.mxu0 }
 0x304   :  { %v2370_v27 = vpop.f32.mrf.mxu0 }
 0x306   :  { %v3081_v20 = vpop.f32.mrf.mxu0 }
 0x308   :  { %v3743_v21 = vpop.f32.mrf.mxu0 }
 0x309   :  { %v2483_v40 = vsel %vm811_vm3, %v3743_v21, -inf }
 0x30a   :  { %v3092_v28 = vpop.f32.mrf.mxu0 }
 0x30c   :  { %v2480_v30 = vpop.f32.mrf.mxu0 }
 0x30e   :  { %v3093_v22 = vpop.f32.mrf.mxu0 }
 0x30f   :  { %2044 = vmax.xlane.f32.xlu0 %v2043_v31 }
 0x313   :  { %2154 = vmax.xlane.f32.xlu0 %v2153_v33 }
 0x317   :  { %2264 = vmax.xlane.f32.xlu0 %v2263_v32 }
 0x31b   :  { %2374 = vmax.xlane.f32.xlu0 %v2373_v34 }
 0x31f   :  { %2484 = vmax.xlane.f32.xlu0 %v2483_v40  ;;  %v744_v40 = vpop.f32.mrf.mxu1 }
 0x323   :  { %v925_v36 = vpop.xlane.xlu1 %924 }
 0x324   :  { %v926_v44 = vsub.f32 %v3689_v9, %v925_v36 }
 0x326   :  { %v927_v46 = vmul.f32 1.442695, %v926_v44 }
 0x328   :  { %3138 = vpow2.f32 %v927_v46 }
 0x32b   :  { %v1035_v62 = vpop.xlane.xlu0 %1034 }
 0x32c   :  { %v1036_v49 = vsub.f32 %v3693_v6, %v1035_v62 }
 0x32e   :  { %v1037_v54 = vmul.f32 1.442695, %v1036_v49 }
 0x333   :  { %v1145_v9 = vpop.xlane.xlu0 %1144 }
 0x334   :  { %v1146_v24 = vsub.f32 %v3697_v14, %v1145_v9 }
 0x335   :  { %v3756_v3 = vpop.eup %3138 }
 0x336   :  { %v929_v51 = vsel %vm811_vm3, %v3756_v3, 0.0  ;;  %v1147_v55 = vmul.f32 1.442695, %v1146_v24 }
 0x337   :  { %930 = vadd.xlane.f32.xlu1 %v929_v51 }
 0x33b   :  { %v1255_v43 = vpop.xlane.xlu1 %1254 }
 0x33c   :  { %v1256_v7 = vsub.f32 %v3701_v25, %v1255_v43 }
 0x33e   :  { %v1257_v61 = vmul.f32 1.442695, %v1256_v7 }
 0x343   :  { %v1365_v47 = vpop.xlane.xlu0 %1364 }
 0x344   :  { %v1366_v1 = vsub.f32 %v3705_v59, %v1365_v47  ;;  %v662_v47 = vrot.slane %v3583_v17, %v3511_v18 }
 0x346   :  { %v1367_v8 = vmul.f32 1.442695, %v1366_v1 }
 0x348   :  { %1156 = vrot.lane.b32.xlu1 %v3766_v41, %s3384_s4 }
 0x34b   :  { %v1475_v45 = vpop.xlane.xlu1 %1474 }
 0x34f   :  { %v820_v63 = vpop.xlane.xlu1 %819 }
 0x350   :  { %3140 = vrcp.f32 %v820_v63  ;;  %v746_v63 = vpop.f32.mrf.mxu1 }
 0x351   :  { %v747_v49 = vadd.f32 %v746_v63, %v662_v47 }
 0x353   :  { %v1585_v50 = vpop.xlane.xlu0 %1584 }
 0x354   :  { %v1586_v5 = vsub.f32 %v3717_v38, %v1585_v50  ;;  %v1476_v38 = vsub.f32 %v3709_v37, %v1475_v45  ;;  %v3832_v50 = vpack.c.bf16 %v747_v49, %v747_v49 }
 0x356   :  { %v1587_v52 = vmul.f32 1.442695, %v1586_v5  ;;  %v1477_v59 = vmul.f32 1.442695, %v1476_v38 }
 0x358   :  { %3142 = vpow2.f32 %v1587_v52 }
 0x359   :  { %3144 = vpow2.f32 %v1037_v54 }
 0x35a   :  { %3146 = vpow2.f32 %v1147_v55 }
 0x35b   :  { %3148 = vpow2.f32 %v1257_v61  ;;  %v1715_v12 = vpop.xlane.xlu1 %1714 }
 0x35c   :  { %3150 = vpow2.f32 %v1367_v8 }
 0x35d   :  { %v3141_v57 = vpop.eup %3140  ;;  %3152 = vpow2.f32 %v1477_v59 }
 0x35e   :  { %v822_v2 = vmul.f32 %v3141_v57, %v3713_v35  ;;  %v1716_v35 = vsub.f32 %v3721_v56, %v1715_v12 }
 0x360   :  { %v823_v6 = vpack.c.bf16 %v822_v2, %v822_v2  ;;  %v1717_v23 = vmul.f32 1.442695, %v1716_v35 }
 0x362   :  { %2917 = vmatmul.mubr.msk.bf16.vlgmr.msra.gmra.mxu1 %vm811_vm3, %v823_v6  ;;  %3154 = vpow2.f32 %v1717_v23 }
 0x363   :  { %v1825_v14 = vpop.xlane.xlu0 %1824  ;;  %2928 = vmatprep.mubr.msk.bf16.mxu1 %vm3383_vm0, %v3382_v60 }
 0x364   :  { %v1826_v26 = vsub.f32 %v3725_v48, %v1825_v14  ;;  %v3801_v48 = vrot.slane %v3583_v17, %v3507_v11 }
 0x365   :  { %v3780_v25 = vpop.eup %3142 }
 0x366   :  { %v1589_v13 = vsel %vm811_vm3, %v3780_v25, 0.0  ;;  %v3785_v19 = vpop.eup %3144  ;;  %v1827_v56 = vmul.f32 1.442695, %v1826_v26 }
 0x367   :  { %v937_v16 = vpop.permute.xlu0 %936  ;;  %1590 = vadd.xlane.f32.xlu0 %v1589_v13  ;;  %v1039_v27 = vsel %vm811_vm3, %v3785_v19, 0.0  ;;  %v3792_v20 = vpop.eup %3146  ;;  %v708_v13 = vadd.f32 %v3659_v42, %v3762_v53 }
 0x368   :  { %v942_v37 = vsel %vm827_vm2, %v937_v16, 0  ;;  %v1149_v22 = vsel %vm811_vm3, %v3792_v20, 0.0  ;;  %v3797_v31 = vpop.eup %3148  ;;  %3156 = vpow2.f32 %v1827_v56  ;;  %v748_v16 = vpop.f32.mrf.mxu1 }
 0x369   :  { %2927 = vmatpush3.bf16.msra.mxu1 %v942_v37  ;;  %v1259_v32 = vsel %vm811_vm3, %v3797_v31, 0.0  ;;  %v3805_v34 = vpop.eup %3150  ;;  %v3863_v37 = vpack.c.bf16 %v708_v13, %v708_v13 }
 0x36a   :  { %2938 = vmatprep.subr.bf16.mxu1 %v3382_v60  ;;  %v1369_v36 = vsel %vm811_vm3, %v3805_v34, 0.0  ;;  %v3810_v44 = vpop.eup %3152  ;;  %v750_v56 = vpop.f32.mrf.mxu1 }
 0x36b   :  { %v1935_v28 = vpop.xlane.xlu1 %1934  ;;  %v1479_v46 = vsel %vm811_vm3, %v3810_v44, 0.0 }
 0x36c   :  { %1040 = vadd.xlane.f32.xlu1 %v1039_v27  ;;  %v1936_v30 = vsub.f32 %v3729_v4, %v1935_v28  ;;  %v745_v4 = vadd.f32 %v744_v40, %v3801_v48 }
 0x36e   :  { %v1937_v33 = vmul.f32 1.442695, %v1936_v30  ;;  %v3812_v11 = vpack.c.bf16 %v745_v4, %v745_v4 }
 0x36f   :  { %v3816_v51 = vpop.eup %3154 }
 0x370   :  { %1150 = vadd.xlane.f32.xlu1 %v1149_v22  ;;  %3158 = vpow2.f32 %v1937_v33  ;;  %v1719_v39 = vsel %vm811_vm3, %v3816_v51, 0.0  ;;  %v1049_v22 = vsel %vm827_vm2, %v3766_v41, 0 }
 0x374   :  { %1260 = vadd.xlane.f32.xlu1 %v1259_v32 }
 0x375   :  { %v3822_v62 = vpop.eup %3156 }
 0x376   :  { %v1829_v43 = vsel %vm811_vm3, %v3822_v62, 0.0 }
 0x378   :  { %1370 = vadd.xlane.f32.xlu1 %v1369_v36 }
 0x37c   :  { %1480 = vadd.xlane.f32.xlu1 %v1479_v46 }
 0x37d   :  { %1376 = vrot.lane.b32.xlu0 %v3812_v11, %s3384_s4  ;;  %v3826_v9 = vpop.eup %3158 }
 0x37e   :  { %v1939_v45 = vsel %vm811_vm3, %v3826_v9, 0.0 }
 0x380   :  { %1720 = vadd.xlane.f32.xlu1 %v1719_v39 }
 0x384   :  { %1830 = vadd.xlane.f32.xlu1 %v1829_v43 }
 0x388   :  { %1940 = vadd.xlane.f32.xlu1 %v1939_v45 }
 0x398   :  { %v2045_v5 = vpop.xlane.xlu0 %2044 }
 0x399   :  { %v2046_v52 = vsub.f32 %v3733_v58, %v2045_v5  ;;  %1596 = vrot.lane.b32.xlu1 %v3832_v50, %s3384_s4 }
 0x39b   :  { %v2047_v54 = vmul.f32 1.442695, %v2046_v52 }
 0x39c   :  { %v2155_v24 = vpop.xlane.xlu0 %2154 }
 0x39d   :  { %3160 = vpow2.f32 %v2047_v54  ;;  %v2156_v7 = vsub.f32 %v3737_v10, %v2155_v24 }
 0x39f   :  { %v2157_v61 = vmul.f32 1.442695, %v2156_v7 }
 0x3a0   :  { %v2265_v55 = vpop.xlane.xlu0 %2264 }
 0x3a1   :  { %v2266_v18 = vsub.f32 %v3739_v15, %v2265_v55  ;;  %3162 = vpow2.f32 %v2157_v61 }
 0x3a3   :  { %v2267_v58 = vmul.f32 1.442695, %v2266_v18 }
 0x3a4   :  { %v2375_v57 = vpop.xlane.xlu0 %2374 }
 0x3a5   :  { %v2376_v2 = vsub.f32 %v3741_v0, %v2375_v57  ;;  %3164 = vpow2.f32 %v2267_v58  ;;  %v3853_v0 = vpack.c.bf16 %v3589_v29, %v3589_v29  ;;  %v749_v29 = vadd.f32 %v748_v16, %v3801_v48 }
 0x3a6   :  { %v751_v48 = vadd.f32 %v750_v56, %v662_v47  ;;  %v1489_v58 = vsel %vm827_vm2, %v3832_v50, 0 }
 0x3a7   :  { %v2377_v8 = vmul.f32 1.442695, %v2376_v2  ;;  %v3872_v53 = vpack.c.bf16 %v749_v29, %v749_v29  ;;  %v1729_v16 = vsel %vm827_vm2, %v3853_v0, 0 }
 0x3a8   :  { %v2485_v6 = vpop.xlane.xlu0 %2484  ;;  %v3885_v33 = vpack.c.bf16 %v751_v48, %v751_v48 }
 0x3a9   :  { %v2486_v38 = vsub.f32 %v3743_v21, %v2485_v6  ;;  %3166 = vpow2.f32 %v2377_v8 }
 0x3aa   :  { %v3839_v17 = vpop.eup %3160 }
 0x3ab   :  { %v2049_v1 = vsel %vm811_vm3, %v3839_v17, 0.0  ;;  %v2487_v10 = vmul.f32 1.442695, %v2486_v38 }
 0x3ac   :  { %2050 = vadd.xlane.f32.xlu0 %v2049_v1 }
 0x3ad   :  { %3168 = vpow2.f32 %v2487_v10 }
 0x3ae   :  { %v3845_v14 = vpop.eup %3162 }
 0x3af   :  { %v2159_v15 = vsel %vm811_vm3, %v3845_v14, 0.0 }
 0x3b2   :  { %v3849_v12 = vpop.eup %3164 }
 0x3b3   :  { %v2269_v21 = vsel %vm811_vm3, %v3849_v12, 0.0 }
 0x3b6   :  { %v3859_v35 = vpop.eup %3166 }
 0x3b7   :  { %v2379_v23 = vsel %vm811_vm3, %v3859_v35, 0.0 }
 0x3ba   :  { %v3868_v42 = vpop.eup %3168 }
 0x3bb   :  { %v2489_v26 = vsel %vm811_vm3, %v3868_v42, 0.0 }
 0x3bd   :  { %2160 = vadd.xlane.f32.xlu1 %v2159_v15 }
 0x3c0   :  { %v931_v59 = vpop.xlane.xlu1 %930 }
 0x3c1   :  { %3170 = vrcp.f32 %v931_v59  ;;  %2270 = vadd.xlane.f32.xlu1 %v2269_v21 }
 0x3c2   :  { %1836 = vrot.lane.b32.xlu0 %v3853_v0, %s3384_s4 }
 0x3c5   :  { %2380 = vadd.xlane.f32.xlu1 %v2379_v23 }
 0x3c6   :  { %2056 = vrot.lane.b32.xlu0 %v3863_v37, %s3384_s4 }
 0x3c9   :  { %2490 = vadd.xlane.f32.xlu1 %v2489_v26 }
 0x3ca   :  { %2276 = vrot.lane.b32.xlu0 %v3872_v53, %s3384_s4 }
 0x3ce   :  { %v3171_v27 = vpop.eup %3170 }
 0x3cf   :  { %v933_v28 = vmul.f32 %v3171_v27, %v3756_v3  ;;  %v1157_v3 = vpop.permute.xlu1 %1156 }
 0x3d0   :  { %v1162_v45 = vsel %vm827_vm2, %v1157_v3, 0 }
 0x3d1   :  { %v934_v30 = vpack.c.bf16 %v933_v28, %v933_v28 }
 0x3d3   :  { %2929 = vmatmul.mubr.msk.bf16.vlgmr.msra.gmra.mxu1 %vm811_vm3, %v934_v30  ;;  %v1949_v30 = vsel %vm827_vm2, %v3863_v37, 0 }
 0x3d4   :  { %2939 = vmatpush3.bf16.msra.mxu1 %v1049_v22  ;;  %2940 = vmatprep.mubr.msk.bf16.mxu1 %vm3383_vm0, %v3382_v60 }
 0x3d5   :  { %2950 = vmatprep.subr.bf16.mxu1 %v3382_v60 }
 0x3da   :  { %2496 = vrot.lane.b32.xlu1 %v3885_v33, %s3384_s4 }
 0x3f0   :  { %v1591_v52 = vpop.xlane.xlu0 %1590 }
 0x3f5   :  { %v1041_v32 = vpop.xlane.xlu1 %1040 }
 0x3f6   :  { %3172 = vrcp.f32 %v1041_v32 }
 0x3f9   :  { %v1151_v40 = vpop.xlane.xlu1 %1150 }
 0x3fa   :  { %3174 = vrcp.f32 %v1151_v40 }
 0x3fd   :  { %v1261_v41 = vpop.xlane.xlu1 %1260 }
 0x3fe   :  { %3176 = vrcp.f32 %v1261_v41 }
 0x401   :  { %v1371_v43 = vpop.xlane.xlu1 %1370 }
 0x402   :  { %3178 = vrcp.f32 %v1371_v43 }
 0x403   :  { %v3173_v4 = vpop.eup %3172 }
 0x404   :  { %v1043_v36 = vmul.f32 %v3173_v4, %v3785_v19  ;;  %v1269_v19 = vsel %vm827_vm2, %v3812_v11, 0  ;;  %v2169_v4 = vsel %vm827_vm2, %v3872_v53, 0 }
 0x405   :  { %v1481_v63 = vpop.xlane.xlu1 %1480 }
 0x406   :  { %v1044_v46 = vpack.c.bf16 %v1043_v36, %v1043_v36  ;;  %3180 = vrcp.f32 %v1481_v63 }
 0x407   :  { %v3175_v39 = vpop.eup %3174  ;;  %3182 = vrcp.f32 %v1591_v52 }
 0x408   :  { %2941 = vmatmul.mubr.msk.bf16.vlgmr.msra.gmra.mxu1 %vm811_vm3, %v1044_v46  ;;  %v1153_v47 = vmul.f32 %v3175_v39, %v3792_v20  ;;  %v1377_v20 = vpop.permute.xlu0 %1376 }
 0x409   :  { %2951 = vmatpush3.bf16.msra.mxu1 %v1162_v45  ;;  %2952 = vmatprep.mubr.msk.bf16.mxu1 %vm3383_vm0, %v3382_v60  ;;  %v1721_v24 = vpop.xlane.xlu1 %1720  ;;  %v1382_v57 = vsel %vm827_vm2, %v1377_v20, 0 }
 0x40a   :  { %2962 = vmatprep.subr.bf16.mxu1 %v3382_v60  ;;  %v1154_v49 = vpack.c.bf16 %v1153_v47, %v1153_v47  ;;  %3184 = vrcp.f32 %v1721_v24 }
 0x40b   :  { %v3177_v5 = vpop.eup %3176 }
 0x40c   :  { %v1263_v54 = vmul.f32 %v3177_v5, %v3797_v31 }
 0x40d   :  { %v1831_v11 = vpop.xlane.xlu1 %1830 }
 0x40e   :  { %v1264_v55 = vpack.c.bf16 %v1263_v54, %v1263_v54  ;;  %3186 = vrcp.f32 %v1831_v11 }
 0x40f   :  { %v3179_v7 = vpop.eup %3178 }
 0x410   :  { %2953 = vmatmul.mubr.msk.bf16.vlgmr.msra.gmra.mxu1 %vm811_vm3, %v1154_v49  ;;  %v1373_v61 = vmul.f32 %v3179_v7, %v3805_v34 }
 0x411   :  { %2963 = vmatpush3.bf16.msra.mxu1 %v1269_v19  ;;  %2964 = vmatprep.mubr.msk.bf16.mxu1 %vm3383_vm0, %v3382_v60  ;;  %v1941_v1 = vpop.xlane.xlu1 %1940 }
 0x412   :  { %2974 = vmatprep.subr.bf16.mxu1 %v3382_v60  ;;  %v1374_v18 = vpack.c.bf16 %v1373_v61, %v1373_v61  ;;  %3188 = vrcp.f32 %v1941_v1 }
 0x413   :  { %v3181_v31 = vpop.eup %3180 }
 0x414   :  { %v1483_v2 = vmul.f32 %v3181_v31, %v3810_v44  ;;  %v3183_v10 = vpop.eup %3182 }
 0x415   :  { %v1597_v34 = vpop.permute.xlu1 %1596  ;;  %v1593_v44 = vmul.f32 %v3183_v10, %v3780_v25 }
 0x416   :  { %v1484_v38 = vpack.c.bf16 %v1483_v2, %v1483_v2  ;;  %v1602_v50 = vsel %vm827_vm2, %v1597_v34, 0 }
 0x417   :  { %v1594_v59 = vpack.c.bf16 %v1593_v44, %v1593_v44  ;;  %v3185_v21 = vpop.eup %3184 }
 0x418   :  { %2965 = vmatmul.mubr.msk.bf16.vlgmr.msra.gmra.mxu1 %vm811_vm3, %v1264_v55  ;;  %v1723_v29 = vmul.f32 %v3185_v21, %v3816_v51  ;;  %v2599_v21 = vld [vmem:[#allocation13 + $0xf8] sm:$0xff] }
 0x419   :  { %2975 = vmatpush3.bf16.msra.mxu1 %v1382_v57  ;;  %2976 = vmatprep.mubr.msk.bf16.mxu1 %vm3383_vm0, %v3382_v60 }
 0x41a   :  { %2986 = vmatprep.subr.bf16.mxu1 %v3382_v60  ;;  %v1724_v26 = vpack.c.bf16 %v1723_v29, %v1723_v29 }
 0x41b   :  { %v3187_v27 = vpop.eup %3186 }
 0x41c   :  { %v1833_v28 = vmul.f32 %v3187_v27, %v3822_v62  ;;  %v2583_v27 = vld [vmem:[#allocation13 + $0x78] sm:$0xff] }
 0x41e   :  { %v1834_v51 = vpack.c.bf16 %v1833_v28, %v1833_v28 }
 0x41f   :  { %v3189_v56 = vpop.eup %3188 }
 0x420   :  { %2977 = vmatmul.mubr.msk.bf16.vlgmr.msra.gmra.mxu1 %vm811_vm3, %v1374_v18  ;;  %v1943_v22 = vmul.f32 %v3189_v56, %v3826_v9  ;;  %v2615_v56 = vld [vmem:[#allocation13 + $0x178] sm:$0xff] }
 0x421   :  { %2987 = vmatpush3.bf16.msra.mxu1 %v1489_v58  ;;  %2988 = vmatprep.mubr.msk.bf16.mxu1 %vm3383_vm0, %v3382_v60 }
 0x422   :  { %2998 = vmatprep.subr.bf16.mxu1 %v3382_v60  ;;  %v3916_v6 = vpop.f32.mrf.mxu1  ;;  %v1944_v3 = vpack.c.bf16 %v1943_v22, %v1943_v22 }
 0x424   :  { %v2918_v8 = vpop.f32.mrf.mxu1 }
 0x426   :  { %v868_v15 = vpop.f32.mrf.mxu1 }
 0x428   :  { %2989 = vmatmul.mubr.msk.bf16.vlgmr.msra.gmra.mxu1 %vm811_vm3, %v1484_v38  ;;  %v2919_v13 = vpop.f32.mrf.mxu1 }
 0x429   :  { %2999 = vmatpush3.bf16.msra.mxu1 %v1602_v50  ;;  %3000 = vmatprep.mubr.msk.bf16.mxu1 %vm3383_vm0, %v3382_v60 }
 0x42a   :  { %3010 = vmatprep.subr.bf16.mxu1 %v3382_v60 }
 0x430   :  { %3001 = vmatmul.mubr.msk.bf16.vlgmr.msra.gmra.mxu1 %vm811_vm3, %v1594_v59  ;;  %v2598_v59 = vld [vmem:[#allocation13 + $0xf0] sm:$0xff] }
 0x431   :  { %3011 = vmatpush3.bf16.msra.mxu1 %v1729_v16  ;;  %3012 = vmatprep.mubr.msk.bf16.mxu1 %vm3383_vm0, %v3382_v60  ;;  %v2630_v16 = vld [vmem:[#allocation13 + $0x1f0] sm:$0xff]  ;;  %v2647_v29 = vpack.c.bf16 %v2599_v21, %v2598_v59  ;;  %v2575_v21 = vld [vmem:[#allocation13 + $0x38] sm:$0xff] }
 0x432   :  { %3022 = vmatprep.subr.bf16.mxu1 %v3382_v60  ;;  %v2574_v59 = vld [vmem:[#allocation13 + $0x30] sm:$0xff] }
 0x433   :  { %2864 = vmatprep.subr.bf16.mxu0 %v2647_v29 }
 0x435   :  { %v2051_v23 = vpop.xlane.xlu0 %2050 }
 0x436   :  { %3190 = vrcp.f32 %v2051_v23  ;;  %v2631_v23 = vld [vmem:[#allocation13 + $0x1f8] sm:$0xff] }
 0x438   :  { %3013 = vmatmul.mubr.msk.bf16.vlgmr.msra.gmra.mxu1 %vm811_vm3, %v1724_v26  ;;  %v2582_v26 = vld [vmem:[#allocation13 + $0x70] sm:$0xff] }
 0x439   :  { %v1837_v25 = vpop.permute.xlu0 %1836  ;;  %3024 = vmatprep.mubr.msk.bf16.mxu1 %vm3383_vm0, %v3382_v60  ;;  %v2639_v28 = vpack.c.bf16 %v2583_v27, %v2582_v26  ;;  %v2607_v26 = vld [vmem:[#allocation13 + $0x138] sm:$0xff]  ;;  %v2589_v27 = vld [vmem:[#allocation13 + $0xa8] sm:$0xff] }
 0x43a   :  { %v1842_v0 = vsel %vm827_vm2, %v1837_v25, 0 }
 0x43b   :  { %3023 = vmatpush3.bf16.msra.mxu1 %v1842_v0  ;;  %v2663_v0 = vpack.c.bf16 %v2631_v23, %v2630_v16  ;;  %2865 = vmatpush3.bf16.msra.mxu0 %v2639_v28  ;;  %v2606_v16 = vld [vmem:[#allocation13 + $0x130] sm:$0xff]  ;;  %v2621_v28 = vld [vmem:[#allocation13 + $0x1a8] sm:$0xff] }
 0x43c   :  { %3034 = vmatprep.subr.bf16.mxu1 %v3382_v60 }
 0x43d   :  { %v2057_v48 = vpop.permute.xlu0 %2056 }
 0x43e   :  { %v2062_v40 = vsel %vm827_vm2, %v2057_v48, 0  ;;  %v2597_v48 = vld [vmem:[#allocation13 + $0xe8] sm:$0xff] }
 0x440   :  { %3025 = vmatmul.mubr.msk.bf16.vlgmr.msra.gmra.mxu1 %vm811_vm3, %v1834_v51  ;;  %v2614_v51 = vld [vmem:[#allocation13 + $0x170] sm:$0xff] }
 0x441   :  { %3035 = vmatpush3.bf16.msra.mxu1 %v1949_v30  ;;  %3036 = vmatprep.mubr.msk.bf16.mxu1 %vm3383_vm0, %v3382_v60  ;;  %v2277_v43 = vpop.permute.xlu0 %2276  ;;  %v2596_v30 = vld [vmem:[#allocation13 + $0xe0] sm:$0xff]  ;;  %v2655_v22 = vpack.c.bf16 %v2615_v56, %v2614_v51  ;;  %v2635_v56 = vpack.c.bf16 %v2575_v21, %v2574_v59 }
 0x442   :  { %3046 = vmatprep.subr.bf16.mxu1 %v3382_v60  ;;  %v2282_v63 = vsel %vm827_vm2, %v2277_v43, 0  ;;  %v2595_v43 = vld [vmem:[#allocation13 + $0xd8] sm:$0xff]  ;;  %v2616_v59 = vld [vmem:[#allocation13 + $0x180] sm:$0xff] }
 0x443   :  { %v3191_v32 = vpop.eup %3190 }
 0x444   :  { %v2053_v41 = vmul.f32 %v3191_v32, %v3839_v17 }
 0x446   :  { %v2161_v62 = vpop.xlane.xlu1 %2160  ;;  %v2054_v9 = vpack.c.bf16 %v2053_v41, %v2053_v41  ;;  %v2580_v41 = vld [vmem:[#allocation13 + $0x60] sm:$0xff] }
 0x447   :  { %3192 = vrcp.f32 %v2161_v62  ;;  %v2628_v62 = vld [vmem:[#allocation13 + $0x1e0] sm:$0xff] }
 0x448   :  { %3037 = vmatmul.mubr.msk.bf16.vlgmr.msra.gmra.mxu1 %vm811_vm3, %v1944_v3  ;;  %v2629_v3 = vld [vmem:[#allocation13 + $0x1e8] sm:$0xff] }
 0x449   :  { %3047 = vmatpush3.bf16.msra.mxu1 %v2062_v40  ;;  %3048 = vmatprep.mubr.msk.bf16.mxu1 %vm3383_vm0, %v3382_v60  ;;  %v2646_v40 = vpack.c.bf16 %v2597_v48, %v2596_v30  ;;  %v2651_v30 = vpack.c.bf16 %v2607_v26, %v2606_v16  ;;  %v2572_v48 = vld [vmem:[#allocation13 + $0x20] sm:$0xff]  ;;  %v2569_v26 = vld [vmem:[#allocation13 + $0x8] sm:$0xff] }
 0x44a   :  { %v2271_v37 = vpop.xlane.xlu1 %2270  ;;  %3058 = vmatprep.subr.bf16.mxu1 %v3382_v60 }
 0x44b   :  { %3194 = vrcp.f32 %v2271_v37  ;;  %v2662_v37 = vpack.c.bf16 %v2629_v3, %v2628_v62  ;;  %2866 = vmatprep.subr.bf16.mxu0 %v2646_v40  ;;  %v2573_v62 = vld [vmem:[#allocation13 + $0x28] sm:$0xff]  ;;  %v2604_v40 = vld [vmem:[#allocation13 + $0x120] sm:$0xff] }
 0x44e   :  { %v2381_v36 = vpop.xlane.xlu1 %2380 }
 0x44f   :  { %3196 = vrcp.f32 %v2381_v36 }
 0x450   :  { %3049 = vmatmul.mubr.msk.bf16.vlgmr.msra.gmra.mxu1 %vm811_vm3, %v2054_v9  ;;  %v2581_v9 = vld [vmem:[#allocation13 + $0x68] sm:$0xff] }
 0x451   :  { %3059 = vmatpush3.bf16.msra.mxu1 %v2169_v4  ;;  %3060 = vmatprep.mubr.msk.bf16.mxu1 %vm3383_vm0, %v3382_v60  ;;  %v2612_v4 = vld [vmem:[#allocation13 + $0x160] sm:$0xff]  ;;  %v2638_v36 = vpack.c.bf16 %v2581_v9, %v2580_v41  ;;  %v2634_v9 = vpack.c.bf16 %v2573_v62, %v2572_v48 }
 0x452   :  { %3070 = vmatprep.subr.bf16.mxu1 %v3382_v60  ;;  %v2491_v47 = vpop.xlane.xlu1 %2490 }
 0x453   :  { %3198 = vrcp.f32 %v2491_v47  ;;  %2867 = vmatpush3.bf16.msra.mxu0 %v2638_v36 }
 0x454   :  { %v3193_v46 = vpop.eup %3192 }
 0x455   :  { %v2163_v39 = vmul.f32 %v3193_v46, %v3845_v14  ;;  %v2389_v14 = vsel %vm827_vm2, %v3885_v33, 0  ;;  %v2613_v46 = vld [vmem:[#allocation13 + $0x168] sm:$0xff] }
 0x456   :  { %v2497_v52 = vpop.permute.xlu1 %2496 }
 0x457   :  { %v2164_v17 = vpack.c.bf16 %v2163_v39, %v2163_v39  ;;  %v2594_v39 = vld [vmem:[#allocation13 + $0xd0] sm:$0xff] }
 0x458   :  { %v3195_v45 = vpop.eup %3194  ;;  %v2645_v47 = vpack.c.bf16 %v2595_v43, %v2594_v39 }
 0x459   :  { %3061 = vmatmul.mubr.msk.bf16.vlgmr.msra.gmra.mxu1 %vm811_vm3, %v2164_v17  ;;  %v2273_v53 = vmul.f32 %v3195_v45, %v3849_v12  ;;  %v2502_v12 = vsel %vm827_vm2, %v2497_v52, 0  ;;  %v2654_v45 = vpack.c.bf16 %v2613_v46, %v2612_v4  ;;  %v2611_v52 = vld [vmem:[#allocation13 + $0x158] sm:$0xff] }
 0x45a   :  { %3071 = vmatpush3.bf16.msra.mxu1 %v2282_v63  ;;  %3072 = vmatprep.mubr.msk.bf16.mxu1 %vm3383_vm0, %v3382_v60  ;;  %v2626_v63 = vld [vmem:[#allocation13 + $0x1d0] sm:$0xff] }
 0x45b   :  { %3082 = vmatprep.subr.bf16.mxu1 %v3382_v60  ;;  %v2274_v49 = vpack.c.bf16 %v2273_v53, %v2273_v53  ;;  %v2627_v53 = vld [vmem:[#allocation13 + $0x1d8] sm:$0xff]  ;;  %2868 = vmatprep.subr.bf16.mxu0 %v2645_v47 }
 0x45c   :  { %v3197_v5 = vpop.eup %3196 }
 0x45d   :  { %v2383_v19 = vmul.f32 %v3197_v5, %v3859_v35  ;;  %v2661_v5 = vpack.c.bf16 %v2627_v53, %v2626_v63 }
 0x45f   :  { %v2384_v54 = vpack.c.bf16 %v2383_v19, %v2383_v19  ;;  %v2610_v19 = vld [vmem:[#allocation13 + $0x150] sm:$0xff] }
 0x460   :  { %v3199_v24 = vpop.eup %3198 }
 0x461   :  { %3073 = vmatmul.mubr.msk.bf16.vlgmr.msra.gmra.mxu1 %vm811_vm3, %v2274_v49  ;;  %v2493_v33 = vmul.f32 %v3199_v24, %v3868_v42  ;;  %v2578_v49 = vld [vmem:[#allocation13 + $0x50] sm:$0xff] }
 0x462   :  { %3083 = vmatpush3.bf16.msra.mxu1 %v2389_v14  ;;  %3084 = vmatprep.mubr.msk.bf16.mxu1 %vm3383_vm0, %v3382_v60  ;;  %v2579_v14 = vld [vmem:[#allocation13 + $0x58] sm:$0xff] }
 0x463   :  { %3094 = vmatprep.subr.bf16.mxu1 %v3382_v60  ;;  %v2494_v20 = vpack.c.bf16 %v2493_v33, %v2493_v33  ;;  %v2637_v24 = vpack.c.bf16 %v2579_v14, %v2578_v49  ;;  %v2593_v33 = vld [vmem:[#allocation13 + $0xc8] sm:$0xff] }
 0x465   :  { %2869 = vmatpush3.bf16.msra.mxu0 %v2637_v24 }
 0x469   :  { %3085 = vmatmul.mubr.msk.bf16.vlgmr.msra.gmra.mxu1 %vm811_vm3, %v2384_v54 }
 0x46a   :  { %3095 = vmatpush3.bf16.msra.mxu1 %v2502_v12  ;;  %3096 = vmatprep.mubr.msk.bf16.mxu1 %vm3383_vm0, %v3382_v60  ;;  %v2592_v12 = vld [vmem:[#allocation13 + $0xc0] sm:$0xff] }
 0x46b   :  { %2886 = vmatprep.subr.bf16.mxu1 %v2663_v0  ;;  %v2620_v0 = vld [vmem:[#allocation13 + $0x1a0] sm:$0xff] }
 0x471   :  { %3097 = vmatmul.mubr.msk.bf16.vlgmr.msra.gmra.mxu1 %vm811_vm3, %v2494_v20  ;;  %v2624_v20 = vld [vmem:[#allocation13 + $0x1c0] sm:$0xff] }
 0x472   :  { %2887 = vmatpush3.bf16.msra.mxu1 %v2655_v22 }
 0x473   :  { %2888 = vmatprep.subr.bf16.mxu1 %v2662_v37  ;;  %v2605_v37 = vld [vmem:[#allocation13 + $0x128] sm:$0xff] }
 0x474   :  { %v2650_v4 = vpack.c.bf16 %v2605_v37, %v2604_v40 }
 0x476   :  { %2889 = vmatpush3.bf16.msra.mxu1 %v2654_v45 }
 0x477   :  { %2890 = vmatprep.subr.bf16.mxu1 %v2661_v5 }
 0x493   :  { %v978_v55 = vpop.f32.mrf.mxu1 }
 0x495   :  { %v2930_v7 = vpop.f32.mrf.mxu1 }
 0x496   :  { %v2625_v7 = vld [vmem:[#allocation13 + $0x1c8] sm:$0xff] }
 0x497   :  { %v981_v57 = vpop.f32.mrf.mxu1 }
 0x498   :  { %v2576_v57 = vld [vmem:[#allocation13 + $0x40] sm:$0xff] }
 0x499   :  { %v2931_v35 = vpop.f32.mrf.mxu1 }
 0x49a   :  { %v2577_v35 = vld [vmem:[#allocation13 + $0x48] sm:$0xff] }
 0x4c8   :  { %v3976_v11 = vpop.f32.mrf.mxu1 }
 0x4ca   :  { %v2942_v61 = vpop.f32.mrf.mxu1 }
 0x4cc   :  { %v1088_v18 = vpop.f32.mrf.mxu1 }
 0x4cd   :  { %v2644_v18 = vpack.c.bf16 %v2593_v33, %v2592_v12 }
 0x4ce   :  { %v2943_v31 = vpop.f32.mrf.mxu1 }
 0x4cf   :  { %v2660_v31 = vpack.c.bf16 %v2625_v7, %v2624_v20  ;;  %2870 = vmatprep.subr.bf16.mxu0 %v2644_v18 }
 0x4d0   :  { %v3978_v1 = vpop.f32.mrf.mxu1 }
 0x4d2   :  { %v2954_v58 = vpop.f32.mrf.mxu1 }
 0x4d3   :  { %v2608_v58 = vld [vmem:[#allocation13 + $0x140] sm:$0xff] }
 0x4d4   :  { %v1201_v2 = vpop.f32.mrf.mxu1 }
 0x4d5   :  { %v2609_v2 = vld [vmem:[#allocation13 + $0x148] sm:$0xff] }
 0x4d6   :  { %v2955_v34 = vpop.f32.mrf.mxu1 }
 0x4d7   :  { %v2590_v34 = vld [vmem:[#allocation13 + $0xb0] sm:$0xff] }
 0x4d8   :  { %v3980_v60 = vpop.f32.mrf.mxu1 }
 0x4da   :  { %v2966_v42 = vpop.f32.mrf.mxu1 }
 0x4dc   :  { %v1308_v8 = vpop.f32.mrf.mxu1 }
 0x4dd   :  { %v2591_v8 = vld [vmem:[#allocation13 + $0xb8] sm:$0xff] }
 0x4de   :  { %v2967_v38 = vpop.f32.mrf.mxu1 }
 0x4df   :  { %v2622_v38 = vld [vmem:[#allocation13 + $0x1b0] sm:$0xff] }
 0x4e0   :  { %v1418_v10 = vpop.f32.mrf.mxu1 }
 0x4e1   :  { %v3116_v15 = vpack.i.bf16 %v1418_v10, %v978_v55  ;;  %v2653_v55 = vpack.c.bf16 %v2611_v52, %v2610_v19  ;;  %v2623_v10 = vld [vmem:[#allocation13 + $0x1b8] sm:$0xff] }
 0x4e2   :  { %v2978_v50 = vpop.f32.mrf.mxu1  ;;  %v2659_v23 = vpack.c.bf16 %v2623_v10, %v2622_v38  ;;  %v2602_v38 = vld [vmem:[#allocation13 + $0x110] sm:$0xff]  ;;  %v2603_v10 = vld [vmem:[#allocation13 + $0x118] sm:$0xff] }
 0x4e3   :  { %3117 = vrot.lane.b32.xlu0 %v3116_v15, %s3384_s4  ;;  %v2636_v50 = vpack.c.bf16 %v2577_v35, %v2576_v57  ;;  %2891 = vmatpush3.bf16.msra.mxu1 %v2653_v55  ;;  %v2586_v57 = vld [vmem:[#allocation13 + $0x90] sm:$0xff]  ;;  %v2587_v35 = vld [vmem:[#allocation13 + $0x98] sm:$0xff] }
 0x4e4   :  { %v1421_v13 = vpop.f32.mrf.mxu1  ;;  %2892 = vmatprep.subr.bf16.mxu1 %v2660_v31  ;;  %v2641_v31 = vpack.c.bf16 %v2587_v35, %v2586_v57 }
 0x4e5   :  { %v2652_v13 = vpack.c.bf16 %v2609_v2, %v2608_v58  ;;  %2871 = vmatpush3.bf16.msra.mxu0 %v2636_v50  ;;  %v2619_v58 = vld [vmem:[#allocation13 + $0x198] sm:$0xff]  ;;  %v2570_v2 = vld [vmem:[#allocation13 + $0x10] sm:$0xff]  ;;  %v2649_v50 = vpack.c.bf16 %v2603_v10, %v2602_v38 }
 0x4e6   :  { %v2979_v44 = vpop.f32.mrf.mxu1 }
 0x4e7   :  { %v2643_v44 = vpack.c.bf16 %v2591_v8, %v2590_v34  ;;  %2893 = vmatpush3.bf16.msra.mxu1 %v2652_v13  ;;  %v2571_v34 = vld [vmem:[#allocation13 + $0x18] sm:$0xff]  ;;  %v2584_v13 = vld [vmem:[#allocation13 + $0x80] sm:$0xff] }
 0x4e8   :  { %v3983_v25 = vpop.f32.mrf.mxu1  ;;  %2894 = vmatprep.subr.bf16.mxu1 %v2659_v23  ;;  %v2633_v8 = vpack.c.bf16 %v2571_v34, %v2570_v2  ;;  %v2568_v23 = vld [vmem:[#allocation13] sm:$0xff] }
 0x4e9   :  { %2872 = vmatprep.subr.bf16.mxu0 %v2643_v44  ;;  %v2585_v44 = vld [vmem:[#allocation13 + $0x88] sm:$0xff] }
 0x4ea   :  { %v2990_v32 = vpop.f32.mrf.mxu1  ;;  %2873 = vmatpush3.bf16.msra.mxu0 %v2635_v56  ;;  %v2640_v16 = vpack.c.bf16 %v2585_v44, %v2584_v13 }
 0x4eb   :  { %v2658_v32 = vpack.c.bf16 %v2621_v28, %v2620_v0  ;;  %2895 = vmatpush3.bf16.msra.mxu1 %v2651_v30  ;;  %v2600_v0 = vld [vmem:[#allocation13 + $0x100] sm:$0xff]  ;;  %v2601_v28 = vld [vmem:[#allocation13 + $0x108] sm:$0xff] }
 0x4ec   :  { %v1528_v17 = vpop.f32.mrf.mxu1  ;;  %v2648_v56 = vpack.c.bf16 %v2601_v28, %v2600_v0 }
 0x4ed   :  { %2896 = vmatprep.subr.bf16.mxu1 %v2658_v32 }
 0x4ee   :  { %v2991_v54 = vpop.f32.mrf.mxu1 }
 0x4ef   :  { %2897 = vmatpush3.bf16.msra.mxu1 %v2650_v4 }
 0x4f0   :  { %v1638_v61 = vpop.f32.mrf.mxu1 }
 0x4f1   :  { %v3121_v42 = vpack.i.bf16 %v1638_v61, %v3978_v1  ;;  %v2588_v1 = vld [vmem:[#allocation13 + $0xa0] sm:$0xff]  ;;  %v2618_v61 = vld [vmem:[#allocation13 + $0x190] sm:$0xff] }
 0x4f2   :  { %v3002_v15 = vpop.f32.mrf.mxu1  ;;  %v2642_v22 = vpack.c.bf16 %v2589_v27, %v2588_v1  ;;  %v2632_v27 = vpack.c.bf16 %v2569_v26, %v2568_v23 }
 0x4f3   :  { %3122 = vrot.lane.b32.xlu0 %v3121_v42, %s3384_s4  ;;  %v2657_v42 = vpack.c.bf16 %v2619_v58, %v2618_v61 }
 0x4f4   :  { %v1641_v29 = vpop.f32.mrf.mxu1  ;;  %2874 = vmatprep.subr.bf16.mxu0 %v2642_v22 }
 0x4f5   :  { %2875 = vmatpush3.bf16.msra.mxu0 %v2634_v9  ;;  %2898 = vmatprep.subr.bf16.mxu1 %v2657_v42  ;;  %v2617_v29 = vld [vmem:[#allocation13 + $0x188] sm:$0xff] }
 0x4f6   :  { %v3003_v51 = vpop.f32.mrf.mxu1  ;;  %2876 = vmatprep.subr.bf16.mxu0 %v2641_v31  ;;  %2899 = vmatpush3.bf16.msra.mxu1 %v2649_v50  ;;  %v2656_v1 = vpack.c.bf16 %v2617_v29, %v2616_v59 }
 0x4f8   :  { %v3987_v3 = vpop.f32.mrf.mxu1  ;;  %2900 = vmatprep.subr.bf16.mxu1 %v2656_v1 }
 0x4f9   :  { %2877 = vmatpush3.bf16.msra.mxu0 %v2633_v8 }
 0x4fa   :  { %v3014_v41 = vpop.f32.mrf.mxu1  ;;  %2878 = vmatprep.subr.bf16.mxu0 %v2640_v16  ;;  %2901 = vmatpush3.bf16.msra.mxu1 %v2648_v56 }
 0x4fc   :  { %v1768_v36 = vpop.f32.mrf.mxu1 }
 0x4fd   :  { %2879 = vmatpush3.bf16.msra.mxu0 %v2632_v27 }
 0x4fe   :  { %v3015_v46 = vpop.f32.mrf.mxu1 }
 0x500   :  { %v3989_v39 = vpop.f32.mrf.mxu1 }
 0x502   :  { %v3026_v43 = vpop.f32.mrf.mxu1 }
 0x504   :  { %v1881_v17 = vpop.f32.mrf.mxu1 }
 0x506   :  { %v3027_v45 = vpop.f32.mrf.mxu1 }
 0x508   :  { %v3991_v47 = vpop.f32.mrf.mxu1 }
 0x50a   :  { %v3038_v63 = vpop.f32.mrf.mxu1 }
 0x50c   :  { %v1988_v53 = vpop.f32.mrf.mxu1 }
 0x50e   :  { %v3039_v49 = vpop.f32.mrf.mxu1 }
 0x510   :  { %v2098_v5 = vpop.f32.mrf.mxu1 }
 0x512   :  { %v3050_v14 = vpop.f32.mrf.mxu1 }
 0x514   :  { %v2101_v19 = vpop.f32.mrf.mxu1 }
 0x516   :  { %v3051_v52 = vpop.f32.mrf.mxu1 }
 0x519   :  { %v3993_v54 = vpop.f32.mrf.mxu1 }
 0x51b   :  { %v3062_v24 = vpop.f32.mrf.mxu1 }
 0x51d   :  { %v2208_v12 = vpop.f32.mrf.mxu1 }
 0x51f   :  { %v3063_v33 = vpop.f32.mrf.mxu1 }
 0x521   :  { %v2318_v20 = vpop.f32.mrf.mxu1 }
 0x522   :  { %v3131_v40 = vpack.i.bf16 %v2318_v20, %v3989_v39 }
 0x523   :  { %v3074_v55 = vpop.f32.mrf.mxu1 }
 0x525   :  { %v2321_v7 = vpop.f32.mrf.mxu1 }
 0x527   :  { %v3075_v18 = vpop.f32.mrf.mxu1 }
 0x529   :  { %v2425_v15 = vpop.f32.mrf.mxu1 }
 0x52b   :  { %v3086_v21 = vpop.f32.mrf.mxu1 }
 0x52d   :  { %v2428_v51 = vpop.f32.mrf.mxu1 }
 0x52f   :  { %v3087_v30 = vpop.f32.mrf.mxu1 }
 0x531   :  { %v2538_v22 = vpop.f32.mrf.mxu1 }
 0x532   :  { %v3126_v48 = vpack.i.bf16 %v2538_v22, %v2098_v5 }
 0x533   :  { %v3098_v62 = vpop.f32.mrf.mxu1 }
 0x534   :  { %3127 = vrot.lane.b32.xlu0 %v3126_v48, %s3384_s4 }
 0x535   :  { %v2541_v32 = vpop.f32.mrf.mxu1 }
 0x537   :  { %v3099_v37 = vpop.f32.mrf.mxu1 }
 0x538   :  { %3132 = vrot.lane.b32.xlu0 %v3131_v40, %s3384_s4 }
 0x555   :  { %v3118_v41 = vpop.permute.xlu0 %3117 }
 0x556   :  { %v3120_v45 = vunpack.i.h.bf16 %v3118_v41  ;;  %v3119_v63 = vunpack.i.l.bf16 %v3118_v41 }
 0x558   :  { %v1662_v33 = vsel %vm764_vm1, %v3980_v60, %v3120_v45 }
 0x565   :  { %v3123_v9 = vpop.permute.xlu0 %3122 }
 0x566   :  { %v3125_v4 = vunpack.i.h.bf16 %v3123_v9  ;;  %v3124_v36 = vunpack.i.l.bf16 %v3123_v9 }
 0x568   :  { %v1661_v53 = vsel %vm764_vm1, %v3976_v11, %v3124_v36  ;;  %v1663_v39 = vsel %vm764_vm1, %v3983_v25, %v3125_v4  ;;  %v1660_v11 = vsel %vm764_vm1, %v3916_v6, %v3119_v63 }
 0x5a6   :  { %v3128_v46 = vpop.permute.xlu0 %3127 }
 0x5a7   :  { %v3130_v43 = vunpack.i.h.bf16 %v3128_v46  ;;  %v3129_v17 = vunpack.i.l.bf16 %v3128_v46 }
 0x5a9   :  { %v2561_v49 = vsel %vm764_vm1, %v3991_v47, %v3129_v17  ;;  %v2563_v5 = vsel %vm764_vm1, %v2425_v15, %v3130_v43 }
 0x5aa   :  { %v3133_v14 = vpop.permute.xlu0 %3132  ;;  %v2565_v19 = vpack.c.bf16 %v2561_v49, %v1661_v53  ;;  %v2567_v52 = vpack.c.bf16 %v2563_v5, %v1663_v39 }
 0x5ab   :  { %v3135_v24 = vunpack.i.h.bf16 %v3133_v14  ;;  %v3134_v12 = vunpack.i.l.bf16 %v3133_v14 }
 0x5ac   :  { %2696 = vmatprep.mubr.bf16.mxu0 %v2565_v19  ;;  %2737 = vmatprep.mubr.bf16.mxu1 %v2567_v52 }
 0x5ad   :  { %v2562_v47 = vsel %vm764_vm1, %v3993_v54, %v3135_v24  ;;  %v2560_v25 = vsel %vm764_vm1, %v3987_v3, %v3134_v12 }
 0x5ae   :  { %v2564_v20 = vpack.c.bf16 %v2560_v25, %v1660_v11  ;;  %v2566_v55 = vpack.c.bf16 %v2562_v47, %v1662_v33 }
 0x5b0   :  { %2697 = vmatmul.mubr.bf16.vlgmr.msra.gmra.mxu0 %v2564_v20  ;;  %2738 = vmatmul.mubr.bf16.vlgmr.msra.gmra.mxu1 %v2566_v55 }
 0x670   :  { %v2880_v7 = vpop.f32.mrf.mxu0  ;;  %v2902_v57 = vpop.f32.mrf.mxu1 }
 0x672   :  { %v2881_v35 = vpop.f32.mrf.mxu0  ;;  %v2903_v61 = vpop.f32.mrf.mxu1 }
 0x673   :  { %v2882_v18 = vadd.f32 %v2881_v35, %v2880_v7  ;;  %v2904_v31 = vadd.f32 %v2903_v61, %v2902_v57 }
 0x674   :  { %v2883_v60 = vpop.f32.mrf.mxu0  ;;  %v2905_v58 = vpop.f32.mrf.mxu1 }
 0x675   :  { %v2740_v2 = vadd.f32 %v2904_v31, %v2882_v18 }
 0x676   :  { %v2884_v6 = vpop.f32.mrf.mxu0  ;;  %v2906_v34 = vpop.f32.mrf.mxu1 }
 0x677   :  { %2746 = vst [vmem:[#allocation14] sm:$0xff] %v2740_v2  ;;  %v2885_v54 = vadd.f32 %v2884_v6, %v2883_v60  ;;  %v2907_v3 = vadd.f32 %v2906_v34, %v2905_v58 }
 0x679   :  { %v2743_v42 = vadd.f32 %v2907_v3, %v2885_v54 }
 0x67b   :  { %2747 = vst [vmem:[#allocation14 + $0x8] sm:$0xff] %v2743_v42 }
 0x67c   :  { %3351 = shalt.err (!%p3348_p11)
}
 0x67d   :  { %2759 = dma.vmem_to_hbm [thread:$0]  %s2754_s11, 256, %s4029_s10, [#allocation4], %s3372_s18, %s3372_s18, %s3373_s19  }
 0x67e   :  { %3368 = dma.done.wait [#allocation4], 256  }
 0x67f   :  { %3369 = vsyncadd [#allocation4], 4294967040 }
 0x680   :  { %2763 = vsyncpa [#allocation3], 1 }
 0x681   :  { %2764 = vsyncpa [#allocation6], 1 }
 0x682   :  { %2765 = vsyncpa [#allocation9], 1 }
 0x683   :  { %2766 = vsyncpa [#allocation12], 1 }
 0x684   :  { %2767 = vsyncpa [#allocation4], 1 }

</bundles_post_ra>
